<compile_context>
chip_gen: v7x
topology: tpu7x:2x2x1
jax: 0.10.0
libtpu: 0.0.40
codegen_flags: <defaults>
</compile_context>

<pallas_src>
import functools

import jax
import jax.numpy as jnp
from jax import lax
from jax.experimental import pallas as pl
from jax.experimental.pallas import tpu as pltpu  # noqa: F401  (imported for TPU backend)

# Weight matrices are packed to bf16 once, host-side.  Accumulation stays f32 via
# preferred_element_type, biases / LayerNorm params / residual stream stay f32.
WEIGHT_DTYPE = jnp.bfloat16


# ------------------------- fused whole-model kernel -------------------------

def _fused_transformer_kernel(
    x_ref,                       # (M, F)           M = B*S rows (whole batch, one step)
    w_in_ref, b_in_ref,          # (F, d) bf16, (1, d) f32
    w_qkv_ref, b_qkv_ref,        # (L, d, 3d) bf16 (q-scale folded in), (L, 1, 3d) f32
    w_o_ref, b_o_ref,            # (L, d, d) bf16, (L, 1, d) f32
    g1_ref, be1_ref,             # (L, 1, d), (L, 1, d) f32
    w1_ref, b1_ref,              # (L, d, d_ff) bf16, (L, 1, d_ff) f32
    w2_ref, b2_ref,              # (L, d_ff, d) bf16, (L, 1, d) f32
    g2_ref, be2_ref,             # (L, 1, d), (L, 1, d) f32
    w_out_ref, b_out_ref,        # (d, F) bf16, (1, F) f32
    o_ref,                       # (M, F)
    *, batch, seq, num_heads, eps):

    def mm(a, w):
        # weight already bf16 (host-side); cast only the small activation tile.
        return jnp.dot(a.astype(w.dtype), w, preferred_element_type=jnp.float32)

    def ln(x, g, b):
        mean = jnp.mean(x, axis=-1, keepdims=True)
        xc = x - mean
        var = jnp.mean(xc * xc, axis=-1, keepdims=True)
        return xc * lax.rsqrt(var + eps) * g + b

    # input projection: all B*S rows at once
    h = mm(x_ref[...], w_in_ref[...]) + b_in_ref[...]            # (M, d) f32
    d_model = w_o_ref.shape[-1]
    dh = d_model // num_heads
    num_layers = w_qkv_ref.shape[0]

    for l in range(num_layers):                                  # static unroll (2 layers)
        # ---- self-attention ----
        # fused QKV: one lane-dense (M, 3d) matmul (scale already folded into q weights)
        qkv = mm(h, w_qkv_ref[l]) + b_qkv_ref[l]                 # (M, 3d) f32

        # gather per-(batch, head) slices into a single (B*H, S, dh) batch for the dots
        def head_stack(base):
            return jnp.stack(
                [qkv[b * seq:(b + 1) * seq, base + hh * dh: base + (hh + 1) * dh]
                 for b in range(batch) for hh in range(num_heads)])

        q3 = head_stack(0)                                       # (B*H, S, dh)
        k3 = head_stack(d_model)
        v3 = head_stack(2 * d_model)

        # batched scores / softmax / context: dense (B*H, S, S) tile instead of tiny per-head ones
        s = jnp.einsum('bqd,bkd->bqk', q3, k3,
                       preferred_element_type=jnp.float32)       # (B*H, S, S)
        s = s - jnp.max(s, axis=-1, keepdims=True)
        p = jnp.exp(s)
        p = p * pl.reciprocal(jnp.sum(p, axis=-1, keepdims=True), approx=True)
        ctx3 = jnp.einsum('bqk,bkd->bqd', p, v3,
                          preferred_element_type=jnp.float32)    # (B*H, S, dh)

        # reassemble concat(heads) as one (M, d) tile, then a single out-proj matmul
        ctx = jnp.concatenate(
            [jnp.concatenate([ctx3[b * num_heads + hh] for hh in range(num_heads)], axis=-1)
             for b in range(batch)], axis=0)                     # (M, d)
        attn = mm(ctx, w_o_ref[l]) + b_o_ref[l]                  # (M, d)

        # post-norm residual 1
        h = ln(h + attn, g1_ref[l], be1_ref[l])

        # ---- feed-forward (relu) ----  hidden (M, 2048) never leaves VMEM
        ff = jnp.maximum(mm(h, w1_ref[l]) + b1_ref[l], 0.0)
        ff = mm(ff, w2_ref[l]) + b2_ref[l]

        # post-norm residual 2
        h = ln(h + ff, g2_ref[l], be2_ref[l])

    # output projection
    o_ref[...] = mm(h, w_out_ref[...]) + b_out_ref[...]


def transformer_baseline_forward(packed, x, *, num_heads=4, eps=1e-5):
    """x: (B, S, F) float32; packed: kernel-layout parameter dict from pack_params."""
    B, S, F = x.shape
    M = B * S
    x2 = x.reshape(M, F)

    kern = functools.partial(_fused_transformer_kernel,
                             batch=B, seq=S, num_heads=num_heads, eps=eps)

    args = [
        x2,
        packed["w_in"], packed["b_in"],
        packed["w_qkv"], packed["b_qkv"],
        packed["w_o"], packed["b_o"],
        packed["g1"], packed["be1"],
        packed["w1"], packed["b1"],
        packed["w2"], packed["b2"],
        packed["g2"], packed["be2"],
        packed["w_out"], packed["b_out"],
    ]

    # Single invocation (no grid): every operand is one full block, VMEM-resident.
    out = pl.pallas_call(
        kern,
        out_shape=jax.ShapeDtypeStruct((M, F), jnp.float32),
    )(*args)
    return out.reshape(B, S, F)


# --------------------------- parameters (glue) -----------------------------

def init_params(key, input_size, d_model=64, num_layers=2, num_heads=4, d_ff=2048):
    """Deterministic synthetic init mirroring the PyTorch module's parameter shapes."""
    def lin(k, out_f, in_f, scale=0.02):
        k1, k2 = jax.random.split(k)
        w = jax.random.normal(k1, (out_f, in_f), jnp.float32) * scale   # PyTorch (out, in)
        b = jax.random.normal(k2, (out_f,), jnp.float32) * scale
        return w, b

    keys = jax.random.split(key, 2 + num_layers)
    params = {
        "input_proj": lin(keys[0], d_model, input_size),
        "output_proj": lin(keys[1], input_size, d_model),
        "layers": [],
    }
    for l in range(num_layers):
        lk = jax.random.split(keys[2 + l], 4)
        params["layers"].append({
            "in_proj": lin(lk[0], 3 * d_model, d_model),   # MultiheadAttention in_proj
            "out_proj": lin(lk[1], d_model, d_model),      # MultiheadAttention out_proj
            "linear1": lin(lk[2], d_ff, d_model),          # FFN up
            "linear2": lin(lk[3], d_model, d_ff),          # FFN down
            "ln1": (jnp.ones((d_model,), jnp.float32), jnp.zeros((d_model,), jnp.float32)),
            "ln2": (jnp.ones((d_model,), jnp.float32), jnp.zeros((d_model,), jnp.float32)),
        })
    return params


def pack_params(params, num_heads=4):
    """One-time repack of PyTorch-shaped params into the kernel layout.

    * QKV fused into (L, d, 3d) with 1/sqrt(dh) folded into the q block.
    * Weight matrices cast to bf16 (halves weight DMA, MXU-native); biases/LN stay f32.
    """
    d_model = params["input_proj"][0].shape[0]
    dh = d_model // num_heads
    scale = float(dh) ** -0.5

    def stack(fn):
        return jnp.stack([fn(l) for l in params["layers"]])

    def wcast(w):
        return w.astype(WEIGHT_DTYPE)

    def qkv_w(l):
        w = l["in_proj"][0]                                   # (3d, d), rows [q; k; v]
        w = jnp.concatenate([w[:d_model] * scale, w[d_model:]], axis=0)
        return w.T                                            # (d, 3d)

    def qkv_b(l):
        b = l["in_proj"][1]                                   # (3d,)
        b = jnp.concatenate([b[:d_model] * scale, b[d_model:]])
        return b.reshape(1, 3 * d_model)

    w_in, b_in = params["input_proj"]
    w_out, b_out = params["output_proj"]
    return {
        "w_in": wcast(w_in.T), "b_in": b_in.reshape(1, -1),
        "w_qkv": wcast(stack(qkv_w)), "b_qkv": stack(qkv_b),
        "w_o": wcast(stack(lambda l: l["out_proj"][0].T)),
        "b_o": stack(lambda l: l["out_proj"][1].reshape(1, -1)),
        "g1": stack(lambda l: l["ln1"][0].reshape(1, -1)),
        "be1": stack(lambda l: l["ln1"][1].reshape(1, -1)),
        "w1": wcast(stack(lambda l: l["linear1"][0].T)),
        "b1": stack(lambda l: l["linear1"][1].reshape(1, -1)),
        "w2": wcast(stack(lambda l: l["linear2"][0].T)),
        "b2": stack(lambda l: l["linear2"][1].reshape(1, -1)),
        "g2": stack(lambda l: l["ln2"][0].reshape(1, -1)),
        "be2": stack(lambda l: l["ln2"][1].reshape(1, -1)),
        "w_out": wcast(w_out.T), "b_out": b_out.reshape(1, -1),
    }


# --------------------------- pure-JAX reference -----------------------------

def reference_forward(params, x, num_heads=4, eps=1e-5):
    B, S, F = x.shape
    w, b = params["input_proj"]
    h = x @ w.T + b
    d_model = w.shape[0]
    dh = d_model // num_heads

    def ln(t, g, be):
        m = t.mean(-1, keepdims=True)
        c = t - m
        return c * lax.rsqrt((c * c).mean(-1, keepdims=True) + eps) * g + be

    for layer in params["layers"]:
        wi, bi = layer["in_proj"]
        qkv = h @ wi.T + bi
        q, k, v = jnp.split(qkv, 3, axis=-1)
        heads = lambda t: t.reshape(B, S, num_heads, dh).transpose(0, 2, 1, 3)
        q = heads(q) * (float(dh) ** -0.5)
        k, v = heads(k), heads(v)
        p = jax.nn.softmax(q @ k.transpose(0, 1, 3, 2), axis=-1)
        ctx = (p @ v).transpose(0, 2, 1, 3).reshape(B, S, d_model)
        wo, bo = layer["out_proj"]
        h = ln(h + (ctx @ wo.T + bo), *layer["ln1"])
        w1, b1 = layer["linear1"]
        w2, b2 = layer["linear2"]
        ff = jnp.maximum(h @ w1.T + b1, 0.0) @ w2.T + b2
        h = ln(h + ff, *layer["ln2"])

    w, b = params["output_proj"]
    return h @ w.T + b


# --------------------------------- main -------------------------------------

if __name__ == "__main__":
    key = jax.random.PRNGKey(0)
    pkey, xkey = jax.random.split(key)

    B, S, input_size = 2, 8, 16
    d_model, num_layers, num_heads = 64, 2, 4

    params = init_params(pkey, input_size, d_model, num_layers, num_heads)
    packed = pack_params(params, num_heads=num_heads)   # one-time kernel-layout repack
    x = jax.random.normal(xkey, (B, S, input_size), jnp.float32)

    fwd = jax.jit(functools.partial(transformer_baseline_forward, num_heads=num_heads))
    out = fwd(packed, x)
    jax.block_until_ready(out)

    assert out.shape == (B, S, input_size)
    assert out.dtype == jnp.float32

    # correctness vs. pure-JAX f32 reference
    # (tolerance covers bf16 weights + approx-reciprocal softmax; accumulation stays f32)
    ref = reference_forward(params, x, num_heads=num_heads)
    err = float(jnp.max(jnp.abs(out - ref)))
    assert err < 1e-2, f"kernel/reference mismatch: max abs err = {err}"

    print("KERNEL_OK")
</pallas_src>

<mosaic_0001>
module attributes {stable_mosaic.version = 11 : i64} {
  func.func @_fused_transformer_kernel(%arg0: memref<16x16xf32, #tpu.memory_space<vmem>>, %arg1: memref<16x64xbf16, #tpu.memory_space<vmem>>, %arg2: memref<1x64xf32, #tpu.memory_space<vmem>>, %arg3: memref<2x64x192xbf16, #tpu.memory_space<vmem>>, %arg4: memref<2x1x192xf32, #tpu.memory_space<vmem>>, %arg5: memref<2x64x64xbf16, #tpu.memory_space<vmem>>, %arg6: memref<2x1x64xf32, #tpu.memory_space<vmem>>, %arg7: memref<2x1x64xf32, #tpu.memory_space<vmem>>, %arg8: memref<2x1x64xf32, #tpu.memory_space<vmem>>, %arg9: memref<2x64x2048xbf16, #tpu.memory_space<vmem>>, %arg10: memref<2x1x2048xf32, #tpu.memory_space<vmem>>, %arg11: memref<2x2048x64xbf16, #tpu.memory_space<vmem>>, %arg12: memref<2x1x64xf32, #tpu.memory_space<vmem>>, %arg13: memref<2x1x64xf32, #tpu.memory_space<vmem>>, %arg14: memref<2x1x64xf32, #tpu.memory_space<vmem>>, %arg15: memref<64x16xbf16, #tpu.memory_space<vmem>>, %arg16: memref<1x16xf32, #tpu.memory_space<vmem>>, %arg17: memref<16x16xf32, #tpu.memory_space<vmem>>) attributes {dimension_semantics = [], scalar_prefetch = 0 : i64, scratch_operands = 0 : i64, tpu.core_type = #tpu.core_type<tc>} {
    %c0 = arith.constant 0 : index
    %c0_0 = arith.constant 0 : index
    %0 = vector.load %arg0[%c0, %c0_0] : memref<16x16xf32, #tpu.memory_space<vmem>>, vector<16x16xf32>
    %c0_1 = arith.constant 0 : index
    %c0_2 = arith.constant 0 : index
    %1 = vector.load %arg1[%c0_1, %c0_2] : memref<16x64xbf16, #tpu.memory_space<vmem>>, vector<16x64xbf16>
    %2 = arith.truncf %0 : vector<16x16xf32> to vector<16x16xbf16>
    %cst = arith.constant dense<0.000000e+00> : vector<16x64xf32>
    %3 = tpu.matmul %2, %1, %cst {dimension_numbers = #tpu.dot_dimension_numbers<[1], [0], [0], [1], [0, 0, 1, 1], [], []>} : vector<16x16xbf16>, vector<16x64xbf16>, vector<16x64xf32> -> vector<16x64xf32>
    %c0_3 = arith.constant 0 : index
    %c0_4 = arith.constant 0 : index
    %4 = vector.load %arg2[%c0_3, %c0_4] : memref<1x64xf32, #tpu.memory_space<vmem>>, vector<1x64xf32>
    %5 = vector.broadcast %4 : vector<1x64xf32> to vector<16x64xf32>
    %6 = arith.addf %3, %5 : vector<16x64xf32>
    %c0_5 = arith.constant 0 : index
    %c0_6 = arith.constant 0 : index
    %c0_7 = arith.constant 0 : index
    %7 = vector.load %arg3[%c0_5, %c0_6, %c0_7] : memref<2x64x192xbf16, #tpu.memory_space<vmem>>, vector<1x64x192xbf16>
    %8 = vector.shape_cast %7 : vector<1x64x192xbf16> to vector<64x192xbf16>
    %9 = arith.truncf %6 : vector<16x64xf32> to vector<16x64xbf16>
    %cst_8 = arith.constant dense<0.000000e+00> : vector<16x192xf32>
    %10 = tpu.matmul %9, %8, %cst_8 {dimension_numbers = #tpu.dot_dimension_numbers<[1], [0], [0], [1], [0, 0, 1, 1], [], []>} : vector<16x64xbf16>, vector<64x192xbf16>, vector<16x192xf32> -> vector<16x192xf32>
    %c0_9 = arith.constant 0 : index
    %c0_10 = arith.constant 0 : index
    %c0_11 = arith.constant 0 : index
    %11 = vector.load %arg4[%c0_9, %c0_10, %c0_11] : memref<2x1x192xf32, #tpu.memory_space<vmem>>, vector<1x1x192xf32>
    %12 = vector.shape_cast %11 : vector<1x1x192xf32> to vector<1x192xf32>
    %13 = vector.broadcast %12 : vector<1x192xf32> to vector<16x192xf32>
    %14 = arith.addf %10, %13 : vector<16x192xf32>
    %15 = vector.extract_strided_slice %14 {offsets = [0, 0], sizes = [8, 16], strides = [1, 1]} : vector<16x192xf32> to vector<8x16xf32>
    %16 = vector.extract_strided_slice %14 {offsets = [0, 16], sizes = [8, 16], strides = [1, 1]} : vector<16x192xf32> to vector<8x16xf32>
    %17 = vector.extract_strided_slice %14 {offsets = [0, 32], sizes = [8, 16], strides = [1, 1]} : vector<16x192xf32> to vector<8x16xf32>
    %18 = vector.extract_strided_slice %14 {offsets = [0, 48], sizes = [8, 16], strides = [1, 1]} : vector<16x192xf32> to vector<8x16xf32>
    %19 = vector.extract_strided_slice %14 {offsets = [8, 0], sizes = [8, 16], strides = [1, 1]} : vector<16x192xf32> to vector<8x16xf32>
    %20 = vector.extract_strided_slice %14 {offsets = [8, 16], sizes = [8, 16], strides = [1, 1]} : vector<16x192xf32> to vector<8x16xf32>
    %21 = vector.extract_strided_slice %14 {offsets = [8, 32], sizes = [8, 16], strides = [1, 1]} : vector<16x192xf32> to vector<8x16xf32>
    %22 = vector.extract_strided_slice %14 {offsets = [8, 48], sizes = [8, 16], strides = [1, 1]} : vector<16x192xf32> to vector<8x16xf32>
    %23 = vector.shape_cast %15 : vector<8x16xf32> to vector<1x8x16xf32>
    %24 = vector.shape_cast %16 : vector<8x16xf32> to vector<1x8x16xf32>
    %25 = vector.shape_cast %17 : vector<8x16xf32> to vector<1x8x16xf32>
    %26 = vector.shape_cast %18 : vector<8x16xf32> to vector<1x8x16xf32>
    %27 = vector.shape_cast %19 : vector<8x16xf32> to vector<1x8x16xf32>
    %28 = vector.shape_cast %20 : vector<8x16xf32> to vector<1x8x16xf32>
    %29 = vector.shape_cast %21 : vector<8x16xf32> to vector<1x8x16xf32>
    %30 = vector.shape_cast %22 : vector<8x16xf32> to vector<1x8x16xf32>
    %31 = tpu.concatenate %23, %24, %25, %26, %27, %28, %29, %30 in 0 : vector<1x8x16xf32>, vector<1x8x16xf32>, vector<1x8x16xf32>, vector<1x8x16xf32>, vector<1x8x16xf32>, vector<1x8x16xf32>, vector<1x8x16xf32>, vector<1x8x16xf32> -> vector<8x8x16xf32>
    %32 = vector.extract_strided_slice %14 {offsets = [0, 64], sizes = [8, 16], strides = [1, 1]} : vector<16x192xf32> to vector<8x16xf32>
    %33 = vector.extract_strided_slice %14 {offsets = [0, 80], sizes = [8, 16], strides = [1, 1]} : vector<16x192xf32> to vector<8x16xf32>
    %34 = vector.extract_strided_slice %14 {offsets = [0, 96], sizes = [8, 16], strides = [1, 1]} : vector<16x192xf32> to vector<8x16xf32>
    %35 = vector.extract_strided_slice %14 {offsets = [0, 112], sizes = [8, 16], strides = [1, 1]} : vector<16x192xf32> to vector<8x16xf32>
    %36 = vector.extract_strided_slice %14 {offsets = [8, 64], sizes = [8, 16], strides = [1, 1]} : vector<16x192xf32> to vector<8x16xf32>
    %37 = vector.extract_strided_slice %14 {offsets = [8, 80], sizes = [8, 16], strides = [1, 1]} : vector<16x192xf32> to vector<8x16xf32>
    %38 = vector.extract_strided_slice %14 {offsets = [8, 96], sizes = [8, 16], strides = [1, 1]} : vector<16x192xf32> to vector<8x16xf32>
    %39 = vector.extract_strided_slice %14 {offsets = [8, 112], sizes = [8, 16], strides = [1, 1]} : vector<16x192xf32> to vector<8x16xf32>
    %40 = vector.shape_cast %32 : vector<8x16xf32> to vector<1x8x16xf32>
    %41 = vector.shape_cast %33 : vector<8x16xf32> to vector<1x8x16xf32>
    %42 = vector.shape_cast %34 : vector<8x16xf32> to vector<1x8x16xf32>
    %43 = vector.shape_cast %35 : vector<8x16xf32> to vector<1x8x16xf32>
    %44 = vector.shape_cast %36 : vector<8x16xf32> to vector<1x8x16xf32>
    %45 = vector.shape_cast %37 : vector<8x16xf32> to vector<1x8x16xf32>
    %46 = vector.shape_cast %38 : vector<8x16xf32> to vector<1x8x16xf32>
    %47 = vector.shape_cast %39 : vector<8x16xf32> to vector<1x8x16xf32>
    %48 = tpu.concatenate %40, %41, %42, %43, %44, %45, %46, %47 in 0 : vector<1x8x16xf32>, vector<1x8x16xf32>, vector<1x8x16xf32>, vector<1x8x16xf32>, vector<1x8x16xf32>, vector<1x8x16xf32>, vector<1x8x16xf32>, vector<1x8x16xf32> -> vector<8x8x16xf32>
    %49 = vector.extract_strided_slice %14 {offsets = [0, 128], sizes = [8, 16], strides = [1, 1]} : vector<16x192xf32> to vector<8x16xf32>
    %50 = vector.extract_strided_slice %14 {offsets = [0, 144], sizes = [8, 16], strides = [1, 1]} : vector<16x192xf32> to vector<8x16xf32>
    %51 = vector.extract_strided_slice %14 {offsets = [0, 160], sizes = [8, 16], strides = [1, 1]} : vector<16x192xf32> to vector<8x16xf32>
    %52 = vector.extract_strided_slice %14 {offsets = [0, 176], sizes = [8, 16], strides = [1, 1]} : vector<16x192xf32> to vector<8x16xf32>
    %53 = vector.extract_strided_slice %14 {offsets = [8, 128], sizes = [8, 16], strides = [1, 1]} : vector<16x192xf32> to vector<8x16xf32>
    %54 = vector.extract_strided_slice %14 {offsets = [8, 144], sizes = [8, 16], strides = [1, 1]} : vector<16x192xf32> to vector<8x16xf32>
    %55 = vector.extract_strided_slice %14 {offsets = [8, 160], sizes = [8, 16], strides = [1, 1]} : vector<16x192xf32> to vector<8x16xf32>
    %56 = vector.extract_strided_slice %14 {offsets = [8, 176], sizes = [8, 16], strides = [1, 1]} : vector<16x192xf32> to vector<8x16xf32>
    %57 = vector.shape_cast %49 : vector<8x16xf32> to vector<1x8x16xf32>
    %58 = vector.shape_cast %50 : vector<8x16xf32> to vector<1x8x16xf32>
    %59 = vector.shape_cast %51 : vector<8x16xf32> to vector<1x8x16xf32>
    %60 = vector.shape_cast %52 : vector<8x16xf32> to vector<1x8x16xf32>
    %61 = vector.shape_cast %53 : vector<8x16xf32> to vector<1x8x16xf32>
    %62 = vector.shape_cast %54 : vector<8x16xf32> to vector<1x8x16xf32>
    %63 = vector.shape_cast %55 : vector<8x16xf32> to vector<1x8x16xf32>
    %64 = vector.shape_cast %56 : vector<8x16xf32> to vector<1x8x16xf32>
    %65 = tpu.concatenate %57, %58, %59, %60, %61, %62, %63, %64 in 0 : vector<1x8x16xf32>, vector<1x8x16xf32>, vector<1x8x16xf32>, vector<1x8x16xf32>, vector<1x8x16xf32>, vector<1x8x16xf32>, vector<1x8x16xf32>, vector<1x8x16xf32> -> vector<8x8x16xf32>
    "tpu.trace_start"() <{level = 10 : i32, message = "bqd,bkd->bqk"}> : () -> ()
    %cst_12 = arith.constant dense<0.000000e+00> : vector<8x8x8xf32>
    %66 = tpu.matmul %31, %48, %cst_12 {dimension_numbers = #tpu.dot_dimension_numbers<[2], [2], [1], [1], [0, 0, 0, 1, 1, 1], [0], [0]>} : vector<8x8x16xf32>, vector<8x8x16xf32>, vector<8x8x8xf32> -> vector<8x8x8xf32>
    "tpu.trace_stop"() : () -> ()
    %cst_13 = arith.constant dense<0xFF800000> : vector<8x8xf32>
    %67 = vector.multi_reduction <maximumf>, %66, %cst_13 [2] : vector<8x8x8xf32> to vector<8x8xf32>
    %68 = vector.shape_cast %67 : vector<8x8xf32> to vector<8x8x1xf32>
    %69 = vector.broadcast %68 : vector<8x8x1xf32> to vector<8x8x8xf32>
    %70 = arith.subf %66, %69 : vector<8x8x8xf32>
    %71 = math.exp %70 : vector<8x8x8xf32>
    %cst_14 = arith.constant dense<0.000000e+00> : vector<8x8xf32>
    %72 = vector.multi_reduction <add>, %71, %cst_14 [2] : vector<8x8x8xf32> to vector<8x8xf32>
    %73 = vector.shape_cast %72 : vector<8x8xf32> to vector<8x8x1xf32>
    %74 = tpu.reciprocal %73 {approx = true} : vector<8x8x1xf32> -> vector<8x8x1xf32>
    %75 = vector.broadcast %74 : vector<8x8x1xf32> to vector<8x8x8xf32>
    %76 = arith.mulf %71, %75 : vector<8x8x8xf32>
    "tpu.trace_start"() <{level = 10 : i32, message = "bqk,bkd->bqd"}> : () -> ()
    %cst_15 = arith.constant dense<0.000000e+00> : vector<8x8x16xf32>
    %77 = tpu.matmul %76, %65, %cst_15 {dimension_numbers = #tpu.dot_dimension_numbers<[2], [1], [1], [2], [0, 0, 0, 1, 1, 2], [0], [0]>} : vector<8x8x8xf32>, vector<8x8x16xf32>, vector<8x8x16xf32> -> vector<8x8x16xf32>
    "tpu.trace_stop"() : () -> ()
    %78 = vector.extract_strided_slice %77 {offsets = [0, 0, 0], sizes = [1, 8, 16], strides = [1, 1, 1]} : vector<8x8x16xf32> to vector<1x8x16xf32>
    %79 = vector.shape_cast %78 : vector<1x8x16xf32> to vector<8x16xf32>
    %80 = vector.extract_strided_slice %77 {offsets = [1, 0, 0], sizes = [1, 8, 16], strides = [1, 1, 1]} : vector<8x8x16xf32> to vector<1x8x16xf32>
    %81 = vector.shape_cast %80 : vector<1x8x16xf32> to vector<8x16xf32>
    %82 = vector.extract_strided_slice %77 {offsets = [2, 0, 0], sizes = [1, 8, 16], strides = [1, 1, 1]} : vector<8x8x16xf32> to vector<1x8x16xf32>
    %83 = vector.shape_cast %82 : vector<1x8x16xf32> to vector<8x16xf32>
    %84 = vector.extract_strided_slice %77 {offsets = [3, 0, 0], sizes = [1, 8, 16], strides = [1, 1, 1]} : vector<8x8x16xf32> to vector<1x8x16xf32>
    %85 = vector.shape_cast %84 : vector<1x8x16xf32> to vector<8x16xf32>
    %86 = tpu.concatenate %79, %81, %83, %85 in 1 : vector<8x16xf32>, vector<8x16xf32>, vector<8x16xf32>, vector<8x16xf32> -> vector<8x64xf32>
    %87 = vector.extract_strided_slice %77 {offsets = [4, 0, 0], sizes = [1, 8, 16], strides = [1, 1, 1]} : vector<8x8x16xf32> to vector<1x8x16xf32>
    %88 = vector.shape_cast %87 : vector<1x8x16xf32> to vector<8x16xf32>
    %89 = vector.extract_strided_slice %77 {offsets = [5, 0, 0], sizes = [1, 8, 16], strides = [1, 1, 1]} : vector<8x8x16xf32> to vector<1x8x16xf32>
    %90 = vector.shape_cast %89 : vector<1x8x16xf32> to vector<8x16xf32>
    %91 = vector.extract_strided_slice %77 {offsets = [6, 0, 0], sizes = [1, 8, 16], strides = [1, 1, 1]} : vector<8x8x16xf32> to vector<1x8x16xf32>
    %92 = vector.shape_cast %91 : vector<1x8x16xf32> to vector<8x16xf32>
    %93 = vector.extract_strided_slice %77 {offsets = [7, 0, 0], sizes = [1, 8, 16], strides = [1, 1, 1]} : vector<8x8x16xf32> to vector<1x8x16xf32>
    %94 = vector.shape_cast %93 : vector<1x8x16xf32> to vector<8x16xf32>
    %95 = tpu.concatenate %88, %90, %92, %94 in 1 : vector<8x16xf32>, vector<8x16xf32>, vector<8x16xf32>, vector<8x16xf32> -> vector<8x64xf32>
    %96 = tpu.concatenate %86, %95 in 0 : vector<8x64xf32>, vector<8x64xf32> -> vector<16x64xf32>
    %c0_16 = arith.constant 0 : index
    %c0_17 = arith.constant 0 : index
    %c0_18 = arith.constant 0 : index
    %97 = vector.load %arg5[%c0_16, %c0_17, %c0_18] : memref<2x64x64xbf16, #tpu.memory_space<vmem>>, vector<1x64x64xbf16>
    %98 = vector.shape_cast %97 : vector<1x64x64xbf16> to vector<64x64xbf16>
    %99 = arith.truncf %96 : vector<16x64xf32> to vector<16x64xbf16>
    %cst_19 = arith.constant dense<0.000000e+00> : vector<16x64xf32>
    %100 = tpu.matmul %99, %98, %cst_19 {dimension_numbers = #tpu.dot_dimension_numbers<[1], [0], [0], [1], [0, 0, 1, 1], [], []>} : vector<16x64xbf16>, vector<64x64xbf16>, vector<16x64xf32> -> vector<16x64xf32>
    %c0_20 = arith.constant 0 : index
    %c0_21 = arith.constant 0 : index
    %c0_22 = arith.constant 0 : index
    %101 = vector.load %arg6[%c0_20, %c0_21, %c0_22] : memref<2x1x64xf32, #tpu.memory_space<vmem>>, vector<1x1x64xf32>
    %102 = vector.shape_cast %101 : vector<1x1x64xf32> to vector<1x64xf32>
    %103 = vector.broadcast %102 : vector<1x64xf32> to vector<16x64xf32>
    %104 = arith.addf %100, %103 : vector<16x64xf32>
    %105 = arith.addf %6, %104 : vector<16x64xf32>
    %c0_23 = arith.constant 0 : index
    %c0_24 = arith.constant 0 : index
    %c0_25 = arith.constant 0 : index
    %106 = vector.load %arg7[%c0_23, %c0_24, %c0_25] : memref<2x1x64xf32, #tpu.memory_space<vmem>>, vector<1x1x64xf32>
    %107 = vector.shape_cast %106 : vector<1x1x64xf32> to vector<1x64xf32>
    %c0_26 = arith.constant 0 : index
    %c0_27 = arith.constant 0 : index
    %c0_28 = arith.constant 0 : index
    %108 = vector.load %arg8[%c0_26, %c0_27, %c0_28] : memref<2x1x64xf32, #tpu.memory_space<vmem>>, vector<1x1x64xf32>
    %109 = vector.shape_cast %108 : vector<1x1x64xf32> to vector<1x64xf32>
    %cst_29 = arith.constant dense<0.000000e+00> : vector<16xf32>
    %110 = vector.multi_reduction <add>, %105, %cst_29 [1] : vector<16x64xf32> to vector<16xf32>
    %111 = vector.shape_cast %110 : vector<16xf32> to vector<16x1xf32>
    %cst_30 = arith.constant 6.400000e+01 : f32
    %112 = vector.broadcast %cst_30 : f32 to vector<16x1xf32>
    %113 = arith.divf %111, %112 : vector<16x1xf32>
    %114 = vector.broadcast %113 : vector<16x1xf32> to vector<16x64xf32>
    %115 = arith.subf %105, %114 : vector<16x64xf32>
    %116 = arith.mulf %115, %115 : vector<16x64xf32>
    %cst_31 = arith.constant dense<0.000000e+00> : vector<16xf32>
    %117 = vector.multi_reduction <add>, %116, %cst_31 [1] : vector<16x64xf32> to vector<16xf32>
    %118 = vector.shape_cast %117 : vector<16xf32> to vector<16x1xf32>
    %cst_32 = arith.constant 6.400000e+01 : f32
    %119 = vector.broadcast %cst_32 : f32 to vector<16x1xf32>
    %120 = arith.divf %118, %119 : vector<16x1xf32>
    %cst_33 = arith.constant 9.99999974E-6 : f32
    %121 = vector.broadcast %cst_33 : f32 to vector<16x1xf32>
    %122 = arith.addf %120, %121 : vector<16x1xf32>
    %123 = math.rsqrt %122 : vector<16x1xf32>
    %124 = vector.broadcast %123 : vector<16x1xf32> to vector<16x64xf32>
    %125 = arith.mulf %115, %124 : vector<16x64xf32>
    %126 = vector.broadcast %107 : vector<1x64xf32> to vector<16x64xf32>
    %127 = arith.mulf %125, %126 : vector<16x64xf32>
    %128 = vector.broadcast %109 : vector<1x64xf32> to vector<16x64xf32>
    %129 = arith.addf %127, %128 : vector<16x64xf32>
    %c0_34 = arith.constant 0 : index
    %c0_35 = arith.constant 0 : index
    %c0_36 = arith.constant 0 : index
    %130 = vector.load %arg9[%c0_34, %c0_35, %c0_36] : memref<2x64x2048xbf16, #tpu.memory_space<vmem>>, vector<1x64x2048xbf16>
    %131 = vector.shape_cast %130 : vector<1x64x2048xbf16> to vector<64x2048xbf16>
    %132 = arith.truncf %129 : vector<16x64xf32> to vector<16x64xbf16>
    %cst_37 = arith.constant dense<0.000000e+00> : vector<16x2048xf32>
    %133 = tpu.matmul %132, %131, %cst_37 {dimension_numbers = #tpu.dot_dimension_numbers<[1], [0], [0], [1], [0, 0, 1, 1], [], []>} : vector<16x64xbf16>, vector<64x2048xbf16>, vector<16x2048xf32> -> vector<16x2048xf32>
    %c0_38 = arith.constant 0 : index
    %c0_39 = arith.constant 0 : index
    %c0_40 = arith.constant 0 : index
    %134 = vector.load %arg10[%c0_38, %c0_39, %c0_40] : memref<2x1x2048xf32, #tpu.memory_space<vmem>>, vector<1x1x2048xf32>
    %135 = vector.shape_cast %134 : vector<1x1x2048xf32> to vector<1x2048xf32>
    %136 = vector.broadcast %135 : vector<1x2048xf32> to vector<16x2048xf32>
    %137 = arith.addf %133, %136 : vector<16x2048xf32>
    %cst_41 = arith.constant 0.000000e+00 : f32
    %138 = vector.broadcast %cst_41 : f32 to vector<16x2048xf32>
    %139 = arith.maximumf %137, %138 : vector<16x2048xf32>
    %c0_42 = arith.constant 0 : index
    %c0_43 = arith.constant 0 : index
    %c0_44 = arith.constant 0 : index
    %140 = vector.load %arg11[%c0_42, %c0_43, %c0_44] : memref<2x2048x64xbf16, #tpu.memory_space<vmem>>, vector<1x2048x64xbf16>
    %141 = vector.shape_cast %140 : vector<1x2048x64xbf16> to vector<2048x64xbf16>
    %142 = arith.truncf %139 : vector<16x2048xf32> to vector<16x2048xbf16>
    %cst_45 = arith.constant dense<0.000000e+00> : vector<16x64xf32>
    %143 = tpu.matmul %142, %141, %cst_45 {dimension_numbers = #tpu.dot_dimension_numbers<[1], [0], [0], [1], [0, 0, 1, 1], [], []>} : vector<16x2048xbf16>, vector<2048x64xbf16>, vector<16x64xf32> -> vector<16x64xf32>
    %c0_46 = arith.constant 0 : index
    %c0_47 = arith.constant 0 : index
    %c0_48 = arith.constant 0 : index
    %144 = vector.load %arg12[%c0_46, %c0_47, %c0_48] : memref<2x1x64xf32, #tpu.memory_space<vmem>>, vector<1x1x64xf32>
    %145 = vector.shape_cast %144 : vector<1x1x64xf32> to vector<1x64xf32>
    %146 = vector.broadcast %145 : vector<1x64xf32> to vector<16x64xf32>
    %147 = arith.addf %143, %146 : vector<16x64xf32>
    %148 = arith.addf %129, %147 : vector<16x64xf32>
    %c0_49 = arith.constant 0 : index
    %c0_50 = arith.constant 0 : index
    %c0_51 = arith.constant 0 : index
    %149 = vector.load %arg13[%c0_49, %c0_50, %c0_51] : memref<2x1x64xf32, #tpu.memory_space<vmem>>, vector<1x1x64xf32>
    %150 = vector.shape_cast %149 : vector<1x1x64xf32> to vector<1x64xf32>
    %c0_52 = arith.constant 0 : index
    %c0_53 = arith.constant 0 : index
    %c0_54 = arith.constant 0 : index
    %151 = vector.load %arg14[%c0_52, %c0_53, %c0_54] : memref<2x1x64xf32, #tpu.memory_space<vmem>>, vector<1x1x64xf32>
    %152 = vector.shape_cast %151 : vector<1x1x64xf32> to vector<1x64xf32>
    %cst_55 = arith.constant dense<0.000000e+00> : vector<16xf32>
    %153 = vector.multi_reduction <add>, %148, %cst_55 [1] : vector<16x64xf32> to vector<16xf32>
    %154 = vector.shape_cast %153 : vector<16xf32> to vector<16x1xf32>
    %cst_56 = arith.constant 6.400000e+01 : f32
    %155 = vector.broadcast %cst_56 : f32 to vector<16x1xf32>
    %156 = arith.divf %154, %155 : vector<16x1xf32>
    %157 = vector.broadcast %156 : vector<16x1xf32> to vector<16x64xf32>
    %158 = arith.subf %148, %157 : vector<16x64xf32>
    %159 = arith.mulf %158, %158 : vector<16x64xf32>
    %cst_57 = arith.constant dense<0.000000e+00> : vector<16xf32>
    %160 = vector.multi_reduction <add>, %159, %cst_57 [1] : vector<16x64xf32> to vector<16xf32>
    %161 = vector.shape_cast %160 : vector<16xf32> to vector<16x1xf32>
    %cst_58 = arith.constant 6.400000e+01 : f32
    %162 = vector.broadcast %cst_58 : f32 to vector<16x1xf32>
    %163 = arith.divf %161, %162 : vector<16x1xf32>
    %cst_59 = arith.constant 9.99999974E-6 : f32
    %164 = vector.broadcast %cst_59 : f32 to vector<16x1xf32>
    %165 = arith.addf %163, %164 : vector<16x1xf32>
    %166 = math.rsqrt %165 : vector<16x1xf32>
    %167 = vector.broadcast %166 : vector<16x1xf32> to vector<16x64xf32>
    %168 = arith.mulf %158, %167 : vector<16x64xf32>
    %169 = vector.broadcast %150 : vector<1x64xf32> to vector<16x64xf32>
    %170 = arith.mulf %168, %169 : vector<16x64xf32>
    %171 = vector.broadcast %152 : vector<1x64xf32> to vector<16x64xf32>
    %172 = arith.addf %170, %171 : vector<16x64xf32>
    %c1 = arith.constant 1 : index
    %c0_60 = arith.constant 0 : index
    %c0_61 = arith.constant 0 : index
    %173 = vector.load %arg3[%c1, %c0_60, %c0_61] : memref<2x64x192xbf16, #tpu.memory_space<vmem>>, vector<1x64x192xbf16>
    %174 = vector.shape_cast %173 : vector<1x64x192xbf16> to vector<64x192xbf16>
    %175 = arith.truncf %172 : vector<16x64xf32> to vector<16x64xbf16>
    %cst_62 = arith.constant dense<0.000000e+00> : vector<16x192xf32>
    %176 = tpu.matmul %175, %174, %cst_62 {dimension_numbers = #tpu.dot_dimension_numbers<[1], [0], [0], [1], [0, 0, 1, 1], [], []>} : vector<16x64xbf16>, vector<64x192xbf16>, vector<16x192xf32> -> vector<16x192xf32>
    %c1_63 = arith.constant 1 : index
    %c0_64 = arith.constant 0 : index
    %c0_65 = arith.constant 0 : index
    %177 = vector.load %arg4[%c1_63, %c0_64, %c0_65] : memref<2x1x192xf32, #tpu.memory_space<vmem>>, vector<1x1x192xf32>
    %178 = vector.shape_cast %177 : vector<1x1x192xf32> to vector<1x192xf32>
    %179 = vector.broadcast %178 : vector<1x192xf32> to vector<16x192xf32>
    %180 = arith.addf %176, %179 : vector<16x192xf32>
    %181 = vector.extract_strided_slice %180 {offsets = [0, 0], sizes = [8, 16], strides = [1, 1]} : vector<16x192xf32> to vector<8x16xf32>
    %182 = vector.extract_strided_slice %180 {offsets = [0, 16], sizes = [8, 16], strides = [1, 1]} : vector<16x192xf32> to vector<8x16xf32>
    %183 = vector.extract_strided_slice %180 {offsets = [0, 32], sizes = [8, 16], strides = [1, 1]} : vector<16x192xf32> to vector<8x16xf32>
    %184 = vector.extract_strided_slice %180 {offsets = [0, 48], sizes = [8, 16], strides = [1, 1]} : vector<16x192xf32> to vector<8x16xf32>
    %185 = vector.extract_strided_slice %180 {offsets = [8, 0], sizes = [8, 16], strides = [1, 1]} : vector<16x192xf32> to vector<8x16xf32>
    %186 = vector.extract_strided_slice %180 {offsets = [8, 16], sizes = [8, 16], strides = [1, 1]} : vector<16x192xf32> to vector<8x16xf32>
    %187 = vector.extract_strided_slice %180 {offsets = [8, 32], sizes = [8, 16], strides = [1, 1]} : vector<16x192xf32> to vector<8x16xf32>
    %188 = vector.extract_strided_slice %180 {offsets = [8, 48], sizes = [8, 16], strides = [1, 1]} : vector<16x192xf32> to vector<8x16xf32>
    %189 = vector.shape_cast %181 : vector<8x16xf32> to vector<1x8x16xf32>
    %190 = vector.shape_cast %182 : vector<8x16xf32> to vector<1x8x16xf32>
    %191 = vector.shape_cast %183 : vector<8x16xf32> to vector<1x8x16xf32>
    %192 = vector.shape_cast %184 : vector<8x16xf32> to vector<1x8x16xf32>
    %193 = vector.shape_cast %185 : vector<8x16xf32> to vector<1x8x16xf32>
    %194 = vector.shape_cast %186 : vector<8x16xf32> to vector<1x8x16xf32>
    %195 = vector.shape_cast %187 : vector<8x16xf32> to vector<1x8x16xf32>
    %196 = vector.shape_cast %188 : vector<8x16xf32> to vector<1x8x16xf32>
    %197 = tpu.concatenate %189, %190, %191, %192, %193, %194, %195, %196 in 0 : vector<1x8x16xf32>, vector<1x8x16xf32>, vector<1x8x16xf32>, vector<1x8x16xf32>, vector<1x8x16xf32>, vector<1x8x16xf32>, vector<1x8x16xf32>, vector<1x8x16xf32> -> vector<8x8x16xf32>
    %198 = vector.extract_strided_slice %180 {offsets = [0, 64], sizes = [8, 16], strides = [1, 1]} : vector<16x192xf32> to vector<8x16xf32>
    %199 = vector.extract_strided_slice %180 {offsets = [0, 80], sizes = [8, 16], strides = [1, 1]} : vector<16x192xf32> to vector<8x16xf32>
    %200 = vector.extract_strided_slice %180 {offsets = [0, 96], sizes = [8, 16], strides = [1, 1]} : vector<16x192xf32> to vector<8x16xf32>
    %201 = vector.extract_strided_slice %180 {offsets = [0, 112], sizes = [8, 16], strides = [1, 1]} : vector<16x192xf32> to vector<8x16xf32>
    %202 = vector.extract_strided_slice %180 {offsets = [8, 64], sizes = [8, 16], strides = [1, 1]} : vector<16x192xf32> to vector<8x16xf32>
    %203 = vector.extract_strided_slice %180 {offsets = [8, 80], sizes = [8, 16], strides = [1, 1]} : vector<16x192xf32> to vector<8x16xf32>
    %204 = vector.extract_strided_slice %180 {offsets = [8, 96], sizes = [8, 16], strides = [1, 1]} : vector<16x192xf32> to vector<8x16xf32>
    %205 = vector.extract_strided_slice %180 {offsets = [8, 112], sizes = [8, 16], strides = [1, 1]} : vector<16x192xf32> to vector<8x16xf32>
    %206 = vector.shape_cast %198 : vector<8x16xf32> to vector<1x8x16xf32>
    %207 = vector.shape_cast %199 : vector<8x16xf32> to vector<1x8x16xf32>
    %208 = vector.shape_cast %200 : vector<8x16xf32> to vector<1x8x16xf32>
    %209 = vector.shape_cast %201 : vector<8x16xf32> to vector<1x8x16xf32>
    %210 = vector.shape_cast %202 : vector<8x16xf32> to vector<1x8x16xf32>
    %211 = vector.shape_cast %203 : vector<8x16xf32> to vector<1x8x16xf32>
    %212 = vector.shape_cast %204 : vector<8x16xf32> to vector<1x8x16xf32>
    %213 = vector.shape_cast %205 : vector<8x16xf32> to vector<1x8x16xf32>
    %214 = tpu.concatenate %206, %207, %208, %209, %210, %211, %212, %213 in 0 : vector<1x8x16xf32>, vector<1x8x16xf32>, vector<1x8x16xf32>, vector<1x8x16xf32>, vector<1x8x16xf32>, vector<1x8x16xf32>, vector<1x8x16xf32>, vector<1x8x16xf32> -> vector<8x8x16xf32>
    %215 = vector.extract_strided_slice %180 {offsets = [0, 128], sizes = [8, 16], strides = [1, 1]} : vector<16x192xf32> to vector<8x16xf32>
    %216 = vector.extract_strided_slice %180 {offsets = [0, 144], sizes = [8, 16], strides = [1, 1]} : vector<16x192xf32> to vector<8x16xf32>
    %217 = vector.extract_strided_slice %180 {offsets = [0, 160], sizes = [8, 16], strides = [1, 1]} : vector<16x192xf32> to vector<8x16xf32>
    %218 = vector.extract_strided_slice %180 {offsets = [0, 176], sizes = [8, 16], strides = [1, 1]} : vector<16x192xf32> to vector<8x16xf32>
    %219 = vector.extract_strided_slice %180 {offsets = [8, 128], sizes = [8, 16], strides = [1, 1]} : vector<16x192xf32> to vector<8x16xf32>
    %220 = vector.extract_strided_slice %180 {offsets = [8, 144], sizes = [8, 16], strides = [1, 1]} : vector<16x192xf32> to vector<8x16xf32>
    %221 = vector.extract_strided_slice %180 {offsets = [8, 160], sizes = [8, 16], strides = [1, 1]} : vector<16x192xf32> to vector<8x16xf32>
    %222 = vector.extract_strided_slice %180 {offsets = [8, 176], sizes = [8, 16], strides = [1, 1]} : vector<16x192xf32> to vector<8x16xf32>
    %223 = vector.shape_cast %215 : vector<8x16xf32> to vector<1x8x16xf32>
    %224 = vector.shape_cast %216 : vector<8x16xf32> to vector<1x8x16xf32>
    %225 = vector.shape_cast %217 : vector<8x16xf32> to vector<1x8x16xf32>
    %226 = vector.shape_cast %218 : vector<8x16xf32> to vector<1x8x16xf32>
    %227 = vector.shape_cast %219 : vector<8x16xf32> to vector<1x8x16xf32>
    %228 = vector.shape_cast %220 : vector<8x16xf32> to vector<1x8x16xf32>
    %229 = vector.shape_cast %221 : vector<8x16xf32> to vector<1x8x16xf32>
    %230 = vector.shape_cast %222 : vector<8x16xf32> to vector<1x8x16xf32>
    %231 = tpu.concatenate %223, %224, %225, %226, %227, %228, %229, %230 in 0 : vector<1x8x16xf32>, vector<1x8x16xf32>, vector<1x8x16xf32>, vector<1x8x16xf32>, vector<1x8x16xf32>, vector<1x8x16xf32>, vector<1x8x16xf32>, vector<1x8x16xf32> -> vector<8x8x16xf32>
    "tpu.trace_start"() <{level = 10 : i32, message = "bqd,bkd->bqk"}> : () -> ()
    %cst_66 = arith.constant dense<0.000000e+00> : vector<8x8x8xf32>
    %232 = tpu.matmul %197, %214, %cst_66 {dimension_numbers = #tpu.dot_dimension_numbers<[2], [2], [1], [1], [0, 0, 0, 1, 1, 1], [0], [0]>} : vector<8x8x16xf32>, vector<8x8x16xf32>, vector<8x8x8xf32> -> vector<8x8x8xf32>
    "tpu.trace_stop"() : () -> ()
    %cst_67 = arith.constant dense<0xFF800000> : vector<8x8xf32>
    %233 = vector.multi_reduction <maximumf>, %232, %cst_67 [2] : vector<8x8x8xf32> to vector<8x8xf32>
    %234 = vector.shape_cast %233 : vector<8x8xf32> to vector<8x8x1xf32>
    %235 = vector.broadcast %234 : vector<8x8x1xf32> to vector<8x8x8xf32>
    %236 = arith.subf %232, %235 : vector<8x8x8xf32>
    %237 = math.exp %236 : vector<8x8x8xf32>
    %cst_68 = arith.constant dense<0.000000e+00> : vector<8x8xf32>
    %238 = vector.multi_reduction <add>, %237, %cst_68 [2] : vector<8x8x8xf32> to vector<8x8xf32>
    %239 = vector.shape_cast %238 : vector<8x8xf32> to vector<8x8x1xf32>
    %240 = tpu.reciprocal %239 {approx = true} : vector<8x8x1xf32> -> vector<8x8x1xf32>
    %241 = vector.broadcast %240 : vector<8x8x1xf32> to vector<8x8x8xf32>
    %242 = arith.mulf %237, %241 : vector<8x8x8xf32>
    "tpu.trace_start"() <{level = 10 : i32, message = "bqk,bkd->bqd"}> : () -> ()
    %cst_69 = arith.constant dense<0.000000e+00> : vector<8x8x16xf32>
    %243 = tpu.matmul %242, %231, %cst_69 {dimension_numbers = #tpu.dot_dimension_numbers<[2], [1], [1], [2], [0, 0, 0, 1, 1, 2], [0], [0]>} : vector<8x8x8xf32>, vector<8x8x16xf32>, vector<8x8x16xf32> -> vector<8x8x16xf32>
    "tpu.trace_stop"() : () -> ()
    %244 = vector.extract_strided_slice %243 {offsets = [0, 0, 0], sizes = [1, 8, 16], strides = [1, 1, 1]} : vector<8x8x16xf32> to vector<1x8x16xf32>
    %245 = vector.shape_cast %244 : vector<1x8x16xf32> to vector<8x16xf32>
    %246 = vector.extract_strided_slice %243 {offsets = [1, 0, 0], sizes = [1, 8, 16], strides = [1, 1, 1]} : vector<8x8x16xf32> to vector<1x8x16xf32>
    %247 = vector.shape_cast %246 : vector<1x8x16xf32> to vector<8x16xf32>
    %248 = vector.extract_strided_slice %243 {offsets = [2, 0, 0], sizes = [1, 8, 16], strides = [1, 1, 1]} : vector<8x8x16xf32> to vector<1x8x16xf32>
    %249 = vector.shape_cast %248 : vector<1x8x16xf32> to vector<8x16xf32>
    %250 = vector.extract_strided_slice %243 {offsets = [3, 0, 0], sizes = [1, 8, 16], strides = [1, 1, 1]} : vector<8x8x16xf32> to vector<1x8x16xf32>
    %251 = vector.shape_cast %250 : vector<1x8x16xf32> to vector<8x16xf32>
    %252 = tpu.concatenate %245, %247, %249, %251 in 1 : vector<8x16xf32>, vector<8x16xf32>, vector<8x16xf32>, vector<8x16xf32> -> vector<8x64xf32>
    %253 = vector.extract_strided_slice %243 {offsets = [4, 0, 0], sizes = [1, 8, 16], strides = [1, 1, 1]} : vector<8x8x16xf32> to vector<1x8x16xf32>
    %254 = vector.shape_cast %253 : vector<1x8x16xf32> to vector<8x16xf32>
    %255 = vector.extract_strided_slice %243 {offsets = [5, 0, 0], sizes = [1, 8, 16], strides = [1, 1, 1]} : vector<8x8x16xf32> to vector<1x8x16xf32>
    %256 = vector.shape_cast %255 : vector<1x8x16xf32> to vector<8x16xf32>
    %257 = vector.extract_strided_slice %243 {offsets = [6, 0, 0], sizes = [1, 8, 16], strides = [1, 1, 1]} : vector<8x8x16xf32> to vector<1x8x16xf32>
    %258 = vector.shape_cast %257 : vector<1x8x16xf32> to vector<8x16xf32>
    %259 = vector.extract_strided_slice %243 {offsets = [7, 0, 0], sizes = [1, 8, 16], strides = [1, 1, 1]} : vector<8x8x16xf32> to vector<1x8x16xf32>
    %260 = vector.shape_cast %259 : vector<1x8x16xf32> to vector<8x16xf32>
    %261 = tpu.concatenate %254, %256, %258, %260 in 1 : vector<8x16xf32>, vector<8x16xf32>, vector<8x16xf32>, vector<8x16xf32> -> vector<8x64xf32>
    %262 = tpu.concatenate %252, %261 in 0 : vector<8x64xf32>, vector<8x64xf32> -> vector<16x64xf32>
    %c1_70 = arith.constant 1 : index
    %c0_71 = arith.constant 0 : index
    %c0_72 = arith.constant 0 : index
    %263 = vector.load %arg5[%c1_70, %c0_71, %c0_72] : memref<2x64x64xbf16, #tpu.memory_space<vmem>>, vector<1x64x64xbf16>
    %264 = vector.shape_cast %263 : vector<1x64x64xbf16> to vector<64x64xbf16>
    %265 = arith.truncf %262 : vector<16x64xf32> to vector<16x64xbf16>
    %cst_73 = arith.constant dense<0.000000e+00> : vector<16x64xf32>
    %266 = tpu.matmul %265, %264, %cst_73 {dimension_numbers = #tpu.dot_dimension_numbers<[1], [0], [0], [1], [0, 0, 1, 1], [], []>} : vector<16x64xbf16>, vector<64x64xbf16>, vector<16x64xf32> -> vector<16x64xf32>
    %c1_74 = arith.constant 1 : index
    %c0_75 = arith.constant 0 : index
    %c0_76 = arith.constant 0 : index
    %267 = vector.load %arg6[%c1_74, %c0_75, %c0_76] : memref<2x1x64xf32, #tpu.memory_space<vmem>>, vector<1x1x64xf32>
    %268 = vector.shape_cast %267 : vector<1x1x64xf32> to vector<1x64xf32>
    %269 = vector.broadcast %268 : vector<1x64xf32> to vector<16x64xf32>
    %270 = arith.addf %266, %269 : vector<16x64xf32>
    %271 = arith.addf %172, %270 : vector<16x64xf32>
    %c1_77 = arith.constant 1 : index
    %c0_78 = arith.constant 0 : index
    %c0_79 = arith.constant 0 : index
    %272 = vector.load %arg7[%c1_77, %c0_78, %c0_79] : memref<2x1x64xf32, #tpu.memory_space<vmem>>, vector<1x1x64xf32>
    %273 = vector.shape_cast %272 : vector<1x1x64xf32> to vector<1x64xf32>
    %c1_80 = arith.constant 1 : index
    %c0_81 = arith.constant 0 : index
    %c0_82 = arith.constant 0 : index
    %274 = vector.load %arg8[%c1_80, %c0_81, %c0_82] : memref<2x1x64xf32, #tpu.memory_space<vmem>>, vector<1x1x64xf32>
    %275 = vector.shape_cast %274 : vector<1x1x64xf32> to vector<1x64xf32>
    %cst_83 = arith.constant dense<0.000000e+00> : vector<16xf32>
    %276 = vector.multi_reduction <add>, %271, %cst_83 [1] : vector<16x64xf32> to vector<16xf32>
    %277 = vector.shape_cast %276 : vector<16xf32> to vector<16x1xf32>
    %cst_84 = arith.constant 6.400000e+01 : f32
    %278 = vector.broadcast %cst_84 : f32 to vector<16x1xf32>
    %279 = arith.divf %277, %278 : vector<16x1xf32>
    %280 = vector.broadcast %279 : vector<16x1xf32> to vector<16x64xf32>
    %281 = arith.subf %271, %280 : vector<16x64xf32>
    %282 = arith.mulf %281, %281 : vector<16x64xf32>
    %cst_85 = arith.constant dense<0.000000e+00> : vector<16xf32>
    %283 = vector.multi_reduction <add>, %282, %cst_85 [1] : vector<16x64xf32> to vector<16xf32>
    %284 = vector.shape_cast %283 : vector<16xf32> to vector<16x1xf32>
    %cst_86 = arith.constant 6.400000e+01 : f32
    %285 = vector.broadcast %cst_86 : f32 to vector<16x1xf32>
    %286 = arith.divf %284, %285 : vector<16x1xf32>
    %cst_87 = arith.constant 9.99999974E-6 : f32
    %287 = vector.broadcast %cst_87 : f32 to vector<16x1xf32>
    %288 = arith.addf %286, %287 : vector<16x1xf32>
    %289 = math.rsqrt %288 : vector<16x1xf32>
    %290 = vector.broadcast %289 : vector<16x1xf32> to vector<16x64xf32>
    %291 = arith.mulf %281, %290 : vector<16x64xf32>
    %292 = vector.broadcast %273 : vector<1x64xf32> to vector<16x64xf32>
    %293 = arith.mulf %291, %292 : vector<16x64xf32>
    %294 = vector.broadcast %275 : vector<1x64xf32> to vector<16x64xf32>
    %295 = arith.addf %293, %294 : vector<16x64xf32>
    %c1_88 = arith.constant 1 : index
    %c0_89 = arith.constant 0 : index
    %c0_90 = arith.constant 0 : index
    %296 = vector.load %arg9[%c1_88, %c0_89, %c0_90] : memref<2x64x2048xbf16, #tpu.memory_space<vmem>>, vector<1x64x2048xbf16>
    %297 = vector.shape_cast %296 : vector<1x64x2048xbf16> to vector<64x2048xbf16>
    %298 = arith.truncf %295 : vector<16x64xf32> to vector<16x64xbf16>
    %cst_91 = arith.constant dense<0.000000e+00> : vector<16x2048xf32>
    %299 = tpu.matmul %298, %297, %cst_91 {dimension_numbers = #tpu.dot_dimension_numbers<[1], [0], [0], [1], [0, 0, 1, 1], [], []>} : vector<16x64xbf16>, vector<64x2048xbf16>, vector<16x2048xf32> -> vector<16x2048xf32>
    %c1_92 = arith.constant 1 : index
    %c0_93 = arith.constant 0 : index
    %c0_94 = arith.constant 0 : index
    %300 = vector.load %arg10[%c1_92, %c0_93, %c0_94] : memref<2x1x2048xf32, #tpu.memory_space<vmem>>, vector<1x1x2048xf32>
    %301 = vector.shape_cast %300 : vector<1x1x2048xf32> to vector<1x2048xf32>
    %302 = vector.broadcast %301 : vector<1x2048xf32> to vector<16x2048xf32>
    %303 = arith.addf %299, %302 : vector<16x2048xf32>
    %cst_95 = arith.constant 0.000000e+00 : f32
    %304 = vector.broadcast %cst_95 : f32 to vector<16x2048xf32>
    %305 = arith.maximumf %303, %304 : vector<16x2048xf32>
    %c1_96 = arith.constant 1 : index
    %c0_97 = arith.constant 0 : index
    %c0_98 = arith.constant 0 : index
    %306 = vector.load %arg11[%c1_96, %c0_97, %c0_98] : memref<2x2048x64xbf16, #tpu.memory_space<vmem>>, vector<1x2048x64xbf16>
    %307 = vector.shape_cast %306 : vector<1x2048x64xbf16> to vector<2048x64xbf16>
    %308 = arith.truncf %305 : vector<16x2048xf32> to vector<16x2048xbf16>
    %cst_99 = arith.constant dense<0.000000e+00> : vector<16x64xf32>
    %309 = tpu.matmul %308, %307, %cst_99 {dimension_numbers = #tpu.dot_dimension_numbers<[1], [0], [0], [1], [0, 0, 1, 1], [], []>} : vector<16x2048xbf16>, vector<2048x64xbf16>, vector<16x64xf32> -> vector<16x64xf32>
    %c1_100 = arith.constant 1 : index
    %c0_101 = arith.constant 0 : index
    %c0_102 = arith.constant 0 : index
    %310 = vector.load %arg12[%c1_100, %c0_101, %c0_102] : memref<2x1x64xf32, #tpu.memory_space<vmem>>, vector<1x1x64xf32>
    %311 = vector.shape_cast %310 : vector<1x1x64xf32> to vector<1x64xf32>
    %312 = vector.broadcast %311 : vector<1x64xf32> to vector<16x64xf32>
    %313 = arith.addf %309, %312 : vector<16x64xf32>
    %314 = arith.addf %295, %313 : vector<16x64xf32>
    %c1_103 = arith.constant 1 : index
    %c0_104 = arith.constant 0 : index
    %c0_105 = arith.constant 0 : index
    %315 = vector.load %arg13[%c1_103, %c0_104, %c0_105] : memref<2x1x64xf32, #tpu.memory_space<vmem>>, vector<1x1x64xf32>
    %316 = vector.shape_cast %315 : vector<1x1x64xf32> to vector<1x64xf32>
    %c1_106 = arith.constant 1 : index
    %c0_107 = arith.constant 0 : index
    %c0_108 = arith.constant 0 : index
    %317 = vector.load %arg14[%c1_106, %c0_107, %c0_108] : memref<2x1x64xf32, #tpu.memory_space<vmem>>, vector<1x1x64xf32>
    %318 = vector.shape_cast %317 : vector<1x1x64xf32> to vector<1x64xf32>
    %cst_109 = arith.constant dense<0.000000e+00> : vector<16xf32>
    %319 = vector.multi_reduction <add>, %314, %cst_109 [1] : vector<16x64xf32> to vector<16xf32>
    %320 = vector.shape_cast %319 : vector<16xf32> to vector<16x1xf32>
    %cst_110 = arith.constant 6.400000e+01 : f32
    %321 = vector.broadcast %cst_110 : f32 to vector<16x1xf32>
    %322 = arith.divf %320, %321 : vector<16x1xf32>
    %323 = vector.broadcast %322 : vector<16x1xf32> to vector<16x64xf32>
    %324 = arith.subf %314, %323 : vector<16x64xf32>
    %325 = arith.mulf %324, %324 : vector<16x64xf32>
    %cst_111 = arith.constant dense<0.000000e+00> : vector<16xf32>
    %326 = vector.multi_reduction <add>, %325, %cst_111 [1] : vector<16x64xf32> to vector<16xf32>
    %327 = vector.shape_cast %326 : vector<16xf32> to vector<16x1xf32>
    %cst_112 = arith.constant 6.400000e+01 : f32
    %328 = vector.broadcast %cst_112 : f32 to vector<16x1xf32>
    %329 = arith.divf %327, %328 : vector<16x1xf32>
    %cst_113 = arith.constant 9.99999974E-6 : f32
    %330 = vector.broadcast %cst_113 : f32 to vector<16x1xf32>
    %331 = arith.addf %329, %330 : vector<16x1xf32>
    %332 = math.rsqrt %331 : vector<16x1xf32>
    %333 = vector.broadcast %332 : vector<16x1xf32> to vector<16x64xf32>
    %334 = arith.mulf %324, %333 : vector<16x64xf32>
    %335 = vector.broadcast %316 : vector<1x64xf32> to vector<16x64xf32>
    %336 = arith.mulf %334, %335 : vector<16x64xf32>
    %337 = vector.broadcast %318 : vector<1x64xf32> to vector<16x64xf32>
    %338 = arith.addf %336, %337 : vector<16x64xf32>
    %c0_114 = arith.constant 0 : index
    %c0_115 = arith.constant 0 : index
    %339 = vector.load %arg15[%c0_114, %c0_115] : memref<64x16xbf16, #tpu.memory_space<vmem>>, vector<64x16xbf16>
    %340 = arith.truncf %338 : vector<16x64xf32> to vector<16x64xbf16>
    %cst_116 = arith.constant dense<0.000000e+00> : vector<16x16xf32>
    %341 = tpu.matmul %340, %339, %cst_116 {dimension_numbers = #tpu.dot_dimension_numbers<[1], [0], [0], [1], [0, 0, 1, 1], [], []>} : vector<16x64xbf16>, vector<64x16xbf16>, vector<16x16xf32> -> vector<16x16xf32>
    %c0_117 = arith.constant 0 : index
    %c0_118 = arith.constant 0 : index
    %342 = vector.load %arg16[%c0_117, %c0_118] : memref<1x16xf32, #tpu.memory_space<vmem>>, vector<1x16xf32>
    %343 = vector.broadcast %342 : vector<1x16xf32> to vector<16x16xf32>
    %344 = arith.addf %341, %343 : vector<16x16xf32>
    %c0_119 = arith.constant 0 : index
    %c0_120 = arith.constant 0 : index
    %345 = vector.load %arg17[%c0_119, %c0_120] : memref<16x16xf32, #tpu.memory_space<vmem>>, vector<16x16xf32>
    tpu.vector_store %arg17[%c0_119, %c0_120], %344 {strides = array<i32>} : memref<16x16xf32, #tpu.memory_space<vmem>>, vector<16x16xf32>,
    return
  }
}

</mosaic_0001>

<bundles_post_ra>
// kernel: transformer_baseline_forward.1
= control target key start
LH: loop header
LB: loop body
LE: loop exit
PB: predicated region body
PF: predicated region fallthrough
CT: control target
= control target key end

     0   :  { %s11804_s0 = inlined_call_operand.vmem [shape: f32[16,16], index: 0, kind: input, shape index: {}]   ;;  %s11805_s1 = inlined_call_operand.vmem [shape: bf16[16,64], index: 1, kind: input, shape index: {}]   ;;  %s11806_s2 = inlined_call_operand.vmem [shape: f32[1,64], index: 2, kind: input, shape index: {}]   ;;  %s11807_s3 = inlined_call_operand.vmem [shape: bf16[2,64,192], index: 3, kind: input, shape index: {}]   ;;  %s11808_s4 = inlined_call_operand.vmem [shape: f32[2,1,192], index: 4, kind: input, shape index: {}]   ;;  %s11809_s5 = inlined_call_operand.vmem [shape: bf16[2,64,64], index: 5, kind: input, shape index: {}]   ;;  %s11810_s6 = inlined_call_operand.vmem [shape: f32[2,1,64], index: 6, kind: input, shape index: {}]   ;;  %s11811_s7 = inlined_call_operand.vmem [shape: f32[2,1,64], index: 7, kind: input, shape index: {}]   ;;  %s11812_s8 = inlined_call_operand.vmem [shape: f32[2,1,64], index: 8, kind: input, shape index: {}]   ;;  %s11813_s9 = inlined_call_operand.vmem [shape: bf16[2,64,2048], index: 9, kind: input, shape index: {}]   ;;  %s11814_s10 = inlined_call_operand.vmem [shape: f32[2,1,2048], index: 10, kind: input, shape index: {}]   ;;  %s11815_s11 = inlined_call_operand.vmem [shape: bf16[2,2048,64], index: 11, kind: input, shape index: {}]   ;;  %s11816_s12 = inlined_call_operand.vmem [shape: f32[2,1,64], index: 12, kind: input, shape index: {}]   ;;  %s11817_s13 = inlined_call_operand.vmem [shape: f32[2,1,64], index: 13, kind: input, shape index: {}]   ;;  %s11818_s14 = inlined_call_operand.vmem [shape: f32[2,1,64], index: 14, kind: input, shape index: {}]   ;;  %s11819_s15 = inlined_call_operand.vmem [shape: bf16[64,16], index: 15, kind: input, shape index: {}]   ;;  %s11820_s16 = inlined_call_operand.vmem [shape: f32[1,16], index: 16, kind: input, shape index: {}]   ;;  %s11821_s17 = inlined_call_operand.hbm [shape: f32[16,16], index: 17, kind: output, shape index: {}]  }
   0x1   :  { %11824 = sst [smem:[#allocation5_spill]] %s11804_s0 }
   0x2   :  { %11825 = sst [smem:[#allocation6_spill]] %s11805_s1 }
   0x3   :  { %s11826_s26 = sld [smem:[#allocation6_spill]]  ;;  %v9857_v1 = vmov 0.0   ;;  %s11827_s29 = sld [smem:[#allocation5_spill]]  ;;  %vm9858_vm0 = vmmov 0   ;;  %vm76_vm1 = vcmask 130048   ;;  %v9859_v13 = vmov 0  }
   0x4   :  { %9215 = vmatprep.subr.bf16.mxu0 %v9857_v1  ;;  %9217 = vmatprep.mubr.msk.bf16.mxu0 %vm9858_vm0, %v9857_v1  ;;  %v9461_v5 = vld [vmem:[%s11807_s3 + $0x4] ss:$8 sps:$4 sm:$0xff]   ;;  %v9463_v6 = vld [vmem:[%s11807_s3] ss:$8 sps:$4 sm:$0xff]   ;;  %v9464_v7 = vld [vmem:[%s11807_s3 + $0x14] ss:$8 sps:$4 sm:$0xff]  }
   0x5   :  { %186 = vmatprep.subr.bf16.mxu1 %v9461_v5  ;;  %v9466_v8 = vld [vmem:[%s11807_s3 + $0x10] ss:$8 sps:$4 sm:$0xff]   ;;  %v9467_v9 = vld [vmem:[%s11807_s3 + $0x24] ss:$8 sps:$4 sm:$0xff]   ;;  %v9469_v10 = vld [vmem:[%s11807_s3 + $0x20] ss:$8 sps:$4 sm:$0xff]   ;;  %218 = vmatprep.mubr.bf16.mxu1 %v9859_v13 }
   0x6   :  { %187 = vmatpush1.bf16.msra.mxu1 %v9463_v6  ;;  %v9470_v11 = vld [vmem:[%s11807_s3 + $0x34] ss:$8 sps:$4 sm:$0xff]   ;;  %v9472_v12 = vld [vmem:[%s11807_s3 + $0x30] ss:$8 sps:$4 sm:$0xff]  }
   0x7   :  { %188 = vmatprep.subr.bf16.mxu1 %v9464_v7 }
   0x9   :  { %v9460_v0 = vld [vmem:[%s11826_s26] sm:$0xff]   ;;  %v59_v3 = vld [vmem:[%s11827_s29 + $0x8] sm:$0xff] }
   0xa   :  { %v58_v2 = vld [vmem:[%s11827_s29] sm:$0xff]  ;;  %9216 = vmatpush3.bf16.msra.mxu0 %v9460_v0  ;;  %189 = vmatpush1.bf16.msra.mxu1 %v9466_v8 }
   0xb   :  { %v62_v4 = vpack.c.bf16 %v59_v3, %v58_v2  ;;  %9221 = vmatprep.subr.mxu0 %v9857_v1  ;;  %190 = vmatprep.subr.bf16.mxu1 %v9467_v9 }
   0xd   :  { %9218 = vmatmul.mubr.msk.bf16.vlgmr.msra.gmra.mrb[0].mxu0 %vm76_vm1, %v62_v4 }
   0xe   :  { %9223 = vmatprep.mubr.msk.f32.mxu0 %vm9858_vm0, %v9857_v1  ;;  %191 = vmatpush1.bf16.msra.mxu1 %v9469_v10 }
   0xf   :  { %192 = vmatprep.subr.bf16.mxu1 %v9470_v11 }
  0x12   :  { %193 = vmatpush1.bf16.msra.mxu1 %v9472_v12 }
  0x13   :  { %9241 = vmatprep.subr.mxu1 %v9857_v1 }
  0x14   :  { %22 = vsyncpa [#allocation3], 0  ;;  %v7940_v14 = vld [vmem:[%s11806_s2] ss:$0 sm:$0xff]  ;;  %vm182_vm2 = vcmask 523264   ;;  %v132_v22 = vlaneseq  ;;  %s9860_s21 = smov 80  }
  0x15   :  { %v130_v25 = vld [vmem:[%s11808_s4] sm:$0x3]  ;;  %s9861_s22 = smov 112   ;;  %s9862_s23 = smov 96   ;;  %vm871_vm3 = vcmask 64512   ;;  %vm1557_vm4 = vcmask 261120  }
  0x16   :  { %v10014_v23 = vshrl.u32 %v132_v22, 7  ;;  %s9863_s24 = smov 64   ;;  %s9864_s30 = smov 16   ;;  %vm1559_vm5 = vcmask 392192  }
  0x17   :  { %s9865_s1 = smov 48   ;;  %s11823_s2 = smov 32  }
  0x18   :  { %v10017_v24 = vsub.s32 0, %v10014_v23  ;;  %v10024_v27 = vsub.s32 1, %v10014_v23  ;;  %s11828_s28 = smov 32  }
  0x1a   :  { %v135_v26 = vrot.slane %v130_v25, %v10017_v24  ;;  %v139_v31 = vrot.slane %v130_v25, %v10024_v27 }
  0xe0   :  { %v114_v15 = vpop.f32.mrb[0].mxu0 }
  0xe1   :  { %v9219_v16 = vpop.f32.mrb[1].mxu0  ;;  %v10005_v18 = vadd.f32 %v7940_v14, %v114_v15 }
  0xe2   :  { %v117_v17 = vpop.f32.mrb[2].mxu0 }
  0xe3   :  { %v10007_v19 = vadd.f32 %v7940_v14, %v117_v17  ;;  %v9220_v20 = vpop.f32.mrb[3].mxu0 }
  0xe5   :  { %v129_v21 = vpack.c.bf16 %v10007_v19, %v10005_v18 }
  0xe7   :  { %7951 = vmatmul.mubr.msk.bf16.vlgmr.msra.gmra.mrb[0].mxu1 %vm182_vm2, %v129_v21 }
  0xe8   :  { %9243 = vmatprep.mubr.msk.f32.mxu1 %vm9858_vm0, %v9857_v1 }
 0x1ba   :  { %v220_v28 = vpop.f32.mrb[0].mxu1 }
 0x1bb   :  { %v221_v29 = vadd.f32 %v220_v28, %v135_v26  ;;  %v222_v30 = vpop.f32.mrb[1].mxu1 }
 0x1bc   :  { %v224_v32 = vpop.f32.mrb[2].mxu1  ;;  %v223_v49 = vadd.f32 %v222_v30, %v139_v31 }
 0x1bd   :  { %v226_v33 = vpop.f32.mrb[3].mxu1  ;;  %234 = vrot.lane.b32.xlu1 %v221_v29, %s9860_s21  ;;  %230 = vrot.lane.b32.xlu0 %v221_v29, %s9861_s22  ;;  %v225_v35 = vadd.f32 %v224_v32, %v135_v26 }
 0x1be   :  { %v10029_v34 = vadd.f32 %v226_v33, %v139_v31 }
 0x1c1   :  { %237 = vrot.lane.b32.xlu1 %v225_v35, %s9861_s22  ;;  %232 = vrot.lane.b32.xlu0 %v221_v29, %s9862_s23 }
 0x1c5   :  { %241 = vrot.lane.b32.xlu1 %v225_v35, %s9860_s21  ;;  %239 = vrot.lane.b32.xlu0 %v225_v35, %s9862_s23 }
 0x1c9   :  { %263 = vrot.lane.b32.xlu0 %v221_v29, %s9863_s24 }
 0x22f   :  { %v235_v36 = vpop.permute.xlu1 %234  ;;  %v231_v37 = vpop.permute.xlu0 %230 }
 0x230   :  { %339 = vrot.lane.b32.xlu1 %v231_v37, %s9863_s24 }
 0x233   :  { %v233_v38 = vpop.permute.xlu0 %232  ;;  %v238_v39 = vpop.permute.xlu1 %237 }
 0x234   :  { %491 = vrot.lane.b32.xlu1 %v235_v36, %s9863_s24  ;;  %415 = vrot.lane.b32.xlu0 %v233_v38, %s9863_s24 }
 0x237   :  { %v240_v40 = vpop.permute.xlu0 %239  ;;  %v242_v41 = vpop.permute.xlu1 %241 }
 0x238   :  { %643 = vrot.lane.b32.xlu1 %v238_v39, %s9863_s24  ;;  %567 = vrot.lane.b32.xlu0 %v225_v35, %s9863_s24 }
 0x23b   :  { %v264_v42 = vpop.permute.xlu0 %263 }
 0x23c   :  { %795 = vrot.lane.b32.xlu1 %v242_v41, %s9863_s24  ;;  %719 = vrot.lane.b32.xlu0 %v240_v40, %s9863_s24 }
 0x23d   :  { %9222 = vmatpush3.xpose.msk.msra.mxu0 %vm76_vm1, %v264_v42 }
 0x23e   :  { %9226 = vmatprep.subr.mxu0 %v9857_v1 }
 0x240   :  { %9224 = vmatmul.mubr.msk.f32.vlgmr.msra.gmra.mrb[4].mxu0 %vm76_vm1, %v221_v29 }
 0x241   :  { %9228 = vmatprep.mubr.msk.f32.mxu0 %vm9858_vm0, %v9857_v1 }
 0x2a2   :  { %v340_v43 = vpop.permute.xlu1 %339 }
 0x2a3   :  { %9227 = vmatpush3.xpose.msk.msra.mxu0 %vm76_vm1, %v340_v43 }
 0x2a4   :  { %9231 = vmatprep.subr.mxu0 %v9857_v1 }
 0x2a6   :  { %v492_v44 = vpop.permute.xlu1 %491  ;;  %9229 = vmatmul.mubr.msk.f32.vlgmr.msra.gmra.mrb[6].mxu0 %vm76_vm1, %v231_v37  ;;  %v416_v45 = vpop.permute.xlu0 %415 }
 0x2a7   :  { %9232 = vmatpush3.xpose.msk.msra.mxu0 %vm76_vm1, %v416_v45  ;;  %9233 = vmatprep.mubr.msk.f32.mxu0 %vm9858_vm0, %v9857_v1 }
 0x2a8   :  { %9236 = vmatprep.subr.mxu0 %v9857_v1 }
 0x2aa   :  { %9234 = vmatmul.mubr.msk.f32.vlgmr.msra.gmra.mrb[8].mxu0 %vm76_vm1, %v233_v38  ;;  %v568_v46 = vpop.permute.xlu0 %567  ;;  %v644_v47 = vpop.permute.xlu1 %643 }
 0x2ab   :  { %9237 = vmatpush3.xpose.msk.msra.mxu0 %vm76_vm1, %v492_v44  ;;  %9242 = vmatpush3.xpose.msk.msra.mxu1 %vm76_vm1, %v568_v46 }
 0x2ac   :  { %9238 = vmatprep.mubr.msk.f32.mxu0 %vm9858_vm0, %v9857_v1  ;;  %9246 = vmatprep.subr.mxu0 %v9857_v1 }
 0x2ad   :  { %9251 = vmatprep.subr.mxu1 %v9857_v1 }
 0x2ae   :  { %9239 = vmatmul.mubr.msk.f32.vlgmr.msra.gmra.mrb[10].mxu0 %vm76_vm1, %v235_v36  ;;  %9244 = vmatmul.mubr.msk.f32.vlgmr.msra.gmra.mrb[4].mxu1 %vm76_vm1, %v225_v35  ;;  %v720_v48 = vpop.permute.xlu0 %719  ;;  %v796_v50 = vpop.permute.xlu1 %795 }
 0x2af   :  { %9247 = vmatpush3.xpose.msk.msra.mxu0 %vm76_vm1, %v644_v47  ;;  %9252 = vmatpush3.xpose.msk.msra.mxu1 %vm76_vm1, %v720_v48 }
 0x2b0   :  { %9248 = vmatprep.mubr.msk.f32.mxu0 %vm9858_vm0, %v9857_v1  ;;  %9253 = vmatprep.mubr.msk.f32.mxu1 %vm9858_vm0, %v9857_v1 }
 0x2b1   :  { %9256 = vmatprep.subr.mxu0 %v9857_v1  ;;  %9261 = vmatprep.subr.mxu1 %v9857_v1 }
 0x2b2   :  { %9249 = vmatmul.mubr.msk.f32.vlgmr.msra.gmra.mrb[12].mxu0 %vm76_vm1, %v238_v39  ;;  %9254 = vmatmul.mubr.msk.f32.vlgmr.msra.gmra.mrb[6].mxu1 %vm76_vm1, %v240_v40 }
 0x2b3   :  { %9257 = vmatpush3.xpose.msk.msra.mxu0 %vm76_vm1, %v796_v50  ;;  %9262 = vmatpush3.msra.mxu1 %v223_v49 }
 0x2b4   :  { %9258 = vmatprep.mubr.msk.f32.mxu0 %vm9858_vm0, %v9857_v1  ;;  %9266 = vmatprep.subr.mxu0 %v9857_v1 }
 0x2b5   :  { %9263 = vmatprep.mubr.msk.f32.mxu1 %vm9858_vm0, %v9857_v1  ;;  %9271 = vmatprep.subr.mxu1 %v9857_v1 }
 0x2b6   :  { %9259 = vmatmul.mubr.msk.f32.vlgmr.msra.gmra.mrb[14].mxu0 %vm76_vm1, %v242_v41 }
 0x2b7   :  { %9268 = vmatprep.mubr.msk.f32.mxu0 %vm9858_vm0, %v9857_v1 }
 0x313   :  { %v335_v51 = vpop.f32.mrb[4].mxu0 }
 0x314   :  { %v9225_v52 = vpop.f32.mrb[5].mxu0  ;;  %v872_v53 = vsel %vm871_vm3, %v335_v51, -inf }
 0x315   :  { %873 = vmax.xlane.f32.xlu0 %v872_v53 }
 0x379   :  { %v411_v54 = vpop.f32.mrb[6].mxu0 }
 0x37a   :  { %v9230_v55 = vpop.f32.mrb[7].mxu0  ;;  %v875_v56 = vsel %vm871_vm3, %v411_v54, -inf }
 0x37b   :  { %876 = vmax.xlane.f32.xlu1 %v875_v56 }
 0x37d   :  { %v487_v57 = vpop.f32.mrb[8].mxu0 }
 0x37e   :  { %v9235_v58 = vpop.f32.mrb[9].mxu0  ;;  %v878_v59 = vsel %vm871_vm3, %v487_v57, -inf }
 0x37f   :  { %879 = vmax.xlane.f32.xlu0 %v878_v59 }
 0x381   :  { %v563_v60 = vpop.f32.mrb[10].mxu0  ;;  %v639_v61 = vpop.f32.mrb[4].mxu1 }
 0x382   :  { %v9240_v62 = vpop.f32.mrb[11].mxu0  ;;  %v9245_v63 = vpop.f32.mrb[5].mxu1  ;;  %v884_v0 = vsel %vm871_vm3, %v639_v61, -inf  ;;  %v881_v2 = vsel %vm871_vm3, %v563_v60, -inf }
 0x383   :  { %885 = vmax.xlane.f32.xlu1 %v884_v0  ;;  %882 = vmax.xlane.f32.xlu0 %v881_v2 }
 0x385   :  { %v715_v3 = vpop.f32.mrb[12].mxu0  ;;  %v791_v4 = vpop.f32.mrb[6].mxu1 }
 0x386   :  { %v9250_v5 = vpop.f32.mrb[13].mxu0  ;;  %v9255_v6 = vpop.f32.mrb[7].mxu1  ;;  %v890_v7 = vsel %vm871_vm3, %v791_v4, -inf  ;;  %v887_v8 = vsel %vm871_vm3, %v715_v3, -inf }
 0x387   :  { %891 = vmax.xlane.f32.xlu1 %v890_v7  ;;  %888 = vmax.xlane.f32.xlu0 %v887_v8 }
 0x389   :  { %v867_v9 = vpop.f32.mrb[14].mxu0 }
 0x38a   :  { %v9260_v10 = vpop.f32.mrb[15].mxu0  ;;  %v893_v11 = vsel %vm871_vm3, %v867_v9, -inf }
 0x38b   :  { %894 = vmax.xlane.f32.xlu0 %v893_v11 }
 0x398   :  { %244 = vrot.lane.b32.xlu1 %v223_v49, %s9861_s22 }
 0x39c   :  { %250 = vrot.lane.b32.xlu1 %v223_v49, %s9860_s21 }
 0x3a0   :  { %254 = vrot.lane.b32.xlu1 %v10029_v34, %s9861_s22 }
 0x3a1   :  { %247 = vrot.lane.b32.xlu0 %v223_v49, %s9862_s23 }
 0x3a2   :  { %v874_v12 = vpop.xlane.xlu0 %873 }
 0x3a3   :  { %v896_v14 = vsub.f32 %v335_v51, %v874_v12 }
 0x3a5   :  { %v904_v15 = vmul.f32 1.442695, %v896_v14 }
 0x3a7   :  { %9753 = vpow2.f32 %v904_v15 }
 0x3b1   :  { %v9754_v16 = vpop.eup %9753 }
 0x3b2   :  { %v920_v17 = vsel %vm871_vm3, %v9754_v16, 0.0 }
 0x3c4   :  { %921 = vadd.xlane.f32.xlu1 %v920_v17 }
 0x408   :  { %v877_v20 = vpop.xlane.xlu1 %876 }
 0x409   :  { %v897_v21 = vsub.f32 %v411_v54, %v877_v20 }
 0x40b   :  { %v906_v22 = vmul.f32 1.442695, %v897_v21 }
 0x40c   :  { %v880_v25 = vpop.xlane.xlu0 %879 }
 0x40d   :  { %9755 = vpow2.f32 %v906_v22  ;;  %v898_v31 = vsub.f32 %v487_v57, %v880_v25 }
 0x40f   :  { %v908_v40 = vmul.f32 1.442695, %v898_v31 }
 0x410   :  { %v886_v26 = vpop.xlane.xlu1 %885  ;;  %v883_v28 = vpop.xlane.xlu0 %882 }
 0x411   :  { %v900_v29 = vsub.f32 %v639_v61, %v886_v26  ;;  %v899_v30 = vsub.f32 %v563_v60, %v883_v28 }
 0x413   :  { %v912_v32 = vmul.f32 1.442695, %v900_v29  ;;  %v910_v33 = vmul.f32 1.442695, %v899_v30 }
 0x414   :  { %v892_v35 = vpop.xlane.xlu1 %891  ;;  %v889_v36 = vpop.xlane.xlu0 %888 }
 0x415   :  { %9757 = vpow2.f32 %v912_v32  ;;  %v902_v37 = vsub.f32 %v791_v4, %v892_v35  ;;  %v901_v38 = vsub.f32 %v715_v3, %v889_v36  ;;  %v9473_v36 = vld [vmem:[%s11809_s5] sm:$0xff]  }
 0x416   :  { %9759 = vpow2.f32 %v910_v33 }
 0x417   :  { %v9756_v39 = vpop.eup %9755  ;;  %v916_v41 = vmul.f32 1.442695, %v902_v37  ;;  %v914_v42 = vmul.f32 1.442695, %v901_v38  ;;  %v9474_v37 = vld [vmem:[%s11809_s5 + $0x8] sm:$0xff]  }
 0x418   :  { %v245_v43 = vpop.permute.xlu1 %244  ;;  %v895_v44 = vpop.xlane.xlu0 %894  ;;  %v923_v45 = vsel %vm871_vm3, %v9756_v39, 0.0 }
 0x419   :  { %9761 = vpow2.f32 %v916_v41  ;;  %v903_v46 = vsub.f32 %v867_v9, %v895_v44  ;;  %9267 = vmatpush3.msra.mxu0 %v245_v43  ;;  %924 = vadd.xlane.f32.xlu0 %v923_v45 }
 0x41a   :  { %9763 = vpow2.f32 %v914_v42  ;;  %9276 = vmatprep.subr.mxu0 %v9857_v1 }
 0x41b   :  { %9765 = vpow2.f32 %v908_v40  ;;  %v918_v47 = vmul.f32 1.442695, %v903_v46  ;;  %v9475_v40 = vld [vmem:[%s11809_s5 + $0x10] sm:$0xff]  }
 0x41c   :  { %v251_v60 = vpop.permute.xlu1 %250  ;;  %v248_v2 = vpop.permute.xlu0 %247 }
 0x41d   :  { %9767 = vpow2.f32 %v918_v47  ;;  %v9476_v47 = vld [vmem:[%s11809_s5 + $0x18] sm:$0xff]  }
 0x41f   :  { %v10100_v48 = vpop.eup %9757 }
 0x420   :  { %v9760_v49 = vpop.eup %9759  ;;  %v932_v50 = vsel %vm871_vm3, %v10100_v48, 0.0  ;;  %v255_v61 = vpop.permute.xlu1 %254 }
 0x421   :  { %933 = vadd.xlane.f32.xlu1 %v932_v50  ;;  %v929_v51 = vsel %vm871_vm3, %v9760_v49, 0.0 }
 0x422   :  { %930 = vadd.xlane.f32.xlu0 %v929_v51 }
 0x423   :  { %v10105_v52 = vpop.eup %9761 }
 0x424   :  { %v9764_v53 = vpop.eup %9763  ;;  %v938_v54 = vsel %vm871_vm3, %v10105_v52, 0.0 }
 0x425   :  { %v9766_v55 = vpop.eup %9765  ;;  %939 = vadd.xlane.f32.xlu1 %v938_v54  ;;  %v935_v56 = vsel %vm871_vm3, %v9764_v53, 0.0 }
 0x426   :  { %936 = vadd.xlane.f32.xlu0 %v935_v56  ;;  %v926_v58 = vsel %vm871_vm3, %v9766_v55, 0.0 }
 0x427   :  { %v9768_v57 = vpop.eup %9767 }
 0x428   :  { %v941_v59 = vsel %vm871_vm3, %v9768_v57, 0.0 }
 0x429   :  { %927 = vadd.xlane.f32.xlu1 %v926_v58 }
 0x42a   :  { %942 = vadd.xlane.f32.xlu0 %v941_v59 }
 0x43a   :  { %260 = vrot.lane.b32.xlu1 %v10029_v34, %s9860_s21 }
 0x440   :  { %257 = vrot.lane.b32.xlu0 %v10029_v34, %s9862_s23 }
 0x451   :  { %v922_v62 = vpop.xlane.xlu1 %921 }
 0x452   :  { %9769 = vrcp.f32 %v922_v62 }
 0x45c   :  { %v9770_v63 = vpop.eup %9769 }
 0x45d   :  { %v952_v0 = vmul.f32 %v9770_v63, %v9754_v16 }
 0x45f   :  { %9264 = vmatmul.mubr.msk.f32.vlgmr.msra.gmra.mrb[8].mxu1 %vm871_vm3, %v952_v0 }
 0x460   :  { %9272 = vmatpush3.msra.mxu1 %v248_v2  ;;  %9273 = vmatprep.mubr.msk.f32.mxu1 %vm9858_vm0, %v9857_v1 }
 0x461   :  { %9281 = vmatprep.subr.mxu1 %v9857_v1 }
 0x4a6   :  { %v925_v3 = vpop.xlane.xlu0 %924 }
 0x4a7   :  { %9771 = vrcp.f32 %v925_v3 }
 0x4ae   :  { %v934_v4 = vpop.xlane.xlu1 %933 }
 0x4af   :  { %v931_v5 = vpop.xlane.xlu0 %930 }
 0x4b0   :  { %9773 = vrcp.f32 %v931_v5 }
 0x4b1   :  { %v9772_v6 = vpop.eup %9771 }
 0x4b2   :  { %v953_v7 = vmul.f32 %v9772_v6, %v9756_v39  ;;  %v940_v8 = vpop.xlane.xlu1 %939 }
 0x4b3   :  { %v937_v9 = vpop.xlane.xlu0 %936 }
 0x4b4   :  { %9775 = vrcp.f32 %v937_v9  ;;  %9269 = vmatmul.mubr.msk.f32.vlgmr.msra.gmra.mrb[16].mxu0 %vm871_vm3, %v953_v7 }
 0x4b5   :  { %9277 = vmatpush3.msra.mxu0 %v251_v60  ;;  %9278 = vmatprep.mubr.msk.f32.mxu0 %vm9858_vm0, %v9857_v1 }
 0x4b6   :  { %v928_v10 = vpop.xlane.xlu1 %927  ;;  %9286 = vmatprep.subr.mxu0 %v9857_v1 }
 0x4b7   :  { %9777 = vrcp.f32 %v928_v10  ;;  %v943_v11 = vpop.xlane.xlu0 %942 }
 0x4b8   :  { %9779 = vrcp.f32 %v943_v11 }
 0x4b9   :  { %9781 = vrcp.f32 %v934_v4 }
 0x4ba   :  { %v9774_v12 = vpop.eup %9773  ;;  %9783 = vrcp.f32 %v940_v8  ;;  %v261_v20 = vpop.permute.xlu1 %260  ;;  %v7976_v8 = vld [vmem:[%s11810_s6] ss:$0 sm:$0xff] }
 0x4bb   :  { %v955_v14 = vmul.f32 %v9774_v12, %v9760_v49  ;;  %v258_v30 = vpop.permute.xlu0 %257 }
 0x4bd   :  { %9279 = vmatmul.mubr.msk.f32.vlgmr.msra.gmra.mrb[18].mxu0 %vm871_vm3, %v955_v14 }
 0x4be   :  { %v9776_v15 = vpop.eup %9775  ;;  %9287 = vmatpush3.msra.mxu0 %v255_v61  ;;  %9288 = vmatprep.mubr.msk.f32.mxu0 %vm9858_vm0, %v9857_v1 }
 0x4bf   :  { %v957_v16 = vmul.f32 %v9776_v15, %v9764_v53  ;;  %9296 = vmatprep.subr.mxu0 %v9857_v1 }
 0x4c1   :  { %v9778_v17 = vpop.eup %9777  ;;  %9289 = vmatmul.mubr.msk.f32.vlgmr.msra.gmra.mrb[20].mxu0 %vm871_vm3, %v957_v16 }
 0x4c2   :  { %v9780_v21 = vpop.eup %9779  ;;  %v954_v22 = vmul.f32 %v9778_v17, %v9766_v55  ;;  %9297 = vmatpush3.msra.mxu0 %v261_v20  ;;  %9298 = vmatprep.mubr.msk.f32.mxu0 %vm9858_vm0, %v9857_v1 }
 0x4c3   :  { %v9782_v25 = vpop.eup %9781  ;;  %v959_v26 = vmul.f32 %v9780_v21, %v9768_v57 }
 0x4c4   :  { %9274 = vmatmul.mubr.msk.f32.vlgmr.msra.gmra.mrb[10].mxu1 %vm871_vm3, %v954_v22  ;;  %v956_v28 = vmul.f32 %v9782_v25, %v10100_v48  ;;  %v9784_v29 = vpop.eup %9783 }
 0x4c5   :  { %9282 = vmatpush3.msra.mxu1 %v10029_v34  ;;  %9299 = vmatmul.mubr.msk.f32.vlgmr.msra.gmra.mrb[22].mxu0 %vm871_vm3, %v959_v26  ;;  %v958_v34 = vmul.f32 %v9784_v29, %v10105_v52 }
 0x4c6   :  { %9283 = vmatprep.mubr.msk.f32.mxu1 %vm9858_vm0, %v9857_v1  ;;  %9291 = vmatprep.subr.mxu1 %v9857_v1 }
 0x4c7   :  { %2211 = vmatprep.mubr.bf16.mxu0 %v9859_v13 }
 0x4c8   :  { %9284 = vmatmul.mubr.msk.f32.vlgmr.msra.gmra.mrb[12].mxu1 %vm871_vm3, %v956_v28 }
 0x4c9   :  { %9292 = vmatpush3.msra.mxu1 %v258_v30  ;;  %9293 = vmatprep.mubr.msk.f32.mxu1 %vm9858_vm0, %v9857_v1 }
 0x4ca   :  { %9301 = vmatprep.subr.bf16.mxu1 %v9857_v1 }
 0x4cc   :  { %9294 = vmatmul.mubr.msk.f32.vlgmr.msra.gmra.mrb[14].mxu1 %vm871_vm3, %v958_v34 }
 0x4cd   :  { %9309 = vmatprep.mubr.msk.bf16.mxu1 %vm9858_vm0, %v9857_v1  ;;  %9302 = vmatpush3.bf16.msra.mxu1 %v9473_v36 }
 0x4ce   :  { %9303 = vmatprep.subr.bf16.mxu1 %v9857_v1 }
 0x4d1   :  { %9304 = vmatpush3.bf16.msra.mxu1 %v9474_v37  ;;  %v1716_v37 = vld [vmem:[%s11813_s9 + $0x48] sm:$0xff] }
 0x4d2   :  { %9305 = vmatprep.subr.bf16.mxu1 %v9857_v1 }
 0x4d5   :  { %9306 = vmatpush3.bf16.msra.mxu1 %v9475_v40 }
 0x4d6   :  { %9307 = vmatprep.subr.bf16.mxu1 %v9857_v1 }
 0x4d9   :  { %9308 = vmatpush3.bf16.msra.mxu1 %v9476_v47 }
 0x532   :  { %v1029_v31 = vpop.f32.mrb[8].mxu1 }
 0x533   :  { %v9265_v32 = vpop.f32.mrb[9].mxu1 }
 0x534   :  { %v1707_v32 = vld [vmem:[%s11813_s9] sm:$0xff] }
 0x587   :  { %v1102_v33 = vpop.f32.mrb[16].mxu0 }
 0x588   :  { %v9270_v35 = vpop.f32.mrb[17].mxu0 }
 0x589   :  { %v1708_v35 = vld [vmem:[%s11813_s9 + $0x8] sm:$0xff] }
 0x58a   :  { %v7987_v40 = vcombine.high %v1708_v35, %v1716_v37 }
 0x58c   :  { %2222 = vmatprep.subr.bf16.mxu1 %v7987_v40  ;;  %v1750_v40 = vld [vmem:[%s11813_s9 + $0x158] sm:$0xff] }
 0x590   :  { %v1248_v38 = vpop.f32.mrb[18].mxu0 }
 0x591   :  { %v9280_v39 = vpop.f32.mrb[19].mxu0 }
 0x592   :  { %v7986_v39 = vcombine.low %v1708_v35, %v1716_v37  ;;  %v1741_v37 = vld [vmem:[%s11813_s9 + $0x110] sm:$0xff] }
 0x594   :  { %v1394_v41 = vpop.f32.mrb[20].mxu0 }
 0x595   :  { %v9430_v42 = vpack.i.bf16 %v1394_v41, %v1102_v33  ;;  %v9290_v43 = vpop.f32.mrb[21].mxu0  ;;  %v1715_v33 = vld [vmem:[%s11813_s9 + $0x40] sm:$0xff] }
 0x596   :  { %v7985_v36 = vcombine.high %v1707_v32, %v1715_v33  ;;  %v1723_v41 = vld [vmem:[%s11813_s9 + $0x80] sm:$0xff]  ;;  %v1724_v43 = vld [vmem:[%s11813_s9 + $0x88] sm:$0xff] }
 0x597   :  { %9431 = vrot.lane.b32.xlu0 %v9430_v42, %s9864_s30  ;;  %v1175_v44 = vpop.f32.mrb[10].mxu1  ;;  %v1731_v42 = vld [vmem:[%s11813_s9 + $0xc0] sm:$0xff] }
 0x598   :  { %v1540_v45 = vpop.f32.mrb[22].mxu0  ;;  %v9275_v46 = vpop.f32.mrb[11].mxu1  ;;  %2179 = vmatprep.subr.bf16.mxu0 %v7985_v36 }
 0x599   :  { %v9440_v48 = vpack.i.bf16 %v1540_v45, %v1248_v38  ;;  %v9300_v49 = vpop.f32.mrb[23].mxu0  ;;  %v7984_v38 = vcombine.low %v1707_v32, %v1715_v33  ;;  %v1732_v45 = vld [vmem:[%s11813_s9 + $0xc8] sm:$0xff]  ;;  %v8000_v46 = vcombine.low %v1723_v41, %v1731_v42 }
 0x59a   :  { %v8002_v47 = vcombine.low %v1724_v43, %v1732_v45  ;;  %v1739_v49 = vld [vmem:[%s11813_s9 + $0x100] sm:$0xff] }
 0x59b   :  { %9441 = vrot.lane.b32.xlu0 %v9440_v48, %s9865_s1  ;;  %v1321_v50 = vpop.f32.mrb[12].mxu1  ;;  %2180 = vmatpush1.bf16.msra.mxu0 %v7984_v38  ;;  %v8003_v48 = vcombine.high %v1724_v43, %v1732_v45  ;;  %v1749_v38 = vld [vmem:[%s11813_s9 + $0x150] sm:$0xff] }
 0x59c   :  { %v9285_v51 = vpop.f32.mrb[13].mxu1  ;;  %v8021_v43 = vcombine.high %v1741_v37, %v1749_v38  ;;  %v1757_v45 = vld [vmem:[%s11813_s9 + $0x190] sm:$0xff] }
 0x59d   :  { %v1740_v51 = vld [vmem:[%s11813_s9 + $0x108] sm:$0xff] }
 0x59f   :  { %v1467_v52 = vpop.f32.mrb[14].mxu1 }
 0x5a0   :  { %v9435_v53 = vpack.i.bf16 %v1467_v52, %v1175_v44  ;;  %v9295_v54 = vpop.f32.mrb[15].mxu1  ;;  %v8001_v44 = vcombine.high %v1723_v41, %v1731_v42 }
 0x5a2   :  { %9436 = vrot.lane.b32.xlu1 %v9435_v53, %s11823_s2  ;;  %2181 = vmatprep.subr.bf16.mxu0 %v8001_v44  ;;  %v1748_v53 = vld [vmem:[%s11813_s9 + $0x148] sm:$0xff] }
 0x5a3   :  { %2182 = vmatpush1.bf16.msra.mxu0 %v8000_v46  ;;  %v1765_v46 = vld [vmem:[%s11813_s9 + $0x1d0] sm:$0xff] }
 0x609   :  { %v9432_v55 = vpop.permute.xlu0 %9431 }
 0x60a   :  { %v9434_v56 = vunpack.i.h.bf16 %v9432_v55  ;;  %v9433_v57 = vunpack.i.l.bf16 %v9432_v55  ;;  %v8018_v55 = vcombine.low %v1740_v51, %v1748_v53 }
 0x60c   :  { %v1573_v62 = vsel %vm76_vm1, %v1321_v50, %v9434_v56  ;;  %v1556_v63 = vsel %vm76_vm1, %v1029_v31, %v9433_v57  ;;  %v1747_v50 = vld [vmem:[%s11813_s9 + $0x140] sm:$0xff]  ;;  %v8019_v56 = vcombine.high %v1740_v51, %v1748_v53  ;;  %v8037_v51 = vcombine.high %v1757_v45, %v1765_v46 }
 0x60d   :  { %v9442_v58 = vpop.permute.xlu0 %9441  ;;  %v8017_v52 = vcombine.high %v1739_v49, %v1747_v50  ;;  %v8016_v54 = vcombine.low %v1739_v49, %v1747_v50  ;;  %v1755_v57 = vld [vmem:[%s11813_s9 + $0x180] sm:$0xff]  ;;  %v8020_v49 = vcombine.low %v1741_v37, %v1749_v38  ;;  %v1729_v37 = vld [vmem:[%s11813_s9 + $0xb0] sm:$0xff] }
 0x60e   :  { %v9444_v0 = vunpack.i.h.bf16 %v9442_v58  ;;  %v9443_v2 = vunpack.i.l.bf16 %v9442_v58  ;;  %v1763_v58 = vld [vmem:[%s11813_s9 + $0x1c0] sm:$0xff]  ;;  %v1737_v38 = vld [vmem:[%s11813_s9 + $0xf0] sm:$0xff] }
 0x60f   :  { %2183 = vmatprep.subr.bf16.mxu0 %v8017_v52  ;;  %v1711_v53 = vld [vmem:[%s11813_s9 + $0x20] sm:$0xff] }
 0x610   :  { %2184 = vmatpush1.bf16.msra.mxu0 %v8016_v54  ;;  %v1719_v54 = vld [vmem:[%s11813_s9 + $0x60] sm:$0xff] }
 0x614   :  { %v9437_v59 = vpop.permute.xlu1 %9436 }
 0x615   :  { %v9439_v60 = vunpack.i.h.bf16 %v9437_v59  ;;  %v9438_v61 = vunpack.i.l.bf16 %v9437_v59  ;;  %v1756_v59 = vld [vmem:[%s11813_s9 + $0x188] sm:$0xff] }
 0x617   :  { %v1558_v3 = vsel %vm1557_vm4, %v1556_v63, %v9438_v61  ;;  %v1574_v4 = vsel %vm1557_vm4, %v1573_v62, %v9439_v60  ;;  %v8033_v60 = vcombine.high %v1755_v57, %v1763_v58  ;;  %v1764_v61 = vld [vmem:[%s11813_s9 + $0x1c8] sm:$0xff]  ;;  %v8032_v62 = vcombine.low %v1755_v57, %v1763_v58 }
 0x618   :  { %v1560_v5 = vsel %vm1559_vm5, %v1558_v3, %v9443_v2  ;;  %v1575_v6 = vsel %vm1559_vm5, %v1574_v4, %v9444_v0  ;;  %v8034_v63 = vcombine.low %v1756_v59, %v1764_v61  ;;  %v8035_v0 = vcombine.high %v1756_v59, %v1764_v61  ;;  %v1709_v2 = vld [vmem:[%s11813_s9 + $0x10] sm:$0xff]  ;;  %v1710_v4 = vld [vmem:[%s11813_s9 + $0x18] sm:$0xff]  ;;  %v1727_v61 = vld [vmem:[%s11813_s9 + $0xa0] sm:$0xff] }
 0x619   :  { %v1584_v7 = vpack.c.bf16 %v1575_v6, %v1560_v5  ;;  %2185 = vmatprep.subr.bf16.mxu0 %v8033_v60  ;;  %v1717_v3 = vld [vmem:[%s11813_s9 + $0x50] sm:$0xff]  ;;  %v8036_v57 = vcombine.low %v1757_v45, %v1765_v46  ;;  %v7993_v59 = vcombine.high %v1711_v53, %v1719_v54 }
 0x61a   :  { %2186 = vmatpush1.bf16.msra.mxu0 %v8032_v62  ;;  %v7988_v5 = vcombine.low %v1709_v2, %v1717_v3  ;;  %v7989_v6 = vcombine.high %v1709_v2, %v1717_v3  ;;  %v1735_v62 = vld [vmem:[%s11813_s9 + $0xe0] sm:$0xff]  ;;  %v7992_v2 = vcombine.low %v1711_v53, %v1719_v54  ;;  %v1745_v45 = vld [vmem:[%s11813_s9 + $0x130] sm:$0xff] }
 0x61b   :  { %9310 = vmatmul.mubr.msk.bf16.vlgmr.msra.gmra.mrb[16].mxu1 %vm182_vm2, %v1584_v7  ;;  %v1718_v7 = vld [vmem:[%s11813_s9 + $0x58] sm:$0xff]  ;;  %v1753_v46 = vld [vmem:[%s11813_s9 + $0x170] sm:$0xff] }
 0x61c   :  { %2254 = vmatprep.mubr.bf16.mxu1 %v9859_v13  ;;  %2223 = vmatpush1.bf16.msra.mxu1 %v7986_v39  ;;  %v1742_v39 = vld [vmem:[%s11813_s9 + $0x118] sm:$0xff]  ;;  %v1761_v53 = vld [vmem:[%s11813_s9 + $0x1b0] sm:$0xff] }
 0x61d   :  { %2224 = vmatprep.subr.bf16.mxu1 %v8003_v48  ;;  %2265 = vmatprep.subr.bf16.mxu0 %v7989_v6  ;;  %v8023_v44 = vcombine.high %v1742_v39, %v1750_v40  ;;  %v1766_v48 = vld [vmem:[%s11813_s9 + $0x1d8] sm:$0xff]  ;;  %v8022_v50 = vcombine.low %v1742_v39, %v1750_v40  ;;  %v1743_v6 = vld [vmem:[%s11813_s9 + $0x120] sm:$0xff]  ;;  %v1769_v54 = vld [vmem:[%s11813_s9 + $0x1f0] sm:$0xff] }
 0x61e   :  { %v1730_v39 = vld [vmem:[%s11813_s9 + $0xb8] sm:$0xff] }
 0x61f   :  { %v1738_v40 = vld [vmem:[%s11813_s9 + $0xf8] sm:$0xff] }
 0x620   :  { %2225 = vmatpush1.bf16.msra.mxu1 %v8002_v47  ;;  %v1758_v47 = vld [vmem:[%s11813_s9 + $0x198] sm:$0xff] }
 0x621   :  { %2226 = vmatprep.subr.bf16.mxu1 %v8019_v56  ;;  %v8039_v52 = vcombine.high %v1758_v47, %v1766_v48  ;;  %v1720_v56 = vld [vmem:[%s11813_s9 + $0x68] sm:$0xff]  ;;  %v8038_v58 = vcombine.low %v1758_v47, %v1766_v48  ;;  %v1746_v47 = vld [vmem:[%s11813_s9 + $0x138] sm:$0xff] }
 0x622   :  { %v1754_v48 = vld [vmem:[%s11813_s9 + $0x178] sm:$0xff] }
 0x624   :  { %2227 = vmatpush1.bf16.msra.mxu1 %v8018_v55  ;;  %v1712_v55 = vld [vmem:[%s11813_s9 + $0x28] sm:$0xff] }
 0x625   :  { %2228 = vmatprep.subr.bf16.mxu1 %v8035_v0  ;;  %v7995_v60 = vcombine.high %v1712_v55, %v1720_v56  ;;  %v1736_v0 = vld [vmem:[%s11813_s9 + $0xe8] sm:$0xff]  ;;  %v7994_v3 = vcombine.low %v1712_v55, %v1720_v56  ;;  %v1762_v55 = vld [vmem:[%s11813_s9 + $0x1b8] sm:$0xff] }
 0x626   :  { %v1770_v56 = vld [vmem:[%s11813_s9 + $0x1f8] sm:$0xff] }
 0x628   :  { %2229 = vmatpush1.bf16.msra.mxu1 %v8034_v63  ;;  %v1728_v63 = vld [vmem:[%s11813_s9 + $0xa8] sm:$0xff] }
 0x6ee   :  { %v1653_v9 = vpop.f32.mrb[16].mxu1 }
 0x6ef   :  { %v1654_v10 = vadd.f32 %v7976_v8, %v1653_v9  ;;  %v9311_v11 = vpop.f32.mrb[17].mxu1  ;;  %v7991_v9 = vcombine.high %v1710_v4, %v1718_v7 }
 0x6f0   :  { %v1656_v12 = vpop.f32.mrb[18].mxu1 }
 0x6f1   :  { %v1657_v14 = vadd.f32 %v7976_v8, %v1656_v12  ;;  %v9312_v15 = vpop.f32.mrb[19].mxu1  ;;  %v1660_v16 = vadd.f32 %v1654_v10, %v10005_v18  ;;  %v7990_v8 = vcombine.low %v1710_v4, %v1718_v7  ;;  %2308 = vmatprep.subr.bf16.mxu1 %v7991_v9  ;;  %v8009_v4 = vcombine.high %v1727_v61, %v1735_v62  ;;  %v1751_v7 = vld [vmem:[%s11813_s9 + $0x160] sm:$0xff]  ;;  %v1752_v9 = vld [vmem:[%s11813_s9 + $0x168] sm:$0xff] }
 0x6f3   :  { %v1664_v17 = vsel %vm182_vm2, %v1660_v16, 0.0  ;;  %v1661_v20 = vadd.f32 %v1657_v14, %v10007_v19 }
 0x6f4   :  { %1665 = vadd.xlane.f32.xlu1 %v1664_v17 }
 0x6f5   :  { %v1667_v21 = vsel %vm182_vm2, %v1661_v20, 0.0 }
 0x6f6   :  { %1668 = vadd.xlane.f32.xlu0 %v1667_v21 }
 0x781   :  { %v1666_v22 = vpop.xlane.xlu1 %1665 }
 0x782   :  { %v1671_v25 = vmul.f32 0.015625, %v1666_v22 }
 0x783   :  { %v1669_v26 = vpop.xlane.xlu0 %1668 }
 0x784   :  { %v10180_v28 = vsub.f32 %v1660_v16, %v1671_v25  ;;  %v1672_v29 = vmul.f32 0.015625, %v1669_v26 }
 0x786   :  { %v10182_v30 = vsub.f32 %v1661_v20, %v1672_v29  ;;  %v1675_v34 = vmul.f32 %v10180_v28, %v10180_v28  ;;  %v7982_v20 = vld [vmem:[%s11811_s7] ss:$0 sm:$0xff] }
 0x787   :  { %v7983_v29 = vld [vmem:[%s11812_s8] ss:$0 sm:$0xff] }
 0x788   :  { %v1677_v18 = vsel %vm182_vm2, %v1675_v34, 0.0  ;;  %v1676_v19 = vmul.f32 %v10182_v30, %v10182_v30 }
 0x789   :  { %1678 = vadd.xlane.f32.xlu0 %v1677_v18  ;;  %v1725_v18 = vld [vmem:[%s11813_s9 + $0x90] sm:$0xff] }
 0x78a   :  { %v1680_v31 = vsel %vm182_vm2, %v1676_v19, 0.0  ;;  %v1733_v19 = vld [vmem:[%s11813_s9 + $0xd0] sm:$0xff] }
 0x78b   :  { %1681 = vadd.xlane.f32.xlu1 %v1680_v31  ;;  %v8005_v35 = vcombine.high %v1725_v18, %v1733_v19  ;;  %v8004_v41 = vcombine.low %v1725_v18, %v1733_v19  ;;  %v1714_v18 = vld [vmem:[%s11813_s9 + $0x38] sm:$0xff] }
 0x78c   :  { %v1722_v19 = vld [vmem:[%s11813_s9 + $0x78] sm:$0xff] }
 0x816   :  { %v1679_v10 = vpop.xlane.xlu0 %1678 }
 0x817   :  { %v1683_v11 = vmul.f32 0.015625, %v1679_v10  ;;  %v8008_v10 = vcombine.low %v1727_v61, %v1735_v62  ;;  %v8044_v61 = vcombine.low %v1761_v53, %v1769_v54  ;;  %v8046_v62 = vcombine.low %v1762_v55, %v1770_v56 }
 0x818   :  { %v1682_v12 = vpop.xlane.xlu1 %1681 }
 0x819   :  { %v1685_v14 = vadd.f32 1e-05, %v1683_v11  ;;  %v1684_v15 = vmul.f32 0.015625, %v1682_v12  ;;  %v8010_v11 = vcombine.low %v1728_v63, %v1736_v0  ;;  %v8025_v12 = vcombine.high %v1743_v6, %v1751_v7 }
 0x81b   :  { %9785 = vrsqrt.f32 %v1685_v14  ;;  %v1686_v16 = vadd.f32 1e-05, %v1684_v15  ;;  %v1759_v15 = vld [vmem:[%s11813_s9 + $0x1a0] sm:$0xff] }
 0x81d   :  { %9787 = vrsqrt.f32 %v1686_v16  ;;  %v1767_v16 = vld [vmem:[%s11813_s9 + $0x1e0] sm:$0xff] }
 0x825   :  { %v9786_v17 = vpop.eup %9785 }
 0x826   :  { %v1689_v21 = vmul.f32 %v9786_v17, %v10180_v28  ;;  %v1726_v28 = vld [vmem:[%s11813_s9 + $0x98] sm:$0xff]  ;;  %v1760_v17 = vld [vmem:[%s11813_s9 + $0x1a8] sm:$0xff] }
 0x827   :  { %v9788_v22 = vpop.eup %9787 }
 0x828   :  { %v1697_v25 = vmul.f32 %v7982_v20, %v1689_v21  ;;  %v1690_v26 = vmul.f32 %v9788_v22, %v10182_v30  ;;  %v1734_v30 = vld [vmem:[%s11813_s9 + $0xd8] sm:$0xff]  ;;  %v8024_v21 = vcombine.low %v1743_v6, %v1751_v7  ;;  %v9483_v6 = vld [vmem:[%s11815_s11 + $0x8] sm:$0xff]  }
 0x829   :  { %v8007_v36 = vcombine.high %v1726_v28, %v1734_v30  ;;  %v8006_v42 = vcombine.low %v1726_v28, %v1734_v30  ;;  %v8040_v28 = vcombine.low %v1759_v15, %v1767_v16  ;;  %v9484_v7 = vld [vmem:[%s11815_s11 + $0x88] sm:$0xff]  }
 0x82a   :  { %v1698_v34 = vmul.f32 %v7982_v20, %v1690_v26  ;;  %v10270_v31 = vadd.f32 %v7983_v29, %v1697_v25  ;;  %v1768_v20 = vld [vmem:[%s11813_s9 + $0x1e8] sm:$0xff]  ;;  %v8041_v25 = vcombine.high %v1759_v15, %v1767_v16  ;;  %v9492_v15 = vld [vmem:[%s11815_s11 + $0x98] sm:$0xff]   ;;  %v9493_v16 = vld [vmem:[%s11815_s11 + $0x60] sm:$0xff]  }
 0x82b   :  { %v8043_v26 = vcombine.high %v1760_v17, %v1768_v20  ;;  %v8042_v30 = vcombine.low %v1760_v17, %v1768_v20  ;;  %v9494_v17 = vld [vmem:[%s11815_s11 + $0xe0] sm:$0xff]  }
 0x82c   :  { %v10272_v32 = vadd.f32 %v7983_v29, %v1698_v34  ;;  %v1713_v29 = vld [vmem:[%s11813_s9 + $0x30] sm:$0xff]  ;;  %v9495_v20 = vld [vmem:[%s11815_s11 + $0x20] sm:$0xff]  }
 0x82d   :  { %v1721_v34 = vld [vmem:[%s11813_s9 + $0x70] sm:$0xff] }
 0x82e   :  { %v10276_v33 = vpack.c.bf16 %v10272_v32, %v10270_v31 }
 0x830   :  { %8048 = vmatmul.mubr.msk.bf16.vlgmr.msra.gmra.mrb[24].mxu0 %vm182_vm2, %v10276_v33  ;;  %8049 = vmatmul.mubr.msk.bf16.vlgmr.msra.gmra.mrb[20].mxu1 %vm182_vm2, %v10276_v33 }
 0x831   :  { %2266 = vmatpush1.bf16.msra.mxu0 %v7988_v5  ;;  %2309 = vmatpush1.bf16.msra.mxu1 %v7990_v8  ;;  %v8011_v5 = vcombine.high %v1728_v63, %v1736_v0  ;;  %v1744_v8 = vld [vmem:[%s11813_s9 + $0x128] sm:$0xff]  ;;  %v9477_v63 = vld [vmem:[%s11815_s11 + $0x40] sm:$0xff]  }
 0x832   :  { %2267 = vmatprep.subr.bf16.mxu0 %v8005_v35  ;;  %2310 = vmatprep.subr.bf16.mxu1 %v8007_v36  ;;  %v8027_v14 = vcombine.high %v1744_v8, %v1752_v9  ;;  %v8026_v22 = vcombine.low %v1744_v8, %v1752_v9  ;;  %v7997_v35 = vcombine.high %v1713_v29, %v1721_v34  ;;  %v9478_v0 = vld [vmem:[%s11815_s11 + $0xc0] sm:$0xff]   ;;  %v9485_v8 = vld [vmem:[%s11815_s11 + $0x50] sm:$0xff]  }
 0x833   :  { %2297 = vmatprep.mubr.bf16.mxu0 %v9859_v13  ;;  %2340 = vmatprep.mubr.bf16.mxu1 %v9859_v13  ;;  %v7999_v36 = vcombine.high %v1714_v18, %v1722_v19  ;;  %v9487_v9 = vld [vmem:[%s11815_s11 + $0x10] sm:$0xff]  }
 0x835   :  { %2268 = vmatpush1.bf16.msra.mxu0 %v8004_v41  ;;  %2311 = vmatpush1.bf16.msra.mxu1 %v8006_v42  ;;  %v7996_v41 = vcombine.low %v1713_v29, %v1721_v34  ;;  %v7998_v42 = vcombine.low %v1714_v18, %v1722_v19  ;;  %v9500_v29 = vld [vmem:[%s11815_s11 + $0xa8] sm:$0xff]   ;;  %v9501_v34 = vld [vmem:[%s11815_s11 + $0x70] sm:$0xff]  }
 0x836   :  { %2269 = vmatprep.subr.bf16.mxu0 %v8021_v43  ;;  %2312 = vmatprep.subr.bf16.mxu1 %v8023_v44  ;;  %v8013_v43 = vcombine.high %v1729_v37, %v1737_v38  ;;  %v8015_v44 = vcombine.high %v1730_v39, %v1738_v40  ;;  %v9502_v18 = vld [vmem:[%s11815_s11 + $0xf0] sm:$0xff]  }
 0x837   :  { %v9503_v19 = vld [vmem:[%s11815_s11 + $0x30] sm:$0xff]  }
 0x839   :  { %2270 = vmatpush1.bf16.msra.mxu0 %v8020_v49  ;;  %2313 = vmatpush1.bf16.msra.mxu1 %v8022_v50  ;;  %v8012_v49 = vcombine.low %v1729_v37, %v1737_v38  ;;  %v8014_v50 = vcombine.low %v1730_v39, %v1738_v40  ;;  %v9508_v37 = vld [vmem:[%s11815_s11 + $0xb8] sm:$0xff]   ;;  %v9509_v38 = vld [vmem:[%s11815_s11 + $0x140] sm:$0xff]   ;;  %v10523_v40 = vsub.s32 2, %v10014_v23 }
 0x83a   :  { %2271 = vmatprep.subr.bf16.mxu0 %v8037_v51  ;;  %2314 = vmatprep.subr.bf16.mxu1 %v8039_v52  ;;  %v8029_v51 = vcombine.high %v1745_v45, %v1753_v46  ;;  %v8031_v52 = vcombine.high %v1746_v47, %v1754_v48  ;;  %v9510_v39 = vld [vmem:[%s11815_s11 + $0x1c0] sm:$0xff]  }
 0x83d   :  { %2272 = vmatpush1.bf16.msra.mxu0 %v8036_v57  ;;  %2315 = vmatpush1.bf16.msra.mxu1 %v8038_v58  ;;  %v8028_v57 = vcombine.low %v1745_v45, %v1753_v46  ;;  %v8030_v58 = vcombine.low %v1746_v47, %v1754_v48 }
 0x83e   :  { %2351 = vmatprep.subr.bf16.mxu0 %v7993_v59  ;;  %2394 = vmatprep.subr.bf16.mxu1 %v7995_v60  ;;  %v8045_v59 = vcombine.high %v1761_v53, %v1769_v54  ;;  %v8047_v60 = vcombine.high %v1762_v55, %v1770_v56 }
 0x840   :  { %8050 = vmatmul.mubr.msk.bf16.vlgmr.msra.gmra.mrb[28].mxu0 %vm182_vm2, %v10276_v33  ;;  %8051 = vmatmul.mubr.msk.bf16.vlgmr.msra.gmra.mrb[24].mxu1 %vm182_vm2, %v10276_v33 }
 0x841   :  { %2352 = vmatpush1.bf16.msra.mxu0 %v7992_v2  ;;  %2395 = vmatpush1.bf16.msra.mxu1 %v7994_v3  ;;  %v9479_v2 = vld [vmem:[%s11815_s11] sm:$0xff]  }
 0x842   :  { %2353 = vmatprep.subr.bf16.mxu0 %v8009_v4  ;;  %2396 = vmatprep.subr.bf16.mxu1 %v8011_v5  ;;  %v9480_v3 = vld [vmem:[%s11815_s11 + $0x80] sm:$0xff]   ;;  %v9481_v4 = vld [vmem:[%s11815_s11 + $0x48] sm:$0xff]  }
 0x843   :  { %2383 = vmatprep.mubr.bf16.mxu0 %v9859_v13  ;;  %2426 = vmatprep.mubr.bf16.mxu1 %v9859_v13  ;;  %v9482_v5 = vld [vmem:[%s11815_s11 + $0xc8] sm:$0xff]  }
 0x845   :  { %2354 = vmatpush1.bf16.msra.mxu0 %v8008_v10  ;;  %2397 = vmatpush1.bf16.msra.mxu1 %v8010_v11  ;;  %v9488_v10 = vld [vmem:[%s11815_s11 + $0x90] sm:$0xff]   ;;  %v9489_v11 = vld [vmem:[%s11815_s11 + $0x58] sm:$0xff]  }
 0x846   :  { %2355 = vmatprep.subr.bf16.mxu0 %v8025_v12  ;;  %2398 = vmatprep.subr.bf16.mxu1 %v8027_v14  ;;  %v9490_v12 = vld [vmem:[%s11815_s11 + $0xd8] sm:$0xff]  }
 0x847   :  { %v9491_v14 = vld [vmem:[%s11815_s11 + $0x18] sm:$0xff]  }
 0x849   :  { %2356 = vmatpush1.bf16.msra.mxu0 %v8024_v21  ;;  %2399 = vmatpush1.bf16.msra.mxu1 %v8026_v22  ;;  %v9496_v21 = vld [vmem:[%s11815_s11 + $0xa0] sm:$0xff]   ;;  %v9497_v22 = vld [vmem:[%s11815_s11 + $0x68] sm:$0xff]  }
 0x84a   :  { %2357 = vmatprep.subr.bf16.mxu0 %v8041_v25  ;;  %2400 = vmatprep.subr.bf16.mxu1 %v8043_v26  ;;  %v9498_v25 = vld [vmem:[%s11815_s11 + $0xe8] sm:$0xff]  }
 0x84b   :  { %v9499_v26 = vld [vmem:[%s11815_s11 + $0x28] sm:$0xff]  }
 0x84d   :  { %2358 = vmatpush1.bf16.msra.mxu0 %v8040_v28  ;;  %2401 = vmatpush1.bf16.msra.mxu1 %v8042_v30  ;;  %v9504_v28 = vld [vmem:[%s11815_s11 + $0xb0] sm:$0xff]   ;;  %v9505_v30 = vld [vmem:[%s11815_s11 + $0x78] sm:$0xff]  }
 0x84e   :  { %2437 = vmatprep.subr.bf16.mxu0 %v7997_v35  ;;  %2480 = vmatprep.subr.bf16.mxu1 %v7999_v36  ;;  %v9506_v35 = vld [vmem:[%s11815_s11 + $0xf8] sm:$0xff]  }
 0x84f   :  { %v9507_v36 = vld [vmem:[%s11815_s11 + $0x38] sm:$0xff]  }
 0x850   :  { %8052 = vmatmul.mubr.msk.bf16.vlgmr.msra.gmra.mrb[32].mxu0 %vm182_vm2, %v10276_v33  ;;  %8053 = vmatmul.mubr.msk.bf16.vlgmr.msra.gmra.mrb[28].mxu1 %vm182_vm2, %v10276_v33 }
 0x851   :  { %2438 = vmatpush1.bf16.msra.mxu0 %v7996_v41  ;;  %2481 = vmatpush1.bf16.msra.mxu1 %v7998_v42  ;;  %v1772_v41 = vld [vmem:[%s11814_s10] sm:$0xff]  ;;  %v10529_v42 = vsub.s32 3, %v10014_v23 }
 0x852   :  { %2439 = vmatprep.subr.bf16.mxu0 %v8013_v43  ;;  %2482 = vmatprep.subr.bf16.mxu1 %v8015_v44  ;;  %v1779_v43 = vrot.slane %v1772_v41, %v10017_v24  ;;  %v1787_v44 = vrot.slane %v1772_v41, %v10523_v40  ;;  %v1783_v45 = vrot.slane %v1772_v41, %v10024_v27 }
 0x853   :  { %2469 = vmatprep.mubr.bf16.mxu0 %v9859_v13  ;;  %2512 = vmatprep.mubr.bf16.mxu1 %v9859_v13  ;;  %v1791_v46 = vrot.slane %v1772_v41, %v10529_v42 }
 0x855   :  { %2440 = vmatpush1.bf16.msra.mxu0 %v8012_v49  ;;  %2483 = vmatpush1.bf16.msra.mxu1 %v8014_v50 }
 0x856   :  { %2441 = vmatprep.subr.bf16.mxu0 %v8029_v51  ;;  %2484 = vmatprep.subr.bf16.mxu1 %v8031_v52 }
 0x859   :  { %2442 = vmatpush1.bf16.msra.mxu0 %v8028_v57  ;;  %2485 = vmatpush1.bf16.msra.mxu1 %v8030_v58 }
 0x85a   :  { %2443 = vmatprep.subr.bf16.mxu0 %v8045_v59  ;;  %2486 = vmatprep.subr.bf16.mxu1 %v8047_v60 }
 0x85d   :  { %2444 = vmatpush1.bf16.msra.mxu0 %v8044_v61  ;;  %2487 = vmatpush1.bf16.msra.mxu1 %v8046_v62 }
 0x85e   :  { %8821 = vmatprep.subr.bf16.mxu0 %v9477_v63  ;;  %8843 = vmatprep.subr.bf16.mxu1 %v9478_v0 }
 0x860   :  { %8054 = vmatmul.mubr.msk.bf16.vlgmr.msra.gmra.mrb[36].mxu0 %vm182_vm2, %v10276_v33  ;;  %8055 = vmatmul.mubr.msk.bf16.vlgmr.msra.gmra.mrb[32].mxu1 %vm182_vm2, %v10276_v33  ;;  %v9486_v33 = vld [vmem:[%s11815_s11 + $0xd0] sm:$0xff]  }
 0x861   :  { %8822 = vmatpush3.bf16.msra.mxu0 %v9479_v2  ;;  %8844 = vmatpush3.bf16.msra.mxu1 %v9480_v3 }
 0x862   :  { %8823 = vmatprep.subr.bf16.mxu0 %v9481_v4  ;;  %8845 = vmatprep.subr.bf16.mxu1 %v9482_v5 }
 0x865   :  { %8824 = vmatpush3.bf16.msra.mxu0 %v9483_v6  ;;  %8846 = vmatpush3.bf16.msra.mxu1 %v9484_v7 }
 0x866   :  { %8825 = vmatprep.subr.bf16.mxu0 %v9485_v8  ;;  %8847 = vmatprep.subr.bf16.mxu1 %v9486_v33 }
 0x869   :  { %8826 = vmatpush3.bf16.msra.mxu0 %v9487_v9  ;;  %8848 = vmatpush3.bf16.msra.mxu1 %v9488_v10 }
 0x86a   :  { %8827 = vmatprep.subr.bf16.mxu0 %v9489_v11  ;;  %8849 = vmatprep.subr.bf16.mxu1 %v9490_v12  ;;  %v9511_v11 = vld [vmem:[%s11815_s11 + $0x100] sm:$0xff]  }
 0x86b   :  { %v9512_v12 = vld [vmem:[%s11815_s11 + $0x180] sm:$0xff]  }
 0x86d   :  { %8828 = vmatpush3.bf16.msra.mxu0 %v9491_v14  ;;  %8850 = vmatpush3.bf16.msra.mxu1 %v9492_v15  ;;  %v9513_v14 = vld [vmem:[%s11815_s11 + $0x148] sm:$0xff]  }
 0x86e   :  { %8829 = vmatprep.subr.bf16.mxu0 %v9493_v16  ;;  %8851 = vmatprep.subr.bf16.mxu1 %v9494_v17  ;;  %v9514_v15 = vld [vmem:[%s11815_s11 + $0x1c8] sm:$0xff]   ;;  %v10548_v16 = vsub.s32 4, %v10014_v23  ;;  %v10551_v17 = vsub.s32 6, %v10014_v23 }
 0x871   :  { %8830 = vmatpush3.bf16.msra.mxu0 %v9495_v20  ;;  %8852 = vmatpush3.bf16.msra.mxu1 %v9496_v21  ;;  %v10554_v20 = vsub.s32 5, %v10014_v23  ;;  %v10557_v21 = vsub.s32 7, %v10014_v23  ;;  %v9517_v23 = vld [vmem:[%s11815_s11 + $0x150] sm:$0xff]  }
 0x872   :  { %8831 = vmatprep.subr.bf16.mxu0 %v9497_v22  ;;  %8853 = vmatprep.subr.bf16.mxu1 %v9498_v25  ;;  %v9515_v22 = vld [vmem:[%s11815_s11 + $0x108] sm:$0xff]  }
 0x873   :  { %v9516_v25 = vld [vmem:[%s11815_s11 + $0x188] sm:$0xff]  }
 0x875   :  { %8832 = vmatpush3.bf16.msra.mxu0 %v9499_v26  ;;  %8854 = vmatpush3.bf16.msra.mxu1 %v9500_v29  ;;  %v1795_v26 = vrot.slane %v1772_v41, %v10548_v16  ;;  %v1803_v29 = vrot.slane %v1772_v41, %v10551_v17 }
 0x876   :  { %8833 = vmatprep.subr.bf16.mxu0 %v9501_v34  ;;  %8855 = vmatprep.subr.bf16.mxu1 %v9502_v18  ;;  %v9518_v34 = vld [vmem:[%s11815_s11 + $0x1d0] sm:$0xff]   ;;  %v1799_v18 = vrot.slane %v1772_v41, %v10554_v20 }
 0x879   :  { %8834 = vmatpush3.bf16.msra.mxu0 %v9503_v19  ;;  %8856 = vmatpush3.bf16.msra.mxu1 %v9504_v28  ;;  %v1807_v19 = vrot.slane %v1772_v41, %v10557_v21  ;;  %v9521_v41 = vld [vmem:[%s11815_s11 + $0x158] sm:$0xff]  }
 0x87a   :  { %8835 = vmatprep.subr.bf16.mxu0 %v9505_v30  ;;  %8857 = vmatprep.subr.bf16.mxu1 %v9506_v35  ;;  %v9519_v35 = vld [vmem:[%s11815_s11 + $0x110] sm:$0xff]  }
 0x87d   :  { %8836 = vmatpush3.bf16.msra.mxu0 %v9507_v36  ;;  %8858 = vmatpush3.bf16.msra.mxu1 %v9508_v37  ;;  %v9520_v36 = vld [vmem:[%s11815_s11 + $0x190] sm:$0xff]  }
 0x87e   :  { %8865 = vmatprep.subr.bf16.mxu0 %v9509_v38  ;;  %8887 = vmatprep.subr.bf16.mxu1 %v9510_v39 }
 0x903   :  { %v2213_v47 = vpop.f32.mrb[24].mxu0  ;;  %v2256_v48 = vpop.f32.mrb[20].mxu1 }
 0x904   :  { %v2214_v49 = vadd.f32 %v2213_v47, %v1779_v43  ;;  %v2257_v50 = vadd.f32 %v2256_v48, %v1787_v44  ;;  %v2215_v51 = vpop.f32.mrb[25].mxu0  ;;  %v2258_v52 = vpop.f32.mrb[21].mxu1 }
 0x905   :  { %v2216_v53 = vadd.f32 %v2215_v51, %v1783_v45  ;;  %v2259_v54 = vadd.f32 %v2258_v52, %v1791_v46  ;;  %v2217_v55 = vpop.f32.mrb[26].mxu0  ;;  %v2260_v56 = vpop.f32.mrb[22].mxu1 }
 0x906   :  { %v2218_v57 = vadd.f32 %v2217_v55, %v1779_v43  ;;  %v2261_v58 = vadd.f32 %v2260_v56, %v1787_v44  ;;  %v2219_v59 = vpop.f32.mrb[27].mxu0  ;;  %v2262_v60 = vpop.f32.mrb[23].mxu1  ;;  %v2523_v63 = vmax.f32 %v2214_v49, 0.0  ;;  %v2525_v0 = vmax.f32 %v2257_v50, 0.0  ;;  %v9522_v44 = vld [vmem:[%s11815_s11 + $0x1d8] sm:$0xff]  }
 0x907   :  { %v2220_v61 = vadd.f32 %v2219_v59, %v1783_v45  ;;  %v2263_v62 = vadd.f32 %v2262_v60, %v1791_v46  ;;  %v2524_v4 = vmax.f32 %v2216_v53, 0.0  ;;  %v2526_v5 = vmax.f32 %v2259_v54, 0.0  ;;  %v9523_v55 = vld [vmem:[%s11815_s11 + $0x118] sm:$0xff]  }
 0x908   :  { %v2539_v2 = vmax.f32 %v2218_v57, 0.0  ;;  %v2541_v3 = vmax.f32 %v2261_v58, 0.0  ;;  %v9524_v56 = vld [vmem:[%s11815_s11 + $0x198] sm:$0xff]  }
 0x909   :  { %v2540_v6 = vmax.f32 %v2220_v61, 0.0  ;;  %v2542_v7 = vmax.f32 %v2263_v62, 0.0  ;;  %v9525_v61 = vld [vmem:[%s11815_s11 + $0x160] sm:$0xff]  }
 0x90a   :  { %v2811_v8 = vpack.c.bf16 %v2539_v2, %v2523_v63  ;;  %v2813_v33 = vpack.c.bf16 %v2541_v3, %v2525_v0  ;;  %v9526_v62 = vld [vmem:[%s11815_s11 + $0x1e0] sm:$0xff]  }
 0x90b   :  { %v2812_v9 = vpack.c.bf16 %v2540_v6, %v2524_v4  ;;  %v2814_v10 = vpack.c.bf16 %v2542_v7, %v2526_v5 }
 0x90d   :  { %3634 = vmatprep.mubr.bf16.mxu0 %v2812_v9  ;;  %3675 = vmatprep.mubr.bf16.mxu1 %v2814_v10  ;;  %v9529_v9 = vld [vmem:[%s11815_s11 + $0x168] sm:$0xff]  }
 0x90e   :  { %3635 = vmatmul.mubr.bf16.vlgmr.msra.gmra.mrb[40].mxu0 %v2811_v8  ;;  %3676 = vmatmul.mubr.bf16.vlgmr.msra.gmra.mrb[36].mxu1 %v2813_v33  ;;  %v9527_v8 = vld [vmem:[%s11815_s11 + $0x120] sm:$0xff]   ;;  %v9530_v10 = vld [vmem:[%s11815_s11 + $0x1e8] sm:$0xff]  }
 0x90f   :  { %8866 = vmatpush3.bf16.msra.mxu0 %v9511_v11  ;;  %8888 = vmatpush3.bf16.msra.mxu1 %v9512_v12  ;;  %v9528_v33 = vld [vmem:[%s11815_s11 + $0x1a0] sm:$0xff]   ;;  %v10618_v11 = vld [vmem:[%s11814_s10 + $0x8] sm:$0xff] }
 0x910   :  { %8867 = vmatprep.subr.bf16.mxu0 %v9513_v14  ;;  %8889 = vmatprep.subr.bf16.mxu1 %v9514_v15  ;;  %v9531_v12 = vld [vmem:[%s11815_s11 + $0x128] sm:$0xff]   ;;  %v1811_v15 = vrot.slane %v10618_v11, %v10017_v24 }
 0x911   :  { %v9532_v14 = vld [vmem:[%s11815_s11 + $0x1a8] sm:$0xff]  }
 0x913   :  { %v2299_v28 = vpop.f32.mrb[28].mxu0  ;;  %v2342_v30 = vpop.f32.mrb[24].mxu1  ;;  %8868 = vmatpush3.bf16.msra.mxu0 %v9515_v22  ;;  %8890 = vmatpush3.bf16.msra.mxu1 %v9516_v25  ;;  %v1819_v22 = vrot.slane %v10618_v11, %v10523_v40  ;;  %v9533_v25 = vld [vmem:[%s11815_s11 + $0x170] sm:$0xff]  }
 0x914   :  { %v2300_v37 = vadd.f32 %v2299_v28, %v1795_v26  ;;  %v2343_v38 = vadd.f32 %v2342_v30, %v1803_v29  ;;  %v2301_v39 = vpop.f32.mrb[29].mxu0  ;;  %v2344_v43 = vpop.f32.mrb[25].mxu1  ;;  %8869 = vmatprep.subr.bf16.mxu0 %v9517_v23  ;;  %8891 = vmatprep.subr.bf16.mxu1 %v9518_v34  ;;  %v1823_v23 = vrot.slane %v10618_v11, %v10529_v42  ;;  %v9536_v28 = vld [vmem:[%s11815_s11 + $0x1b0] sm:$0xff]  }
 0x915   :  { %v2302_v45 = vadd.f32 %v2301_v39, %v1799_v18  ;;  %v2345_v46 = vadd.f32 %v2344_v43, %v1807_v19  ;;  %v2303_v47 = vpop.f32.mrb[30].mxu0  ;;  %v2346_v48 = vpop.f32.mrb[26].mxu1  ;;  %v9538_v39 = vld [vmem:[%s11815_s11 + $0x1f8] sm:$0xff]  }
 0x916   :  { %v2304_v49 = vadd.f32 %v2303_v47, %v1795_v26  ;;  %v2347_v50 = vadd.f32 %v2346_v48, %v1803_v29  ;;  %v2305_v51 = vpop.f32.mrb[31].mxu0  ;;  %v2348_v52 = vpop.f32.mrb[27].mxu1  ;;  %v2527_v57 = vmax.f32 %v2300_v37, 0.0  ;;  %v2529_v58 = vmax.f32 %v2343_v38, 0.0  ;;  %v9534_v26 = vld [vmem:[%s11815_s11 + $0x1f0] sm:$0xff]   ;;  %v9537_v38 = vld [vmem:[%s11815_s11 + $0x178] sm:$0xff]  }
 0x917   :  { %v2306_v53 = vadd.f32 %v2305_v51, %v1799_v18  ;;  %v2349_v54 = vadd.f32 %v2348_v52, %v1807_v19  ;;  %8870 = vmatpush3.bf16.msra.mxu0 %v9519_v35  ;;  %8892 = vmatpush3.bf16.msra.mxu1 %v9520_v36  ;;  %v2528_v63 = vmax.f32 %v2302_v45, 0.0  ;;  %v2530_v0 = vmax.f32 %v2345_v46, 0.0  ;;  %v9535_v19 = vld [vmem:[%s11815_s11 + $0x130] sm:$0xff]   ;;  %v9539_v52 = vld [vmem:[%s11815_s11 + $0x138] sm:$0xff]  }
 0x918   :  { %v2543_v59 = vmax.f32 %v2304_v49, 0.0  ;;  %v2545_v60 = vmax.f32 %v2347_v50, 0.0  ;;  %8871 = vmatprep.subr.bf16.mxu0 %v9521_v41  ;;  %8893 = vmatprep.subr.bf16.mxu1 %v9522_v44  ;;  %v1815_v29 = vrot.slane %v10618_v11, %v10024_v27 }
 0x919   :  { %v2544_v2 = vmax.f32 %v2306_v53, 0.0  ;;  %v2546_v3 = vmax.f32 %v2349_v54, 0.0  ;;  %v9540_v53 = vld [vmem:[%s11815_s11 + $0x1b8] sm:$0xff]  }
 0x91a   :  { %v10599_v4 = vpack.c.bf16 %v2543_v59, %v2527_v57  ;;  %v10601_v5 = vpack.c.bf16 %v2545_v60, %v2529_v58  ;;  %v9541_v58 = vld [vmem:[%s11815_s11 + $0x240] sm:$0xff]  }
 0x91b   :  { %v2816_v6 = vpack.c.bf16 %v2544_v2, %v2528_v63  ;;  %v2818_v7 = vpack.c.bf16 %v2546_v3, %v2530_v0  ;;  %8872 = vmatpush3.bf16.msra.mxu0 %v9523_v55  ;;  %8894 = vmatpush3.bf16.msra.mxu1 %v9524_v56  ;;  %v9542_v59 = vld [vmem:[%s11815_s11 + $0x2c0] sm:$0xff]  }
 0x91c   :  { %8873 = vmatprep.subr.bf16.mxu0 %v9525_v61  ;;  %8895 = vmatprep.subr.bf16.mxu1 %v9526_v62 }
 0x91d   :  { %3716 = vmatprep.mubr.bf16.mxu0 %v2816_v6  ;;  %3757 = vmatprep.mubr.bf16.mxu1 %v2818_v7  ;;  %v9543_v7 = vld [vmem:[%s11815_s11 + $0x200] sm:$0xff]  }
 0x91f   :  { %8874 = vmatpush3.bf16.msra.mxu0 %v9527_v8  ;;  %8896 = vmatpush3.bf16.msra.mxu1 %v9528_v33  ;;  %v9544_v8 = vld [vmem:[%s11815_s11 + $0x280] sm:$0xff]   ;;  %v9545_v33 = vld [vmem:[%s11815_s11 + $0x248] sm:$0xff]  }
 0x920   :  { %8875 = vmatprep.subr.bf16.mxu0 %v9529_v9  ;;  %8897 = vmatprep.subr.bf16.mxu1 %v9530_v10  ;;  %v9546_v9 = vld [vmem:[%s11815_s11 + $0x2c8] sm:$0xff]  }
 0x921   :  { %v9547_v10 = vld [vmem:[%s11815_s11 + $0x208] sm:$0xff]  }
 0x923   :  { %v2385_v34 = vpop.f32.mrb[32].mxu0  ;;  %v2428_v18 = vpop.f32.mrb[28].mxu1  ;;  %8876 = vmatpush3.bf16.msra.mxu0 %v9531_v12  ;;  %8898 = vmatpush3.bf16.msra.mxu1 %v9532_v14  ;;  %v1827_v12 = vrot.slane %v10618_v11, %v10548_v16  ;;  %v1835_v14 = vrot.slane %v10618_v11, %v10551_v17 }
 0x924   :  { %v2386_v30 = vadd.f32 %v2385_v34, %v1811_v15  ;;  %v2429_v35 = vadd.f32 %v2428_v18, %v1819_v22  ;;  %v2387_v36 = vpop.f32.mrb[33].mxu0  ;;  %v2430_v37 = vpop.f32.mrb[29].mxu1  ;;  %8877 = vmatprep.subr.bf16.mxu0 %v9533_v25  ;;  %8899 = vmatprep.subr.bf16.mxu1 %v9534_v26  ;;  %v9550_v25 = vld [vmem:[%s11815_s11 + $0x2d0] sm:$0xff]  }
 0x925   :  { %v2388_v43 = vadd.f32 %v2387_v36, %v1815_v29  ;;  %v2431_v41 = vadd.f32 %v2430_v37, %v1823_v23  ;;  %v2389_v44 = vpop.f32.mrb[34].mxu0  ;;  %v2432_v45 = vpop.f32.mrb[30].mxu1 }
 0x926   :  { %v2390_v46 = vadd.f32 %v2389_v44, %v1811_v15  ;;  %v2433_v47 = vadd.f32 %v2432_v45, %v1819_v22  ;;  %v2391_v48 = vpop.f32.mrb[35].mxu0  ;;  %v2434_v49 = vpop.f32.mrb[31].mxu1  ;;  %v2531_v54 = vmax.f32 %v2386_v30, 0.0  ;;  %v2533_v55 = vmax.f32 %v2429_v35, 0.0  ;;  %v9553_v30 = vld [vmem:[%s11815_s11 + $0x258] sm:$0xff]  }
 0x927   :  { %v2392_v50 = vadd.f32 %v2391_v48, %v1815_v29  ;;  %v2435_v51 = vadd.f32 %v2434_v49, %v1823_v23  ;;  %8878 = vmatpush3.bf16.msra.mxu0 %v9535_v19  ;;  %8900 = vmatpush3.bf16.msra.mxu1 %v9536_v28  ;;  %v2532_v60 = vmax.f32 %v2388_v43, 0.0  ;;  %v2534_v61 = vmax.f32 %v2431_v41, 0.0  ;;  %v9551_v23 = vld [vmem:[%s11815_s11 + $0x210] sm:$0xff]   ;;  %v9555_v48 = vld [vmem:[%s11815_s11 + $0x218] sm:$0xff]  }
 0x928   :  { %v2547_v56 = vmax.f32 %v2390_v46, 0.0  ;;  %v2549_v57 = vmax.f32 %v2433_v47, 0.0  ;;  %8879 = vmatprep.subr.bf16.mxu0 %v9537_v38  ;;  %8901 = vmatprep.subr.bf16.mxu1 %v9538_v39  ;;  %v1831_v15 = vrot.slane %v10618_v11, %v10554_v20  ;;  %v1839_v22 = vrot.slane %v10618_v11, %v10557_v21  ;;  %v9552_v11 = vld [vmem:[%s11815_s11 + $0x290] sm:$0xff]   ;;  %v9554_v39 = vld [vmem:[%s11815_s11 + $0x2d8] sm:$0xff]  }
 0x929   :  { %v2548_v62 = vmax.f32 %v2392_v50, 0.0  ;;  %v2550_v63 = vmax.f32 %v2435_v51, 0.0 }
 0x92a   :  { %v10664_v0 = vpack.c.bf16 %v2547_v56, %v2531_v54  ;;  %v10666_v2 = vpack.c.bf16 %v2549_v57, %v2533_v55  ;;  %v9557_v54 = vld [vmem:[%s11815_s11 + $0x260] sm:$0xff]  }
 0x92b   :  { %v2820_v3 = vpack.c.bf16 %v2548_v62, %v2532_v60  ;;  %v2822_v6 = vpack.c.bf16 %v2550_v63, %v2534_v61  ;;  %8880 = vmatpush3.bf16.msra.mxu0 %v9539_v52  ;;  %8902 = vmatpush3.bf16.msra.mxu1 %v9540_v53  ;;  %v9556_v53 = vld [vmem:[%s11815_s11 + $0x298] sm:$0xff]  }
 0x92c   :  { %8909 = vmatprep.subr.bf16.mxu0 %v9541_v58  ;;  %8931 = vmatprep.subr.bf16.mxu1 %v9542_v59  ;;  %v9558_v59 = vld [vmem:[%s11815_s11 + $0x2e0] sm:$0xff]  }
 0x92e   :  { %3717 = vmatmul.mubr.bf16.vlgmr.msra.gmra.mrb[44].mxu0 %v10599_v4  ;;  %3758 = vmatmul.mubr.bf16.vlgmr.msra.gmra.mrb[40].mxu1 %v10601_v5  ;;  %v9548_v4 = vld [vmem:[%s11815_s11 + $0x288] sm:$0xff]   ;;  %v9549_v5 = vld [vmem:[%s11815_s11 + $0x250] sm:$0xff]  }
 0x92f   :  { %8910 = vmatpush3.bf16.msra.mxu0 %v9543_v7  ;;  %3798 = vmatprep.mubr.bf16.mxu0 %v2820_v3  ;;  %v9559_v3 = vld [vmem:[%s11815_s11 + $0x220] sm:$0xff]   ;;  %v9561_v7 = vld [vmem:[%s11815_s11 + $0x268] sm:$0xff]  }
 0x930   :  { %8932 = vmatpush3.bf16.msra.mxu1 %v9544_v8  ;;  %3839 = vmatprep.mubr.bf16.mxu1 %v2822_v6  ;;  %v9560_v6 = vld [vmem:[%s11815_s11 + $0x2a0] sm:$0xff]   ;;  %v9562_v8 = vld [vmem:[%s11815_s11 + $0x2e8] sm:$0xff]  }
 0x931   :  { %8911 = vmatprep.subr.bf16.mxu0 %v9545_v33  ;;  %8933 = vmatprep.subr.bf16.mxu1 %v9546_v9  ;;  %v9563_v33 = vld [vmem:[%s11815_s11 + $0x228] sm:$0xff]  }
 0x932   :  { %v9564_v9 = vld [vmem:[%s11815_s11 + $0x2a8] sm:$0xff]  }
 0x933   :  { %v2471_v26 = vpop.f32.mrb[36].mxu0  ;;  %v2514_v29 = vpop.f32.mrb[32].mxu1  ;;  %8912 = vmatpush3.bf16.msra.mxu0 %v9547_v10  ;;  %v9565_v10 = vld [vmem:[%s11815_s11 + $0x270] sm:$0xff]  }
 0x934   :  { %v2472_v34 = vadd.f32 %v2471_v26, %v1827_v12  ;;  %v2515_v18 = vadd.f32 %v2514_v29, %v1835_v14  ;;  %8934 = vmatpush3.bf16.msra.mxu1 %v9548_v4  ;;  %v2473_v19 = vpop.f32.mrb[37].mxu0  ;;  %v2516_v28 = vpop.f32.mrb[33].mxu1  ;;  %8913 = vmatprep.subr.bf16.mxu0 %v9549_v5  ;;  %v9568_v4 = vld [vmem:[%s11815_s11 + $0x2b0] sm:$0xff]   ;;  %v9569_v5 = vld [vmem:[%s11815_s11 + $0x278] sm:$0xff]   ;;  %v9573_v26 = vld [vmem:[%s11815_s11 + $0x340] sm:$0xff]  }
 0x935   :  { %v2474_v35 = vadd.f32 %v2473_v19, %v1831_v15  ;;  %v2517_v36 = vadd.f32 %v2516_v28, %v1839_v22  ;;  %v2475_v37 = vpop.f32.mrb[38].mxu0  ;;  %v2518_v38 = vpop.f32.mrb[34].mxu1  ;;  %8935 = vmatprep.subr.bf16.mxu1 %v9550_v25  ;;  %v9572_v25 = vld [vmem:[%s11815_s11 + $0x2b8] sm:$0xff]   ;;  %v9574_v29 = vld [vmem:[%s11815_s11 + $0x3c0] sm:$0xff]   ;;  %v9578_v19 = vld [vmem:[%s11815_s11 + $0x3c8] sm:$0xff]  }
 0x936   :  { %v2476_v43 = vadd.f32 %v2475_v37, %v1827_v12  ;;  %v2519_v41 = vadd.f32 %v2518_v38, %v1835_v14  ;;  %v2477_v44 = vpop.f32.mrb[39].mxu0  ;;  %v2520_v45 = vpop.f32.mrb[35].mxu1  ;;  %v2535_v49 = vmax.f32 %v2472_v34, 0.0  ;;  %v2537_v50 = vmax.f32 %v2515_v18, 0.0  ;;  %v9566_v12 = vld [vmem:[%s11815_s11 + $0x2f0] sm:$0xff]   ;;  %v9576_v34 = vld [vmem:[%s11815_s11 + $0x380] sm:$0xff]  }
 0x937   :  { %v2478_v46 = vadd.f32 %v2477_v44, %v1831_v15  ;;  %v2521_v47 = vadd.f32 %v2520_v45, %v1839_v22  ;;  %8914 = vmatpush3.bf16.msra.mxu0 %v9551_v23  ;;  %v2536_v55 = vmax.f32 %v2474_v35, 0.0  ;;  %v2538_v56 = vmax.f32 %v2517_v36, 0.0  ;;  %v9567_v14 = vld [vmem:[%s11815_s11 + $0x230] sm:$0xff]   ;;  %v9570_v15 = vld [vmem:[%s11815_s11 + $0x2f8] sm:$0xff]   ;;  %v9575_v23 = vld [vmem:[%s11815_s11 + $0x300] sm:$0xff]  }
 0x938   :  { %v2551_v51 = vmax.f32 %v2476_v43, 0.0  ;;  %v2553_v52 = vmax.f32 %v2519_v41, 0.0  ;;  %8936 = vmatpush3.bf16.msra.mxu1 %v9552_v11  ;;  %8915 = vmatprep.subr.bf16.mxu0 %v9553_v30  ;;  %v9571_v22 = vld [vmem:[%s11815_s11 + $0x238] sm:$0xff]   ;;  %v9577_v18 = vld [vmem:[%s11815_s11 + $0x348] sm:$0xff]   ;;  %v9583_v30 = vld [vmem:[%s11815_s11 + $0x310] sm:$0xff]  }
 0x939   :  { %v2552_v57 = vmax.f32 %v2478_v46, 0.0  ;;  %v2554_v58 = vmax.f32 %v2521_v47, 0.0  ;;  %8937 = vmatprep.subr.bf16.mxu1 %v9554_v39  ;;  %v9579_v28 = vld [vmem:[%s11815_s11 + $0x308] sm:$0xff]   ;;  %v9584_v35 = vld [vmem:[%s11815_s11 + $0x390] sm:$0xff]   ;;  %v9585_v36 = vld [vmem:[%s11815_s11 + $0x358] sm:$0xff]  }
 0x93a   :  { %v10726_v60 = vpack.c.bf16 %v2551_v51, %v2535_v49  ;;  %v10728_v61 = vpack.c.bf16 %v2553_v52, %v2537_v50  ;;  %v9580_v11 = vld [vmem:[%s11815_s11 + $0x388] sm:$0xff]   ;;  %v9586_v37 = vld [vmem:[%s11815_s11 + $0x3d8] sm:$0xff]   ;;  %v9589_v43 = vld [vmem:[%s11815_s11 + $0x360] sm:$0xff]  }
 0x93b   :  { %v2824_v62 = vpack.c.bf16 %v2552_v57, %v2536_v55  ;;  %v2826_v63 = vpack.c.bf16 %v2554_v58, %v2538_v56  ;;  %8916 = vmatpush3.bf16.msra.mxu0 %v9555_v48  ;;  %v9587_v38 = vld [vmem:[%s11815_s11 + $0x318] sm:$0xff]   ;;  %v9590_v41 = vld [vmem:[%s11815_s11 + $0x3e0] sm:$0xff]   ;;  %v9593_v46 = vld [vmem:[%s11815_s11 + $0x368] sm:$0xff]  }
 0x93c   :  { %8938 = vmatpush3.bf16.msra.mxu1 %v9556_v53  ;;  %8917 = vmatprep.subr.bf16.mxu0 %v9557_v54  ;;  %v9588_v39 = vld [vmem:[%s11815_s11 + $0x398] sm:$0xff]   ;;  %v9591_v44 = vld [vmem:[%s11815_s11 + $0x320] sm:$0xff]   ;;  %v9594_v47 = vld [vmem:[%s11815_s11 + $0x3e8] sm:$0xff]  }
 0x93d   :  { %8939 = vmatprep.subr.bf16.mxu1 %v9558_v59  ;;  %v9592_v45 = vld [vmem:[%s11815_s11 + $0x3a0] sm:$0xff]   ;;  %v9595_v48 = vld [vmem:[%s11815_s11 + $0x328] sm:$0xff]   ;;  %v9597_v50 = vld [vmem:[%s11815_s11 + $0x370] sm:$0xff]  }
 0x93e   :  { %v9596_v49 = vld [vmem:[%s11815_s11 + $0x3a8] sm:$0xff]   ;;  %v9598_v51 = vld [vmem:[%s11815_s11 + $0x3f0] sm:$0xff]   ;;  %v9601_v54 = vld [vmem:[%s11815_s11 + $0x378] sm:$0xff]  }
 0x93f   :  { %8918 = vmatpush3.bf16.msra.mxu0 %v9559_v3  ;;  %v9599_v52 = vld [vmem:[%s11815_s11 + $0x330] sm:$0xff]   ;;  %v9602_v55 = vld [vmem:[%s11815_s11 + $0x3f8] sm:$0xff]  }
 0x940   :  { %8940 = vmatpush3.bf16.msra.mxu1 %v9560_v6  ;;  %8919 = vmatprep.subr.bf16.mxu0 %v9561_v7  ;;  %v9600_v53 = vld [vmem:[%s11815_s11 + $0x3b0] sm:$0xff]   ;;  %v9603_v56 = vld [vmem:[%s11815_s11 + $0x338] sm:$0xff]  }
 0x941   :  { %8941 = vmatprep.subr.bf16.mxu1 %v9562_v8  ;;  %v9604_v57 = vld [vmem:[%s11815_s11 + $0x3b8] sm:$0xff]  }
 0x943   :  { %8920 = vmatpush3.bf16.msra.mxu0 %v9563_v33 }
 0x944   :  { %8942 = vmatpush3.bf16.msra.mxu1 %v9564_v9  ;;  %8921 = vmatprep.subr.bf16.mxu0 %v9565_v10 }
 0x945   :  { %8943 = vmatprep.subr.bf16.mxu1 %v9566_v12 }
 0x947   :  { %8922 = vmatpush3.bf16.msra.mxu0 %v9567_v14 }
 0x948   :  { %8944 = vmatpush3.bf16.msra.mxu1 %v9568_v4  ;;  %8923 = vmatprep.subr.bf16.mxu0 %v9569_v5 }
 0x949   :  { %8945 = vmatprep.subr.bf16.mxu1 %v9570_v15 }
 0x94b   :  { %8924 = vmatpush3.bf16.msra.mxu0 %v9571_v22 }
 0x94c   :  { %8946 = vmatpush3.bf16.msra.mxu1 %v9572_v25  ;;  %8953 = vmatprep.subr.bf16.mxu0 %v9573_v26 }
 0x94d   :  { %8975 = vmatprep.subr.bf16.mxu1 %v9574_v29 }
 0x94e   :  { %3799 = vmatmul.mubr.bf16.vlgmr.msra.gmra.mrb[48].mxu0 %v10664_v0  ;;  %v9581_v0 = vld [vmem:[%s11815_s11 + $0x350] sm:$0xff]  }
 0x94f   :  { %3840 = vmatmul.mubr.bf16.vlgmr.msra.gmra.mrb[44].mxu1 %v10666_v2  ;;  %8954 = vmatpush3.bf16.msra.mxu0 %v9575_v23  ;;  %v9582_v2 = vld [vmem:[%s11815_s11 + $0x3d0] sm:$0xff]  }
 0x950   :  { %3880 = vmatprep.mubr.bf16.mxu0 %v2824_v62  ;;  %8976 = vmatpush3.bf16.msra.mxu1 %v9576_v34  ;;  %v8056_v62 = vld [vmem:[%s11816_s12] ss:$0 sm:$0xff] }
 0x951   :  { %3921 = vmatprep.mubr.bf16.mxu1 %v2826_v63  ;;  %8955 = vmatprep.subr.bf16.mxu0 %v9577_v18 }
 0x952   :  { %8977 = vmatprep.subr.bf16.mxu1 %v9578_v19 }
 0x953   :  { %8956 = vmatpush3.bf16.msra.mxu0 %v9579_v28 }
 0x954   :  { %8978 = vmatpush3.bf16.msra.mxu1 %v9580_v11  ;;  %8957 = vmatprep.subr.bf16.mxu0 %v9581_v0 }
 0x955   :  { %8979 = vmatprep.subr.bf16.mxu1 %v9582_v2 }
 0x957   :  { %8958 = vmatpush3.bf16.msra.mxu0 %v9583_v30 }
 0x958   :  { %8980 = vmatpush3.bf16.msra.mxu1 %v9584_v35  ;;  %8959 = vmatprep.subr.bf16.mxu0 %v9585_v36 }
 0x959   :  { %8981 = vmatprep.subr.bf16.mxu1 %v9586_v37 }
 0x95b   :  { %8960 = vmatpush3.bf16.msra.mxu0 %v9587_v38 }
 0x95c   :  { %8982 = vmatpush3.bf16.msra.mxu1 %v9588_v39  ;;  %8961 = vmatprep.subr.bf16.mxu0 %v9589_v43 }
 0x95d   :  { %8983 = vmatprep.subr.bf16.mxu1 %v9590_v41 }
 0x95f   :  { %8962 = vmatpush3.bf16.msra.mxu0 %v9591_v44 }
 0x960   :  { %8984 = vmatpush3.bf16.msra.mxu1 %v9592_v45  ;;  %8963 = vmatprep.subr.bf16.mxu0 %v9593_v46 }
 0x961   :  { %8985 = vmatprep.subr.bf16.mxu1 %v9594_v47 }
 0x963   :  { %8964 = vmatpush3.bf16.msra.mxu0 %v9595_v48 }
 0x964   :  { %8986 = vmatpush3.bf16.msra.mxu1 %v9596_v49  ;;  %8965 = vmatprep.subr.bf16.mxu0 %v9597_v50 }
 0x965   :  { %8987 = vmatprep.subr.bf16.mxu1 %v9598_v51 }
 0x967   :  { %8966 = vmatpush3.bf16.msra.mxu0 %v9599_v52 }
 0x968   :  { %8988 = vmatpush3.bf16.msra.mxu1 %v9600_v53  ;;  %8967 = vmatprep.subr.bf16.mxu0 %v9601_v54 }
 0x969   :  { %8989 = vmatprep.subr.bf16.mxu1 %v9602_v55 }
 0x96b   :  { %8968 = vmatpush3.bf16.msra.mxu0 %v9603_v56 }
 0x96c   :  { %8990 = vmatpush3.bf16.msra.mxu1 %v9604_v57 }
 0x96d   :  { %9313 = vmatprep.subr.mxu1 %v9857_v1 }
 0x96e   :  { %3881 = vmatmul.mubr.bf16.vlgmr.msra.gmra.mrb[52].mxu0 %v10726_v60 }
 0x96f   :  { %3922 = vmatmul.mubr.bf16.vlgmr.msra.gmra.mrb[48].mxu1 %v10728_v61  ;;  %4074 = vmatprep.mubr.bf16.mxu0 %v9859_v13 }
 0x970   :  { %9315 = vmatprep.mubr.msk.f32.mxu1 %vm9858_vm0, %v9857_v1 }
 0x9e1   :  { %v8837_v58 = vpop.f32.mrb[40].mxu0  ;;  %v8859_v59 = vpop.f32.mrb[36].mxu1 }
 0x9e2   :  { %v8838_v63 = vpop.f32.mrb[41].mxu0  ;;  %v8860_v3 = vpop.f32.mrb[37].mxu1 }
 0x9e3   :  { %v8839_v6 = vadd.f32 %v8838_v63, %v8837_v58  ;;  %v8861_v7 = vadd.f32 %v8860_v3, %v8859_v59  ;;  %v8840_v8 = vpop.f32.mrb[42].mxu0  ;;  %v8862_v33 = vpop.f32.mrb[38].mxu1 }
 0x9e4   :  { %v8841_v60 = vpop.f32.mrb[43].mxu0  ;;  %v8863_v9 = vpop.f32.mrb[39].mxu1 }
 0x9e5   :  { %v3637_v61 = vadd.f32 %v8839_v6, %v8056_v62  ;;  %v8842_v10 = vadd.f32 %v8841_v60, %v8840_v8  ;;  %v8864_v12 = vadd.f32 %v8863_v9, %v8862_v33 }
 0x9e7   :  { %v3678_v14 = vadd.f32 %v8861_v7, %v3637_v61  ;;  %v3640_v4 = vadd.f32 %v8842_v10, %v8056_v62 }
 0x9e9   :  { %v3681_v5 = vadd.f32 %v8864_v12, %v3640_v4 }
 0xa01   :  { %v8881_v15 = vpop.f32.mrb[44].mxu0  ;;  %v8903_v22 = vpop.f32.mrb[40].mxu1 }
 0xa02   :  { %v8882_v25 = vpop.f32.mrb[45].mxu0  ;;  %v8904_v26 = vpop.f32.mrb[41].mxu1 }
 0xa03   :  { %v8883_v29 = vadd.f32 %v8882_v25, %v8881_v15  ;;  %v8905_v23 = vadd.f32 %v8904_v26, %v8903_v22  ;;  %v8884_v34 = vpop.f32.mrb[46].mxu0  ;;  %v8906_v18 = vpop.f32.mrb[42].mxu1 }
 0xa04   :  { %v8885_v19 = vpop.f32.mrb[47].mxu0  ;;  %v8907_v28 = vpop.f32.mrb[43].mxu1 }
 0xa05   :  { %v3719_v11 = vadd.f32 %v8883_v29, %v3678_v14  ;;  %v8886_v0 = vadd.f32 %v8885_v19, %v8884_v34  ;;  %v8908_v2 = vadd.f32 %v8907_v28, %v8906_v18  ;;  %v9605_v28 = vld [vmem:[%s11807_s3 + $0x40] ss:$8 sps:$4 sm:$0xff]  }
 0xa07   :  { %v3760_v30 = vadd.f32 %v8905_v23, %v3719_v11  ;;  %v3722_v35 = vadd.f32 %v8886_v0, %v3681_v5  ;;  %v9610_v11 = vld [vmem:[%s11807_s3 + $0x54] ss:$8 sps:$4 sm:$0xff]   ;;  %v9608_v0 = vld [vmem:[%s11807_s3 + $0x50] ss:$8 sps:$4 sm:$0xff]  }
 0xa09   :  { %v3763_v36 = vadd.f32 %v8908_v2, %v3722_v35  ;;  %v9613_v2 = vld [vmem:[%s11807_s3 + $0x64] ss:$8 sps:$4 sm:$0xff]   ;;  %v9616_v35 = vld [vmem:[%s11807_s3 + $0x74] ss:$8 sps:$4 sm:$0xff]  }
 0xa21   :  { %v8925_v37 = vpop.f32.mrb[48].mxu0 }
 0xa22   :  { %v8947_v38 = vpop.f32.mrb[44].mxu1  ;;  %v8926_v39 = vpop.f32.mrb[49].mxu0 }
 0xa23   :  { %v8927_v43 = vadd.f32 %v8926_v39, %v8925_v37  ;;  %v8948_v41 = vpop.f32.mrb[45].mxu1  ;;  %v8928_v44 = vpop.f32.mrb[50].mxu0 }
 0xa24   :  { %v8949_v45 = vadd.f32 %v8948_v41, %v8947_v38  ;;  %v8950_v46 = vpop.f32.mrb[46].mxu1  ;;  %v8929_v47 = vpop.f32.mrb[51].mxu0 }
 0xa25   :  { %v3801_v48 = vadd.f32 %v8927_v43, %v3760_v30  ;;  %v8930_v49 = vadd.f32 %v8929_v47, %v8928_v44  ;;  %v8951_v50 = vpop.f32.mrb[47].mxu1  ;;  %v9611_v30 = vld [vmem:[%s11807_s3 + $0x60] ss:$8 sps:$4 sm:$0xff]  }
 0xa26   :  { %v8952_v51 = vadd.f32 %v8951_v50, %v8950_v46  ;;  %v8185_v46 = vld [vmem:[%s11817_s13] ss:$0 sm:$0xff] }
 0xa27   :  { %v3842_v52 = vadd.f32 %v8949_v45, %v3801_v48  ;;  %v3804_v53 = vadd.f32 %v8930_v49, %v3763_v36  ;;  %v9614_v36 = vld [vmem:[%s11807_s3 + $0x70] ss:$8 sps:$4 sm:$0xff]  }
 0xa29   :  { %v3845_v54 = vadd.f32 %v8952_v51, %v3804_v53  ;;  %v8186_v51 = vld [vmem:[%s11818_s14] ss:$0 sm:$0xff] }
 0xa41   :  { %v8969_v55 = vpop.f32.mrb[52].mxu0 }
 0xa42   :  { %v8991_v56 = vpop.f32.mrb[48].mxu1  ;;  %v8970_v57 = vpop.f32.mrb[53].mxu0 }
 0xa43   :  { %v8971_v58 = vadd.f32 %v8970_v57, %v8969_v55  ;;  %v8992_v59 = vpop.f32.mrb[49].mxu1  ;;  %v8972_v62 = vpop.f32.mrb[54].mxu0 }
 0xa44   :  { %v8993_v63 = vadd.f32 %v8992_v59, %v8991_v56  ;;  %v8994_v3 = vpop.f32.mrb[50].mxu1  ;;  %v8973_v6 = vpop.f32.mrb[55].mxu0  ;;  %v8195_v56 = vld [vmem:[%s11808_s4 + $0x2] sm:$0x3] }
 0xa45   :  { %v3883_v7 = vadd.f32 %v8971_v58, %v3842_v52  ;;  %v8974_v8 = vadd.f32 %v8973_v6, %v8972_v62  ;;  %v8995_v33 = vpop.f32.mrb[51].mxu1  ;;  %v3992_v57 = vrot.slane %v8195_v56, %v10017_v24 }
 0xa46   :  { %v8996_v60 = vadd.f32 %v8995_v33, %v8994_v3 }
 0xa47   :  { %v3924_v9 = vadd.f32 %v8993_v63, %v3883_v7  ;;  %v3886_v61 = vadd.f32 %v8974_v8, %v3845_v54  ;;  %v3996_v63 = vrot.slane %v8195_v56, %v10024_v27 }
 0xa49   :  { %v3927_v10 = vadd.f32 %v8996_v60, %v3886_v61  ;;  %v3930_v12 = vadd.f32 %v3924_v9, %v10270_v31 }
 0xa4b   :  { %v3934_v14 = vsel %vm182_vm2, %v3930_v12, 0.0  ;;  %v3931_v4 = vadd.f32 %v3927_v10, %v10272_v32  ;;  %v9607_v32 = vld [vmem:[%s11807_s3 + $0x44] ss:$8 sps:$4 sm:$0xff]  }
 0xa4c   :  { %3935 = vadd.xlane.f32.xlu0 %v3934_v14  ;;  %4042 = vmatprep.subr.bf16.mxu0 %v9607_v32 }
 0xa4d   :  { %v3937_v5 = vsel %vm182_vm2, %v3931_v4, 0.0  ;;  %4043 = vmatpush1.bf16.msra.mxu0 %v9605_v28 }
 0xa4e   :  { %3938 = vadd.xlane.f32.xlu1 %v3937_v5  ;;  %4044 = vmatprep.subr.bf16.mxu0 %v9610_v11 }
 0xa51   :  { %4045 = vmatpush1.bf16.msra.mxu0 %v9608_v0 }
 0xa52   :  { %4046 = vmatprep.subr.bf16.mxu0 %v9613_v2 }
 0xa55   :  { %4047 = vmatpush1.bf16.msra.mxu0 %v9611_v30 }
 0xa56   :  { %4048 = vmatprep.subr.bf16.mxu0 %v9616_v35 }
 0xa59   :  { %4049 = vmatpush1.bf16.msra.mxu0 %v9614_v36 }
 0xa5a   :  { %9318 = vmatprep.subr.mxu0 %v9857_v1 }
 0xad9   :  { %v3936_v15 = vpop.xlane.xlu0 %3935 }
 0xada   :  { %v3940_v22 = vmul.f32 0.015625, %v3936_v15 }
 0xadb   :  { %v3939_v25 = vpop.xlane.xlu1 %3938 }
 0xadc   :  { %v3942_v26 = vsub.f32 %v3930_v12, %v3940_v22  ;;  %v3941_v29 = vmul.f32 0.015625, %v3939_v25 }
 0xade   :  { %v3943_v23 = vsub.f32 %v3931_v4, %v3941_v29  ;;  %v3944_v34 = vmul.f32 %v3942_v26, %v3942_v26 }
 0xae0   :  { %v3946_v18 = vsel %vm182_vm2, %v3944_v34, 0.0  ;;  %v3945_v19 = vmul.f32 %v3943_v23, %v3943_v23 }
 0xae1   :  { %3947 = vadd.xlane.f32.xlu0 %v3946_v18 }
 0xae2   :  { %v3949_v31 = vsel %vm182_vm2, %v3945_v19, 0.0 }
 0xae3   :  { %3950 = vadd.xlane.f32.xlu1 %v3949_v31 }
 0xb6e   :  { %v3948_v37 = vpop.xlane.xlu0 %3947 }
 0xb6f   :  { %v3952_v38 = vmul.f32 0.015625, %v3948_v37 }
 0xb70   :  { %v3951_v39 = vpop.xlane.xlu1 %3950 }
 0xb71   :  { %v3954_v43 = vadd.f32 1e-05, %v3952_v38  ;;  %v3953_v41 = vmul.f32 0.015625, %v3951_v39 }
 0xb73   :  { %9789 = vrsqrt.f32 %v3954_v43  ;;  %v3955_v44 = vadd.f32 1e-05, %v3953_v41 }
 0xb75   :  { %9791 = vrsqrt.f32 %v3955_v44 }
 0xb7d   :  { %v9790_v45 = vpop.eup %9789 }
 0xb7e   :  { %v3958_v47 = vmul.f32 %v9790_v45, %v3942_v26 }
 0xb7f   :  { %v9792_v48 = vpop.eup %9791 }
 0xb80   :  { %v3966_v49 = vmul.f32 %v8185_v46, %v3958_v47  ;;  %v3959_v50 = vmul.f32 %v9792_v48, %v3943_v23 }
 0xb82   :  { %v3967_v52 = vmul.f32 %v8185_v46, %v3959_v50  ;;  %v10916_v53 = vadd.f32 %v8186_v51, %v3966_v49 }
 0xb84   :  { %v10918_v54 = vadd.f32 %v8186_v51, %v3967_v52 }
 0xb86   :  { %v3985_v55 = vpack.c.bf16 %v10918_v54, %v10916_v53 }
 0xb88   :  { %8204 = vmatmul.mubr.msk.bf16.vlgmr.msra.gmra.mrb[56].mxu0 %vm182_vm2, %v3985_v55 }
 0xb89   :  { %9320 = vmatprep.mubr.msk.f32.mxu0 %vm9858_vm0, %v9857_v1 }
 0xc5b   :  { %v4076_v58 = vpop.f32.mrb[56].mxu0 }
 0xc5c   :  { %v4077_v59 = vadd.f32 %v4076_v58, %v3992_v57  ;;  %v4078_v62 = vpop.f32.mrb[57].mxu0 }
 0xc5d   :  { %v4080_v3 = vpop.f32.mrb[58].mxu0  ;;  %v4079_v29 = vadd.f32 %v4078_v62, %v3996_v63 }
 0xc5e   :  { %v4082_v6 = vpop.f32.mrb[59].mxu0  ;;  %4088 = vrot.lane.b32.xlu1 %v4077_v59, %s9862_s23  ;;  %4086 = vrot.lane.b32.xlu0 %v4077_v59, %s9861_s22  ;;  %v4081_v8 = vadd.f32 %v4080_v3, %v3992_v57 }
 0xc5f   :  { %v10932_v7 = vadd.f32 %v4082_v6, %v3996_v63 }
 0xc62   :  { %4090 = vrot.lane.b32.xlu1 %v4077_v59, %s9860_s21  ;;  %4093 = vrot.lane.b32.xlu0 %v4081_v8, %s9861_s22 }
 0xc66   :  { %4095 = vrot.lane.b32.xlu1 %v4081_v8, %s9862_s23  ;;  %4097 = vrot.lane.b32.xlu0 %v4081_v8, %s9860_s21 }
 0xc6a   :  { %4119 = vrot.lane.b32.xlu1 %v4077_v59, %s9863_s24 }
 0xcd0   :  { %v4089_v33 = vpop.permute.xlu1 %4088  ;;  %v4087_v60 = vpop.permute.xlu0 %4086 }
 0xcd1   :  { %4271 = vrot.lane.b32.xlu1 %v4089_v33, %s9863_s24  ;;  %4195 = vrot.lane.b32.xlu0 %v4087_v60, %s9863_s24 }
 0xcd4   :  { %v4091_v9 = vpop.permute.xlu1 %4090  ;;  %v4094_v61 = vpop.permute.xlu0 %4093 }
 0xcd5   :  { %4423 = vrot.lane.b32.xlu1 %v4081_v8, %s9863_s24  ;;  %4347 = vrot.lane.b32.xlu0 %v4091_v9, %s9863_s24 }
 0xcd8   :  { %v4096_v10 = vpop.permute.xlu1 %4095  ;;  %v4098_v12 = vpop.permute.xlu0 %4097 }
 0xcd9   :  { %4575 = vrot.lane.b32.xlu1 %v4096_v10, %s9863_s24  ;;  %4499 = vrot.lane.b32.xlu0 %v4094_v61, %s9863_s24 }
 0xcdc   :  { %v4120_v14 = vpop.permute.xlu1 %4119 }
 0xcdd   :  { %9314 = vmatpush3.xpose.msk.msra.mxu1 %vm76_vm1, %v4120_v14  ;;  %4651 = vrot.lane.b32.xlu0 %v4098_v12, %s9863_s24 }
 0xcde   :  { %9323 = vmatprep.subr.mxu1 %v9857_v1 }
 0xce0   :  { %9316 = vmatmul.mubr.msk.f32.vlgmr.msra.gmra.mrb[52].mxu1 %vm76_vm1, %v4077_v59 }
 0xce1   :  { %9325 = vmatprep.mubr.msk.f32.mxu1 %vm9858_vm0, %v9857_v1 }
 0xd43   :  { %v4272_v4 = vpop.permute.xlu1 %4271  ;;  %v4196_v5 = vpop.permute.xlu0 %4195 }
 0xd44   :  { %9319 = vmatpush3.xpose.msk.msra.mxu0 %vm76_vm1, %v4196_v5  ;;  %9324 = vmatpush3.xpose.msk.msra.mxu1 %vm76_vm1, %v4272_v4 }
 0xd45   :  { %9333 = vmatprep.subr.mxu1 %v9857_v1  ;;  %9328 = vmatprep.subr.mxu0 %v9857_v1 }
 0xd47   :  { %9326 = vmatmul.mubr.msk.f32.vlgmr.msra.gmra.mrb[54].mxu1 %vm76_vm1, %v4089_v33  ;;  %v4424_v15 = vpop.permute.xlu1 %4423  ;;  %9321 = vmatmul.mubr.msk.f32.vlgmr.msra.gmra.mrb[60].mxu0 %vm76_vm1, %v4087_v60  ;;  %v4348_v22 = vpop.permute.xlu0 %4347 }
 0xd48   :  { %9329 = vmatpush3.xpose.msk.msra.mxu0 %vm76_vm1, %v4348_v22  ;;  %9334 = vmatpush3.xpose.msk.msra.mxu1 %vm76_vm1, %v4424_v15 }
 0xd49   :  { %9330 = vmatprep.mubr.msk.f32.mxu0 %vm9858_vm0, %v9857_v1  ;;  %9335 = vmatprep.mubr.msk.f32.mxu1 %vm9858_vm0, %v9857_v1 }
 0xd4a   :  { %9343 = vmatprep.subr.mxu1 %v9857_v1  ;;  %9338 = vmatprep.subr.mxu0 %v9857_v1 }
 0xd4b   :  { %9336 = vmatmul.mubr.msk.f32.vlgmr.msra.gmra.mrb[56].mxu1 %vm76_vm1, %v4081_v8  ;;  %v4576_v25 = vpop.permute.xlu1 %4575  ;;  %9331 = vmatmul.mubr.msk.f32.vlgmr.msra.gmra.mrb[62].mxu0 %vm76_vm1, %v4091_v9  ;;  %v4500_v26 = vpop.permute.xlu0 %4499 }
 0xd4c   :  { %9339 = vmatpush3.xpose.msk.msra.mxu0 %vm76_vm1, %v4500_v26  ;;  %9344 = vmatpush3.xpose.msk.msra.mxu1 %vm76_vm1, %v4576_v25 }
 0xd4d   :  { %9340 = vmatprep.mubr.msk.f32.mxu0 %vm9858_vm0, %v9857_v1  ;;  %9345 = vmatprep.mubr.msk.f32.mxu1 %vm9858_vm0, %v9857_v1 }
 0xd4e   :  { %9348 = vmatprep.subr.mxu0 %v9857_v1  ;;  %9353 = vmatprep.subr.mxu1 %v9857_v1 }
 0xd4f   :  { %9341 = vmatmul.mubr.msk.f32.vlgmr.msra.gmra.mrb[64].mxu0 %vm76_vm1, %v4094_v61  ;;  %9346 = vmatmul.mubr.msk.f32.vlgmr.msra.gmra.mrb[58].mxu1 %vm76_vm1, %v4096_v10  ;;  %v4652_v23 = vpop.permute.xlu0 %4651 }
 0xd50   :  { %9349 = vmatpush3.xpose.msk.msra.mxu0 %vm76_vm1, %v4652_v23  ;;  %9354 = vmatpush3.msra.mxu1 %v4079_v29 }
 0xd51   :  { %9350 = vmatprep.mubr.msk.f32.mxu0 %vm9858_vm0, %v9857_v1  ;;  %9358 = vmatprep.subr.mxu0 %v9857_v1 }
 0xd52   :  { %9355 = vmatprep.mubr.msk.f32.mxu1 %vm9858_vm0, %v9857_v1  ;;  %9363 = vmatprep.subr.mxu1 %v9857_v1 }
 0xd53   :  { %9351 = vmatmul.mubr.msk.f32.vlgmr.msra.gmra.mrb[66].mxu0 %vm76_vm1, %v4098_v12 }
 0xd54   :  { %9360 = vmatprep.mubr.msk.f32.mxu0 %vm9858_vm0, %v9857_v1 }
 0xdb3   :  { %v4191_v34 = vpop.f32.mrb[52].mxu1 }
 0xdb4   :  { %v9317_v18 = vpop.f32.mrb[53].mxu1  ;;  %v4727_v19 = vsel %vm871_vm3, %v4191_v34, -inf }
 0xdb5   :  { %4728 = vmax.xlane.f32.xlu1 %v4727_v19 }
 0xe1a   :  { %v4267_v31 = vpop.f32.mrb[60].mxu0  ;;  %v4343_v32 = vpop.f32.mrb[54].mxu1 }
 0xe1b   :  { %v9322_v28 = vpop.f32.mrb[61].mxu0  ;;  %v9327_v11 = vpop.f32.mrb[55].mxu1  ;;  %v4730_v0 = vsel %vm871_vm3, %v4267_v31, -inf  ;;  %v4733_v37 = vsel %vm871_vm3, %v4343_v32, -inf }
 0xe1c   :  { %4731 = vmax.xlane.f32.xlu0 %v4730_v0 }
 0xe1e   :  { %v4419_v2 = vpop.f32.mrb[62].mxu0  ;;  %v4495_v30 = vpop.f32.mrb[56].mxu1 }
 0xe1f   :  { %v9332_v35 = vpop.f32.mrb[63].mxu0  ;;  %v9337_v36 = vpop.f32.mrb[57].mxu1  ;;  %v4736_v38 = vsel %vm871_vm3, %v4419_v2, -inf  ;;  %v4739_v45 = vsel %vm871_vm3, %v4495_v30, -inf }
 0xe20   :  { %4734 = vmax.xlane.f32.xlu0 %v4733_v37  ;;  %4737 = vmax.xlane.f32.xlu1 %v4736_v38 }
 0xe22   :  { %v4571_v39 = vpop.f32.mrb[64].mxu0  ;;  %v4647_v43 = vpop.f32.mrb[58].mxu1 }
 0xe23   :  { %v9342_v41 = vpop.f32.mrb[65].mxu0  ;;  %v9347_v44 = vpop.f32.mrb[59].mxu1  ;;  %v4742_v46 = vsel %vm871_vm3, %v4571_v39, -inf  ;;  %v4745_v49 = vsel %vm871_vm3, %v4647_v43, -inf }
 0xe24   :  { %4740 = vmax.xlane.f32.xlu0 %v4739_v45  ;;  %4743 = vmax.xlane.f32.xlu1 %v4742_v46 }
 0xe26   :  { %v4723_v47 = vpop.f32.mrb[66].mxu0 }
 0xe27   :  { %v9352_v48 = vpop.f32.mrb[67].mxu0  ;;  %v4748_v50 = vsel %vm871_vm3, %v4723_v47, -inf }
 0xe28   :  { %4746 = vmax.xlane.f32.xlu0 %v4745_v49  ;;  %4749 = vmax.xlane.f32.xlu1 %v4748_v50 }
 0xe39   :  { %4103 = vrot.lane.b32.xlu1 %v4079_v29, %s9862_s23 }
 0xe3d   :  { %4106 = vrot.lane.b32.xlu1 %v4079_v29, %s9860_s21 }
 0xe3e   :  { %4100 = vrot.lane.b32.xlu0 %v4079_v29, %s9861_s22 }
 0xe42   :  { %4110 = vrot.lane.b32.xlu0 %v10932_v7, %s9861_s22  ;;  %v4729_v51 = vpop.xlane.xlu1 %4728 }
 0xe43   :  { %v4751_v52 = vsub.f32 %v4191_v34, %v4729_v51 }
 0xe45   :  { %v4759_v55 = vmul.f32 1.442695, %v4751_v52 }
 0xe47   :  { %9793 = vpow2.f32 %v4759_v55 }
 0xe51   :  { %v9794_v56 = vpop.eup %9793 }
 0xe52   :  { %v4775_v57 = vsel %vm871_vm3, %v9794_v56, 0.0 }
 0xe61   :  { %4776 = vadd.xlane.f32.xlu0 %v4775_v57 }
 0xea9   :  { %v4732_v58 = vpop.xlane.xlu0 %4731 }
 0xeaa   :  { %v4752_v59 = vsub.f32 %v4267_v31, %v4732_v58 }
 0xeac   :  { %v4761_v62 = vmul.f32 1.442695, %v4752_v59 }
 0xead   :  { %v4738_v63 = vpop.xlane.xlu1 %4737  ;;  %v4735_v3 = vpop.xlane.xlu0 %4734 }
 0xeae   :  { %9795 = vpow2.f32 %v4761_v62  ;;  %v4754_v6 = vsub.f32 %v4419_v2, %v4738_v63  ;;  %v4753_v8 = vsub.f32 %v4343_v32, %v4735_v3 }
 0xeb0   :  { %v4765_v33 = vmul.f32 1.442695, %v4754_v6  ;;  %v4763_v60 = vmul.f32 1.442695, %v4753_v8 }
 0xeb1   :  { %v4744_v9 = vpop.xlane.xlu1 %4743  ;;  %v4741_v61 = vpop.xlane.xlu0 %4740 }
 0xeb2   :  { %9797 = vpow2.f32 %v4765_v33  ;;  %v4756_v10 = vsub.f32 %v4571_v39, %v4744_v9  ;;  %v4755_v12 = vsub.f32 %v4495_v30, %v4741_v61 }
 0xeb3   :  { %9799 = vpow2.f32 %v4763_v60 }
 0xeb4   :  { %v4769_v14 = vmul.f32 1.442695, %v4756_v10  ;;  %v4767_v4 = vmul.f32 1.442695, %v4755_v12 }
 0xeb5   :  { %v4750_v5 = vpop.xlane.xlu1 %4749  ;;  %v4747_v15 = vpop.xlane.xlu0 %4746 }
 0xeb6   :  { %9801 = vpow2.f32 %v4769_v14  ;;  %v4758_v22 = vsub.f32 %v4723_v47, %v4750_v5  ;;  %v4757_v25 = vsub.f32 %v4647_v43, %v4747_v15  ;;  %v9617_v14 = vld [vmem:[%s11809_s5 + $0x20] sm:$0xff]   ;;  %v9618_v15 = vld [vmem:[%s11809_s5 + $0x28] sm:$0xff]  }
 0xeb7   :  { %9803 = vpow2.f32 %v4767_v4 }
 0xeb8   :  { %v9796_v26 = vpop.eup %9795  ;;  %v4773_v29 = vmul.f32 1.442695, %v4758_v22  ;;  %v4771_v23 = vmul.f32 1.442695, %v4757_v25  ;;  %v9619_v25 = vld [vmem:[%s11809_s5 + $0x30] sm:$0xff]  }
 0xeb9   :  { %v4101_v34 = vpop.permute.xlu0 %4100  ;;  %v4778_v18 = vsel %vm871_vm3, %v9796_v26, 0.0  ;;  %v4104_v45 = vpop.permute.xlu1 %4103 }
 0xeba   :  { %9805 = vpow2.f32 %v4773_v29  ;;  %4779 = vadd.xlane.f32.xlu1 %v4778_v18  ;;  %9359 = vmatpush3.msra.mxu0 %v4101_v34  ;;  %v9620_v18 = vld [vmem:[%s11809_s5 + $0x38] sm:$0xff]  }
 0xebb   :  { %9807 = vpow2.f32 %v4771_v23  ;;  %9368 = vmatprep.subr.mxu0 %v9857_v1 }
 0xebc   :  { %v9798_v19 = vpop.eup %9797 }
 0xebd   :  { %v9800_v31 = vpop.eup %9799  ;;  %v4784_v32 = vsel %vm871_vm3, %v9798_v19, 0.0  ;;  %v4111_v39 = vpop.permute.xlu0 %4110 }
 0xebe   :  { %4785 = vadd.xlane.f32.xlu1 %v4784_v32  ;;  %v4781_v28 = vsel %vm871_vm3, %v9800_v31, 0.0  ;;  %v4107_v46 = vpop.permute.xlu1 %4106 }
 0xebf   :  { %4782 = vadd.xlane.f32.xlu0 %v4781_v28 }
 0xec0   :  { %v9802_v11 = vpop.eup %9801 }
 0xec1   :  { %v9804_v0 = vpop.eup %9803  ;;  %v4790_v2 = vsel %vm871_vm3, %v9802_v11, 0.0 }
 0xec2   :  { %4791 = vadd.xlane.f32.xlu1 %v4790_v2  ;;  %v4787_v30 = vsel %vm871_vm3, %v9804_v0, 0.0 }
 0xec3   :  { %4788 = vadd.xlane.f32.xlu0 %v4787_v30 }
 0xec4   :  { %v9806_v35 = vpop.eup %9805 }
 0xec5   :  { %v11007_v36 = vpop.eup %9807  ;;  %v4796_v37 = vsel %vm871_vm3, %v9806_v35, 0.0 }
 0xec6   :  { %4797 = vadd.xlane.f32.xlu1 %v4796_v37  ;;  %v4793_v38 = vsel %vm871_vm3, %v11007_v36, 0.0 }
 0xec7   :  { %4794 = vadd.xlane.f32.xlu0 %v4793_v38 }
 0xed7   :  { %4113 = vrot.lane.b32.xlu1 %v10932_v7, %s9862_s23 }
 0xedd   :  { %4116 = vrot.lane.b32.xlu0 %v10932_v7, %s9860_s21 }
 0xeee   :  { %v4777_v43 = vpop.xlane.xlu0 %4776 }
 0xeef   :  { %9809 = vrcp.f32 %v4777_v43 }
 0xef9   :  { %v9810_v41 = vpop.eup %9809 }
 0xefa   :  { %v4807_v44 = vmul.f32 %v9810_v41, %v9794_v56 }
 0xefc   :  { %9356 = vmatmul.mubr.msk.f32.vlgmr.msra.gmra.mrb[60].mxu1 %vm871_vm3, %v4807_v44 }
 0xefd   :  { %9364 = vmatpush3.msra.mxu1 %v4104_v45  ;;  %9365 = vmatprep.mubr.msk.f32.mxu1 %vm9858_vm0, %v9857_v1 }
 0xefe   :  { %9373 = vmatprep.subr.mxu1 %v9857_v1 }
 0xf47   :  { %v4780_v47 = vpop.xlane.xlu1 %4779 }
 0xf48   :  { %9811 = vrcp.f32 %v4780_v47 }
 0xf4b   :  { %v4786_v48 = vpop.xlane.xlu1 %4785 }
 0xf4c   :  { %9813 = vrcp.f32 %v4786_v48  ;;  %v4783_v49 = vpop.xlane.xlu0 %4782 }
 0xf4d   :  { %9815 = vrcp.f32 %v4783_v49 }
 0xf4f   :  { %v4792_v50 = vpop.xlane.xlu1 %4791 }
 0xf50   :  { %9817 = vrcp.f32 %v4792_v50  ;;  %v4789_v51 = vpop.xlane.xlu0 %4788 }
 0xf51   :  { %9819 = vrcp.f32 %v4789_v51 }
 0xf52   :  { %v9812_v52 = vpop.eup %9811 }
 0xf53   :  { %v4808_v55 = vmul.f32 %v9812_v52, %v9796_v26  ;;  %v4798_v56 = vpop.xlane.xlu1 %4797 }
 0xf54   :  { %9821 = vrcp.f32 %v4798_v56  ;;  %v4795_v57 = vpop.xlane.xlu0 %4794 }
 0xf55   :  { %9823 = vrcp.f32 %v4795_v57  ;;  %9361 = vmatmul.mubr.msk.f32.vlgmr.msra.gmra.mrb[68].mxu0 %vm871_vm3, %v4808_v55 }
 0xf56   :  { %v9814_v58 = vpop.eup %9813  ;;  %9369 = vmatpush3.msra.mxu0 %v4107_v46  ;;  %9370 = vmatprep.mubr.msk.f32.mxu0 %vm9858_vm0, %v9857_v1 }
 0xf57   :  { %v9816_v59 = vpop.eup %9815  ;;  %v4810_v62 = vmul.f32 %v9814_v58, %v9798_v19  ;;  %9378 = vmatprep.subr.mxu0 %v9857_v1  ;;  %v4114_v61 = vpop.permute.xlu1 %4113 }
 0xf58   :  { %v4809_v63 = vmul.f32 %v9816_v59, %v9800_v31  ;;  %v4117_v60 = vpop.permute.xlu0 %4116  ;;  %v8238_v59 = vld [vmem:[%s11810_s6 + $0x1] ss:$0 sm:$0xff] }
 0xf59   :  { %9371 = vmatmul.mubr.msk.f32.vlgmr.msra.gmra.mrb[70].mxu0 %vm871_vm3, %v4810_v62 }
 0xf5a   :  { %v9818_v3 = vpop.eup %9817  ;;  %9366 = vmatmul.mubr.msk.f32.vlgmr.msra.gmra.mrb[62].mxu1 %vm871_vm3, %v4809_v63  ;;  %9379 = vmatpush3.msra.mxu0 %v4111_v39 }
 0xf5b   :  { %v9820_v6 = vpop.eup %9819  ;;  %v4812_v8 = vmul.f32 %v9818_v3, %v9802_v11  ;;  %9374 = vmatpush3.msra.mxu1 %v10932_v7  ;;  %9375 = vmatprep.mubr.msk.f32.mxu1 %vm9858_vm0, %v9857_v1 }
 0xf5c   :  { %v4811_v33 = vmul.f32 %v9820_v6, %v9804_v0  ;;  %9380 = vmatprep.mubr.msk.f32.mxu0 %vm9858_vm0, %v9857_v1  ;;  %9383 = vmatprep.subr.mxu1 %v9857_v1 }
 0xf5d   :  { %9388 = vmatprep.subr.mxu0 %v9857_v1  ;;  %9381 = vmatmul.mubr.msk.f32.vlgmr.msra.gmra.mrb[72].mxu0 %vm871_vm3, %v4812_v8 }
 0xf5e   :  { %v9822_v9 = vpop.eup %9821  ;;  %9376 = vmatmul.mubr.msk.f32.vlgmr.msra.gmra.mrb[64].mxu1 %vm871_vm3, %v4811_v33  ;;  %9389 = vmatpush3.msra.mxu0 %v4117_v60 }
 0xf5f   :  { %v9824_v7 = vpop.eup %9823  ;;  %v4814_v10 = vmul.f32 %v9822_v9, %v9806_v35  ;;  %9384 = vmatpush3.msra.mxu1 %v4114_v61  ;;  %9385 = vmatprep.mubr.msk.f32.mxu1 %vm9858_vm0, %v9857_v1 }
 0xf60   :  { %v4813_v12 = vmul.f32 %v9824_v7, %v11007_v36  ;;  %9390 = vmatprep.mubr.msk.f32.mxu0 %vm9858_vm0, %v9857_v1  ;;  %9393 = vmatprep.subr.bf16.mxu1 %v9857_v1 }
 0xf61   :  { %9391 = vmatmul.mubr.msk.f32.vlgmr.msra.gmra.mrb[74].mxu0 %vm871_vm3, %v4814_v10 }
 0xf62   :  { %9386 = vmatmul.mubr.msk.f32.vlgmr.msra.gmra.mrb[66].mxu1 %vm871_vm3, %v4813_v12  ;;  %6069 = vmatprep.mubr.bf16.mxu0 %v9859_v13 }
 0xf63   :  { %9401 = vmatprep.mubr.msk.bf16.mxu1 %vm9858_vm0, %v9857_v1  ;;  %9394 = vmatpush3.bf16.msra.mxu1 %v9617_v14 }
 0xf64   :  { %9395 = vmatprep.subr.bf16.mxu1 %v9857_v1 }
 0xf67   :  { %9396 = vmatpush3.bf16.msra.mxu1 %v9618_v15 }
 0xf68   :  { %9397 = vmatprep.subr.bf16.mxu1 %v9857_v1 }
 0xf6b   :  { %9398 = vmatpush3.bf16.msra.mxu1 %v9619_v25 }
 0xf6c   :  { %9399 = vmatprep.subr.bf16.mxu1 %v9857_v1 }
 0xf6f   :  { %9400 = vmatpush3.bf16.msra.mxu1 %v9620_v18  ;;  %v8257_v18 = vld [vmem:[%s11813_s9 + $0x248] sm:$0xff] }
 0xfcf   :  { %v4884_v4 = vpop.f32.mrb[60].mxu1 }
 0xfd0   :  { %v9357_v5 = vpop.f32.mrb[61].mxu1 }
0x1028   :  { %v4957_v22 = vpop.f32.mrb[68].mxu0 }
0x1029   :  { %v9362_v26 = vpop.f32.mrb[69].mxu0 }
0x102a   :  { %v8248_v26 = vld [vmem:[%s11813_s9 + $0x200] sm:$0xff] }
0x102c   :  { %v5103_v29 = vpop.f32.mrb[70].mxu0 }
0x102d   :  { %v5030_v23 = vpop.f32.mrb[62].mxu1  ;;  %v9372_v34 = vpop.f32.mrb[71].mxu0 }
0x102e   :  { %v9367_v19 = vpop.f32.mrb[63].mxu1 }
0x1030   :  { %v5249_v31 = vpop.f32.mrb[72].mxu0 }
0x1031   :  { %v5176_v32 = vpop.f32.mrb[64].mxu1  ;;  %v9445_v28 = vpack.i.bf16 %v5249_v31, %v4957_v22  ;;  %v9382_v11 = vpop.f32.mrb[73].mxu0 }
0x1032   :  { %v9377_v0 = vpop.f32.mrb[65].mxu1  ;;  %v8272_v11 = vld [vmem:[%s11813_s9 + $0x2c0] sm:$0xff] }
0x1033   :  { %9446 = vrot.lane.b32.xlu1 %v9445_v28, %s9864_s30  ;;  %v8264_v28 = vld [vmem:[%s11813_s9 + $0x280] sm:$0xff]  ;;  %v8265_v0 = vld [vmem:[%s11813_s9 + $0x288] sm:$0xff] }
0x1034   :  { %v5395_v2 = vpop.f32.mrb[74].mxu0 }
0x1035   :  { %v5322_v30 = vpop.f32.mrb[66].mxu1  ;;  %v9455_v35 = vpack.i.bf16 %v5395_v2, %v5103_v29  ;;  %v9392_v36 = vpop.f32.mrb[75].mxu0  ;;  %v8256_v29 = vld [vmem:[%s11813_s9 + $0x240] sm:$0xff]  ;;  %v8331_v2 = vcombine.high %v8264_v28, %v8272_v11 }
0x1036   :  { %v9450_v37 = vpack.i.bf16 %v5322_v30, %v5030_v23  ;;  %v9387_v38 = vpop.f32.mrb[67].mxu1  ;;  %v8249_v23 = vld [vmem:[%s11813_s9 + $0x208] sm:$0xff]  ;;  %v8315_v34 = vcombine.high %v8248_v26, %v8256_v29  ;;  %v8314_v19 = vcombine.low %v8248_v26, %v8256_v29  ;;  %v8247_v26 = vld [vmem:[%s11812_s8 + $0x1] ss:$0 sm:$0xff] }
0x1037   :  { %9456 = vrot.lane.b32.xlu1 %v9455_v35, %s9865_s1  ;;  %v8316_v31 = vcombine.low %v8249_v23, %v8257_v18  ;;  %v8273_v30 = vld [vmem:[%s11813_s9 + $0x2c8] sm:$0xff]  ;;  %v8330_v35 = vcombine.low %v8264_v28, %v8272_v11  ;;  %v8280_v38 = vld [vmem:[%s11813_s9 + $0x300] sm:$0xff]  ;;  %v8282_v11 = vld [vmem:[%s11813_s9 + $0x310] sm:$0xff] }
0x1038   :  { %9451 = vrot.lane.b32.xlu0 %v9450_v37, %s11828_s28  ;;  %6037 = vmatprep.subr.bf16.mxu0 %v8315_v34  ;;  %v8332_v36 = vcombine.low %v8265_v0, %v8273_v30  ;;  %v8333_v37 = vcombine.high %v8265_v0, %v8273_v30  ;;  %v8267_v34 = vld [vmem:[%s11813_s9 + $0x298] sm:$0xff]  ;;  %v8290_v0 = vld [vmem:[%s11813_s9 + $0x350] sm:$0xff] }
0x1039   :  { %6038 = vmatpush1.bf16.msra.mxu0 %v8314_v19  ;;  %v8291_v30 = vld [vmem:[%s11813_s9 + $0x358] sm:$0xff] }
0x103a   :  { %6039 = vmatprep.subr.bf16.mxu0 %v8331_v2  ;;  %v8283_v2 = vld [vmem:[%s11813_s9 + $0x318] sm:$0xff] }
0x103d   :  { %6040 = vmatpush1.bf16.msra.mxu0 %v8330_v35 }
0x10a5   :  { %v9447_v39 = vpop.permute.xlu1 %9446 }
0x10a6   :  { %v9449_v43 = vunpack.i.h.bf16 %v9447_v39  ;;  %v9448_v41 = vunpack.i.l.bf16 %v9447_v39  ;;  %v8288_v39 = vld [vmem:[%s11813_s9 + $0x340] sm:$0xff] }
0x10a8   :  { %v5411_v50 = vsel %vm76_vm1, %v4884_v4, %v9448_v41  ;;  %v5426_v51 = vsel %vm76_vm1, %v5176_v32, %v9449_v43  ;;  %v8317_v32 = vcombine.high %v8249_v23, %v8257_v18  ;;  %v8281_v43 = vld [vmem:[%s11813_s9 + $0x308] sm:$0xff]  ;;  %v8347_v41 = vcombine.high %v8280_v38, %v8288_v39  ;;  %v8266_v23 = vld [vmem:[%s11813_s9 + $0x290] sm:$0xff] }
0x10a9   :  { %v9457_v44 = vpop.permute.xlu1 %9456 }
0x10aa   :  { %v9459_v45 = vunpack.i.h.bf16 %v9457_v44  ;;  %v9458_v46 = vunpack.i.l.bf16 %v9457_v44  ;;  %v9452_v47 = vpop.permute.xlu0 %9451  ;;  %6080 = vmatprep.subr.bf16.mxu1 %v8317_v32  ;;  %v8289_v44 = vld [vmem:[%s11813_s9 + $0x348] sm:$0xff]  ;;  %6041 = vmatprep.subr.bf16.mxu0 %v8347_v41  ;;  %v8299_v41 = vld [vmem:[%s11813_s9 + $0x398] sm:$0xff] }
0x10ab   :  { %v9454_v48 = vunpack.i.h.bf16 %v9452_v47  ;;  %v9453_v49 = vunpack.i.l.bf16 %v9452_v47  ;;  %v8349_v47 = vcombine.high %v8281_v43, %v8289_v44 }
0x10ad   :  { %v5427_v52 = vsel %vm1557_vm4, %v5426_v51, %v9454_v48  ;;  %v5412_v55 = vsel %vm1557_vm4, %v5411_v50, %v9453_v49  ;;  %v8296_v48 = vld [vmem:[%s11813_s9 + $0x380] sm:$0xff]  ;;  %v8297_v50 = vld [vmem:[%s11813_s9 + $0x388] sm:$0xff] }
0x10ae   :  { %v5428_v56 = vsel %vm1559_vm5, %v5427_v52, %v9459_v45  ;;  %v5413_v57 = vsel %vm1559_vm5, %v5412_v55, %v9458_v46  ;;  %v8346_v45 = vcombine.low %v8280_v38, %v8288_v39  ;;  %v8348_v46 = vcombine.low %v8281_v43, %v8289_v44  ;;  %v8304_v49 = vld [vmem:[%s11813_s9 + $0x3c0] sm:$0xff]  ;;  %v8305_v52 = vld [vmem:[%s11813_s9 + $0x3c8] sm:$0xff]  ;;  %v8298_v39 = vld [vmem:[%s11813_s9 + $0x390] sm:$0xff] }
0x10af   :  { %v5438_v58 = vpack.c.bf16 %v5428_v56, %v5413_v57  ;;  %v8363_v51 = vcombine.high %v8296_v48, %v8304_v49  ;;  %v8362_v55 = vcombine.low %v8296_v48, %v8304_v49  ;;  %v8364_v56 = vcombine.low %v8297_v50, %v8305_v52  ;;  %v8306_v43 = vld [vmem:[%s11813_s9 + $0x3d0] sm:$0xff]  ;;  %v8307_v44 = vld [vmem:[%s11813_s9 + $0x3d8] sm:$0xff]  ;;  %v8252_v49 = vld [vmem:[%s11813_s9 + $0x220] sm:$0xff] }
0x10b0   :  { %6042 = vmatpush1.bf16.msra.mxu0 %v8346_v45  ;;  %v8365_v57 = vcombine.high %v8297_v50, %v8305_v52  ;;  %v8353_v38 = vcombine.high %v8283_v2, %v8291_v30  ;;  %v8350_v45 = vcombine.low %v8282_v11, %v8290_v0  ;;  %v8369_v48 = vcombine.high %v8299_v41, %v8307_v44  ;;  %v8260_v50 = vld [vmem:[%s11813_s9 + $0x260] sm:$0xff]  ;;  %v8261_v52 = vld [vmem:[%s11813_s9 + $0x268] sm:$0xff] }
0x10b1   :  { %9402 = vmatmul.mubr.msk.bf16.vlgmr.msra.gmra.mrb[68].mxu1 %vm182_vm2, %v5438_v58  ;;  %6043 = vmatprep.subr.bf16.mxu0 %v8363_v51  ;;  %v8250_v58 = vld [vmem:[%s11813_s9 + $0x210] sm:$0xff]  ;;  %v8253_v51 = vld [vmem:[%s11813_s9 + $0x228] sm:$0xff] }
0x10b2   :  { %6112 = vmatprep.mubr.bf16.mxu1 %v9859_v13  ;;  %6081 = vmatpush1.bf16.msra.mxu1 %v8316_v31 }
0x10b3   :  { %6082 = vmatprep.subr.bf16.mxu1 %v8333_v37  ;;  %v8351_v37 = vcombine.high %v8282_v11, %v8290_v0  ;;  %v8263_v11 = vld [vmem:[%s11813_s9 + $0x278] sm:$0xff] }
0x10b4   :  { %6044 = vmatpush1.bf16.msra.mxu0 %v8362_v55  ;;  %v8366_v55 = vcombine.low %v8298_v39, %v8306_v43 }
0x10b6   :  { %6083 = vmatpush1.bf16.msra.mxu1 %v8332_v36 }
0x10b7   :  { %6084 = vmatprep.subr.bf16.mxu1 %v8349_v47  ;;  %v8367_v47 = vcombine.high %v8298_v39, %v8306_v43  ;;  %v8279_v39 = vld [vmem:[%s11813_s9 + $0x2f8] sm:$0xff] }
0x10ba   :  { %6085 = vmatpush1.bf16.msra.mxu1 %v8348_v46  ;;  %v8352_v46 = vcombine.low %v8283_v2, %v8291_v30 }
0x10bb   :  { %6086 = vmatprep.subr.bf16.mxu1 %v8365_v57  ;;  %v8323_v57 = vcombine.high %v8252_v49, %v8260_v50 }
0x10be   :  { %6087 = vmatpush1.bf16.msra.mxu1 %v8364_v56  ;;  %v8368_v56 = vcombine.low %v8299_v41, %v8307_v44 }
0x1184   :  { %v5508_v62 = vpop.f32.mrb[68].mxu1 }
0x1185   :  { %v5509_v63 = vadd.f32 %v8238_v59, %v5508_v62  ;;  %v9403_v3 = vpop.f32.mrb[69].mxu1  ;;  %v8251_v62 = vld [vmem:[%s11813_s9 + $0x218] sm:$0xff] }
0x1186   :  { %v5511_v6 = vpop.f32.mrb[70].mxu1 }
0x1187   :  { %v5512_v8 = vadd.f32 %v8238_v59, %v5511_v6  ;;  %v9404_v33 = vpop.f32.mrb[71].mxu1  ;;  %v5515_v60 = vadd.f32 %v5509_v63, %v10916_v53  ;;  %v8258_v59 = vld [vmem:[%s11813_s9 + $0x250] sm:$0xff]  ;;  %v8259_v6 = vld [vmem:[%s11813_s9 + $0x258] sm:$0xff] }
0x1188   :  { %v8318_v63 = vcombine.low %v8250_v58, %v8258_v59  ;;  %v8319_v3 = vcombine.high %v8250_v58, %v8258_v59  ;;  %v8321_v33 = vcombine.high %v8251_v62, %v8259_v6  ;;  %v8325_v58 = vcombine.high %v8253_v51, %v8261_v52  ;;  %v8268_v59 = vld [vmem:[%s11813_s9 + $0x2a0] sm:$0xff] }
0x1189   :  { %v5521_v9 = vsel %vm182_vm2, %v5515_v60, 0.0  ;;  %v5516_v61 = vadd.f32 %v5512_v8, %v10918_v54  ;;  %v8320_v8 = vcombine.low %v8251_v62, %v8259_v6  ;;  %v8276_v62 = vld [vmem:[%s11813_s9 + $0x2e0] sm:$0xff]  ;;  %v8322_v6 = vcombine.low %v8252_v49, %v8260_v50  ;;  %v8295_v49 = vld [vmem:[%s11813_s9 + $0x378] sm:$0xff] }
0x118a   :  { %5522 = vadd.xlane.f32.xlu0 %v5521_v9  ;;  %6123 = vmatprep.subr.bf16.mxu0 %v8319_v3  ;;  %v8277_v3 = vld [vmem:[%s11813_s9 + $0x2e8] sm:$0xff] }
0x118b   :  { %v5524_v7 = vsel %vm182_vm2, %v5516_v61, 0.0  ;;  %6166 = vmatprep.subr.bf16.mxu1 %v8321_v33  ;;  %v8339_v33 = vcombine.high %v8268_v59, %v8276_v62 }
0x118c   :  { %5525 = vadd.xlane.f32.xlu1 %v5524_v7 }
0x1217   :  { %v5523_v10 = vpop.xlane.xlu0 %5522 }
0x1218   :  { %v5527_v12 = vmul.f32 0.015625, %v5523_v10 }
0x1219   :  { %v5526_v14 = vpop.xlane.xlu1 %5525 }
0x121a   :  { %v11079_v4 = vsub.f32 %v5515_v60, %v5527_v12  ;;  %v5528_v5 = vmul.f32 0.015625, %v5526_v14 }
0x121c   :  { %v11081_v15 = vsub.f32 %v5516_v61, %v5528_v5  ;;  %v5531_v22 = vmul.f32 %v11079_v4, %v11079_v4 }
0x121e   :  { %v5533_v53 = vsel %vm182_vm2, %v5531_v22, 0.0  ;;  %v5532_v54 = vmul.f32 %v11081_v15, %v11081_v15  ;;  %v8246_v22 = vld [vmem:[%s11811_s7 + $0x1] ss:$0 sm:$0xff] }
0x121f   :  { %5534 = vadd.xlane.f32.xlu0 %v5533_v53 }
0x1220   :  { %v5536_v25 = vsel %vm182_vm2, %v5532_v54, 0.0 }
0x1223   :  { %5537 = vadd.xlane.f32.xlu0 %v5536_v25 }
0x12ac   :  { %v5535_v60 = vpop.xlane.xlu0 %5534 }
0x12ad   :  { %v5539_v9 = vmul.f32 0.015625, %v5535_v60 }
0x12af   :  { %v5541_v61 = vadd.f32 1e-05, %v5539_v9  ;;  %v8284_v9 = vld [vmem:[%s11813_s9 + $0x320] sm:$0xff] }
0x12b0   :  { %v5538_v7 = vpop.xlane.xlu0 %5537 }
0x12b1   :  { %9825 = vrsqrt.f32 %v5541_v61  ;;  %v5540_v10 = vmul.f32 0.015625, %v5538_v7  ;;  %v8292_v61 = vld [vmem:[%s11813_s9 + $0x360] sm:$0xff]  ;;  %v8285_v7 = vld [vmem:[%s11813_s9 + $0x328] sm:$0xff] }
0x12b3   :  { %v5542_v12 = vadd.f32 1e-05, %v5540_v10  ;;  %v8293_v10 = vld [vmem:[%s11813_s9 + $0x368] sm:$0xff] }
0x12b5   :  { %9827 = vrsqrt.f32 %v5542_v12  ;;  %v8338_v12 = vcombine.low %v8268_v59, %v8276_v62  ;;  %v8311_v59 = vld [vmem:[%s11813_s9 + $0x3f8] sm:$0xff] }
0x12bb   :  { %v9826_v14 = vpop.eup %9825 }
0x12bc   :  { %v5545_v5 = vmul.f32 %v9826_v14, %v11079_v4  ;;  %v8274_v4 = vld [vmem:[%s11813_s9 + $0x2d0] sm:$0xff] }
0x12bd   :  { %v8335_v32 = vcombine.high %v8266_v23, %v8274_v4  ;;  %v8334_v35 = vcombine.low %v8266_v23, %v8274_v4  ;;  %v8356_v23 = vcombine.low %v8285_v7, %v8293_v10 }
0x12be   :  { %v5553_v54 = vmul.f32 %v8246_v22, %v5545_v5  ;;  %v8355_v5 = vcombine.high %v8284_v9, %v8292_v61 }
0x12bf   :  { %v9828_v53 = vpop.eup %9827 }
0x12c0   :  { %v5546_v25 = vmul.f32 %v9828_v53, %v11081_v15  ;;  %v8275_v15 = vld [vmem:[%s11813_s9 + $0x2d8] sm:$0xff]  ;;  %v11169_v18 = vadd.f32 %v8247_v26, %v5553_v54  ;;  %v8300_v53 = vld [vmem:[%s11813_s9 + $0x3a0] sm:$0xff] }
0x12c1   :  { %v8337_v28 = vcombine.high %v8267_v34, %v8275_v15  ;;  %v8336_v36 = vcombine.low %v8267_v34, %v8275_v15  ;;  %v8308_v54 = vld [vmem:[%s11813_s9 + $0x3e0] sm:$0xff]  ;;  %v8254_v15 = vld [vmem:[%s11813_s9 + $0x230] sm:$0xff] }
0x12c2   :  { %v5554_v29 = vmul.f32 %v8246_v22, %v5546_v25  ;;  %v8357_v22 = vcombine.high %v8285_v7, %v8293_v10  ;;  %v8301_v25 = vld [vmem:[%s11813_s9 + $0x3a8] sm:$0xff]  ;;  %v8371_v4 = vcombine.high %v8300_v53, %v8308_v54  ;;  %v8370_v0 = vcombine.low %v8300_v53, %v8308_v54  ;;  %v9632_v53 = vld [vmem:[%s11815_s11 + $0x490] sm:$0xff]   ;;  %v9633_v54 = vld [vmem:[%s11815_s11 + $0x458] sm:$0xff]  }
0x12c3   :  { %v9625_v7 = vld [vmem:[%s11815_s11 + $0x448] sm:$0xff]  }
0x12c4   :  { %v11171_v19 = vadd.f32 %v8247_v26, %v5554_v29  ;;  %v8309_v26 = vld [vmem:[%s11813_s9 + $0x3e8] sm:$0xff]  ;;  %v8354_v29 = vcombine.low %v8284_v9, %v8292_v61  ;;  %v9623_v9 = vld [vmem:[%s11815_s11 + $0x400] sm:$0xff]  }
0x12c5   :  { %v8373_v34 = vcombine.high %v8301_v25, %v8309_v26  ;;  %v8372_v2 = vcombine.low %v8301_v25, %v8309_v26  ;;  %v9624_v61 = vld [vmem:[%s11815_s11 + $0x480] sm:$0xff]   ;;  %v9626_v10 = vld [vmem:[%s11815_s11 + $0x4c8] sm:$0xff]   ;;  %v9634_v25 = vld [vmem:[%s11815_s11 + $0x4d8] sm:$0xff]  }
0x12c6   :  { %v11175_v31 = vpack.c.bf16 %v11171_v19, %v11169_v18  ;;  %v9635_v26 = vld [vmem:[%s11815_s11 + $0x418] sm:$0xff]  }
0x12c8   :  { %8378 = vmatmul.mubr.msk.bf16.vlgmr.msra.gmra.mrb[76].mxu0 %vm182_vm2, %v11175_v31  ;;  %8379 = vmatmul.mubr.msk.bf16.vlgmr.msra.gmra.mrb[72].mxu1 %vm182_vm2, %v11175_v31 }
0x12c9   :  { %6124 = vmatpush1.bf16.msra.mxu0 %v8318_v63  ;;  %6167 = vmatpush1.bf16.msra.mxu1 %v8320_v8  ;;  %v8269_v63 = vld [vmem:[%s11813_s9 + $0x2a8] sm:$0xff]  ;;  %v8324_v8 = vcombine.low %v8253_v51, %v8261_v52 }
0x12ca   :  { %6125 = vmatprep.subr.bf16.mxu0 %v8335_v32  ;;  %6168 = vmatprep.subr.bf16.mxu1 %v8337_v28  ;;  %v8341_v60 = vcombine.high %v8269_v63, %v8277_v3  ;;  %v8340_v14 = vcombine.low %v8269_v63, %v8277_v3  ;;  %v8262_v32 = vld [vmem:[%s11813_s9 + $0x270] sm:$0xff]  ;;  %v8255_v28 = vld [vmem:[%s11813_s9 + $0x238] sm:$0xff] }
0x12cb   :  { %6155 = vmatprep.mubr.bf16.mxu0 %v9859_v13  ;;  %6198 = vmatprep.mubr.bf16.mxu1 %v9859_v13  ;;  %v8327_v30 = vcombine.high %v8254_v15, %v8262_v32  ;;  %v8326_v43 = vcombine.low %v8254_v15, %v8262_v32  ;;  %v8328_v41 = vcombine.low %v8255_v28, %v8263_v11  ;;  %v9640_v15 = vld [vmem:[%s11815_s11 + $0x4a0] sm:$0xff]   ;;  %v9641_v32 = vld [vmem:[%s11815_s11 + $0x468] sm:$0xff]  }
0x12cd   :  { %6126 = vmatpush1.bf16.msra.mxu0 %v8334_v35  ;;  %6169 = vmatpush1.bf16.msra.mxu1 %v8336_v36  ;;  %v8329_v35 = vcombine.high %v8255_v28, %v8263_v11  ;;  %v8270_v36 = vld [vmem:[%s11813_s9 + $0x2b0] sm:$0xff]  ;;  %v9642_v28 = vld [vmem:[%s11815_s11 + $0x4e8] sm:$0xff]  }
0x12ce   :  { %6127 = vmatprep.subr.bf16.mxu0 %v8351_v37  ;;  %6170 = vmatprep.subr.bf16.mxu1 %v8353_v38  ;;  %v8278_v37 = vld [vmem:[%s11813_s9 + $0x2f0] sm:$0xff]  ;;  %v8271_v38 = vld [vmem:[%s11813_s9 + $0x2b8] sm:$0xff]  ;;  %v9643_v11 = vld [vmem:[%s11815_s11 + $0x428] sm:$0xff]  }
0x12cf   :  { %v8343_v44 = vcombine.high %v8270_v36, %v8278_v37  ;;  %v8342_v50 = vcombine.low %v8270_v36, %v8278_v37  ;;  %v8344_v51 = vcombine.low %v8271_v38, %v8279_v39  ;;  %v9648_v36 = vld [vmem:[%s11815_s11 + $0x4b0] sm:$0xff]   ;;  %v9649_v37 = vld [vmem:[%s11815_s11 + $0x478] sm:$0xff]  }
0x12d1   :  { %6128 = vmatpush1.bf16.msra.mxu0 %v8350_v45  ;;  %6171 = vmatpush1.bf16.msra.mxu1 %v8352_v46  ;;  %v8345_v45 = vcombine.high %v8271_v38, %v8279_v39  ;;  %v8286_v46 = vld [vmem:[%s11813_s9 + $0x330] sm:$0xff]  ;;  %v9650_v38 = vld [vmem:[%s11815_s11 + $0x4f8] sm:$0xff]  }
0x12d2   :  { %6129 = vmatprep.subr.bf16.mxu0 %v8367_v47  ;;  %6172 = vmatprep.subr.bf16.mxu1 %v8369_v48  ;;  %v8294_v47 = vld [vmem:[%s11813_s9 + $0x370] sm:$0xff]  ;;  %v8287_v48 = vld [vmem:[%s11813_s9 + $0x338] sm:$0xff] }
0x12d3   :  { %v8359_v52 = vcombine.high %v8286_v46, %v8294_v47  ;;  %v8358_v62 = vcombine.low %v8286_v46, %v8294_v47  ;;  %v8360_v63 = vcombine.low %v8287_v48, %v8295_v49  ;;  %v9651_v39 = vld [vmem:[%s11815_s11 + $0x438] sm:$0xff]  }
0x12d5   :  { %6130 = vmatpush1.bf16.msra.mxu0 %v8366_v55  ;;  %6173 = vmatpush1.bf16.msra.mxu1 %v8368_v56  ;;  %v8361_v55 = vcombine.high %v8287_v48, %v8295_v49  ;;  %v8302_v56 = vld [vmem:[%s11813_s9 + $0x3b0] sm:$0xff] }
0x12d6   :  { %6209 = vmatprep.subr.bf16.mxu0 %v8323_v57  ;;  %6252 = vmatprep.subr.bf16.mxu1 %v8325_v58  ;;  %v8310_v57 = vld [vmem:[%s11813_s9 + $0x3f0] sm:$0xff]  ;;  %v8303_v58 = vld [vmem:[%s11813_s9 + $0x3b8] sm:$0xff] }
0x12d7   :  { %v8375_v3 = vcombine.high %v8302_v56, %v8310_v57 }
0x12d8   :  { %8380 = vmatmul.mubr.msk.bf16.vlgmr.msra.gmra.mrb[80].mxu0 %vm182_vm2, %v11175_v31  ;;  %8381 = vmatmul.mubr.msk.bf16.vlgmr.msra.gmra.mrb[76].mxu1 %vm182_vm2, %v11175_v31 }
0x12d9   :  { %6210 = vmatpush1.bf16.msra.mxu0 %v8322_v6  ;;  %6253 = vmatpush1.bf16.msra.mxu1 %v8324_v8  ;;  %v8377_v6 = vcombine.high %v8303_v58, %v8311_v59  ;;  %v8374_v8 = vcombine.low %v8302_v56, %v8310_v57 }
0x12da   :  { %6211 = vmatprep.subr.bf16.mxu0 %v8339_v33  ;;  %6254 = vmatprep.subr.bf16.mxu1 %v8341_v60  ;;  %v8376_v33 = vcombine.low %v8303_v58, %v8311_v59  ;;  %v9621_v60 = vld [vmem:[%s11815_s11 + $0x440] sm:$0xff]  }
0x12db   :  { %6241 = vmatprep.mubr.bf16.mxu0 %v9859_v13  ;;  %6284 = vmatprep.mubr.bf16.mxu1 %v9859_v13 }
0x12dd   :  { %6212 = vmatpush1.bf16.msra.mxu0 %v8338_v12  ;;  %6255 = vmatpush1.bf16.msra.mxu1 %v8340_v14  ;;  %v9627_v12 = vld [vmem:[%s11815_s11 + $0x408] sm:$0xff]  }
0x12de   :  { %6213 = vmatprep.subr.bf16.mxu0 %v8355_v5  ;;  %6256 = vmatprep.subr.bf16.mxu1 %v8357_v22  ;;  %v9628_v14 = vld [vmem:[%s11815_s11 + $0x488] sm:$0xff]   ;;  %v9629_v5 = vld [vmem:[%s11815_s11 + $0x450] sm:$0xff]  }
0x12df   :  { %v9631_v22 = vld [vmem:[%s11815_s11 + $0x410] sm:$0xff]  }
0x12e1   :  { %6214 = vmatpush1.bf16.msra.mxu0 %v8354_v29  ;;  %6257 = vmatpush1.bf16.msra.mxu1 %v8356_v23  ;;  %v9636_v29 = vld [vmem:[%s11815_s11 + $0x498] sm:$0xff]   ;;  %v9637_v23 = vld [vmem:[%s11815_s11 + $0x460] sm:$0xff]  }
0x12e2   :  { %6215 = vmatprep.subr.bf16.mxu0 %v8371_v4  ;;  %6258 = vmatprep.subr.bf16.mxu1 %v8373_v34  ;;  %v9638_v4 = vld [vmem:[%s11815_s11 + $0x4e0] sm:$0xff]  }
0x12e3   :  { %v9639_v34 = vld [vmem:[%s11815_s11 + $0x420] sm:$0xff]  }
0x12e5   :  { %6216 = vmatpush1.bf16.msra.mxu0 %v8370_v0  ;;  %6259 = vmatpush1.bf16.msra.mxu1 %v8372_v2  ;;  %v9644_v0 = vld [vmem:[%s11815_s11 + $0x4a8] sm:$0xff]   ;;  %v9645_v2 = vld [vmem:[%s11815_s11 + $0x470] sm:$0xff]  }
0x12e6   :  { %6295 = vmatprep.subr.bf16.mxu0 %v8327_v30  ;;  %6338 = vmatprep.subr.bf16.mxu1 %v8329_v35  ;;  %v9646_v30 = vld [vmem:[%s11815_s11 + $0x4f0] sm:$0xff]  }
0x12e7   :  { %v9647_v35 = vld [vmem:[%s11815_s11 + $0x430] sm:$0xff]  }
0x12e8   :  { %8382 = vmatmul.mubr.msk.bf16.vlgmr.msra.gmra.mrb[84].mxu0 %vm182_vm2, %v11175_v31  ;;  %8383 = vmatmul.mubr.msk.bf16.vlgmr.msra.gmra.mrb[80].mxu1 %vm182_vm2, %v11175_v31 }
0x12e9   :  { %6296 = vmatpush1.bf16.msra.mxu0 %v8326_v43  ;;  %6339 = vmatpush1.bf16.msra.mxu1 %v8328_v41  ;;  %v9652_v43 = vld [vmem:[%s11815_s11 + $0x4b8] sm:$0xff]   ;;  %v9653_v41 = vld [vmem:[%s11815_s11 + $0x540] sm:$0xff]  }
0x12ea   :  { %6297 = vmatprep.subr.bf16.mxu0 %v8343_v44  ;;  %6340 = vmatprep.subr.bf16.mxu1 %v8345_v45  ;;  %v9654_v44 = vld [vmem:[%s11815_s11 + $0x5c0] sm:$0xff]   ;;  %v8312_v45 = vld [vmem:[%s11814_s10 + $0x10] sm:$0xff] }
0x12eb   :  { %6327 = vmatprep.mubr.bf16.mxu0 %v9859_v13  ;;  %6370 = vmatprep.mubr.bf16.mxu1 %v9859_v13  ;;  %v9622_v13 = vld [vmem:[%s11815_s11 + $0x4c0] sm:$0xff]   ;;  %v5637_v46 = vrot.slane %v8312_v45, %v10017_v24  ;;  %v5645_v47 = vrot.slane %v8312_v45, %v10523_v40  ;;  %v5641_v48 = vrot.slane %v8312_v45, %v10024_v27 }
0x12ec   :  { %v5649_v49 = vrot.slane %v8312_v45, %v10529_v42 }
0x12ed   :  { %6298 = vmatpush1.bf16.msra.mxu0 %v8342_v50  ;;  %6341 = vmatpush1.bf16.msra.mxu1 %v8344_v51 }
0x12ee   :  { %6299 = vmatprep.subr.bf16.mxu0 %v8359_v52  ;;  %6342 = vmatprep.subr.bf16.mxu1 %v8361_v55 }
0x12f1   :  { %6300 = vmatpush1.bf16.msra.mxu0 %v8358_v62  ;;  %6343 = vmatpush1.bf16.msra.mxu1 %v8360_v63 }
0x12f2   :  { %6301 = vmatprep.subr.bf16.mxu0 %v8375_v3  ;;  %6344 = vmatprep.subr.bf16.mxu1 %v8377_v6 }
0x12f5   :  { %6302 = vmatpush1.bf16.msra.mxu0 %v8374_v8  ;;  %6345 = vmatpush1.bf16.msra.mxu1 %v8376_v33 }
0x12f6   :  { %9034 = vmatprep.subr.bf16.mxu0 %v9621_v60  ;;  %9056 = vmatprep.subr.bf16.mxu1 %v9622_v13 }
0x12f8   :  { %8384 = vmatmul.mubr.msk.bf16.vlgmr.msra.gmra.mrb[88].mxu0 %vm182_vm2, %v11175_v31  ;;  %8385 = vmatmul.mubr.msk.bf16.vlgmr.msra.gmra.mrb[84].mxu1 %vm182_vm2, %v11175_v31  ;;  %v9630_v31 = vld [vmem:[%s11815_s11 + $0x4d0] sm:$0xff]  }
0x12f9   :  { %9035 = vmatpush3.bf16.msra.mxu0 %v9623_v9  ;;  %9057 = vmatpush3.bf16.msra.mxu1 %v9624_v61 }
0x12fa   :  { %9036 = vmatprep.subr.bf16.mxu0 %v9625_v7  ;;  %9058 = vmatprep.subr.bf16.mxu1 %v9626_v10 }
0x12fd   :  { %9037 = vmatpush3.bf16.msra.mxu0 %v9627_v12  ;;  %9059 = vmatpush3.bf16.msra.mxu1 %v9628_v14 }
0x12fe   :  { %9038 = vmatprep.subr.bf16.mxu0 %v9629_v5  ;;  %9060 = vmatprep.subr.bf16.mxu1 %v9630_v31 }
0x1301   :  { %9039 = vmatpush3.bf16.msra.mxu0 %v9631_v22  ;;  %9061 = vmatpush3.bf16.msra.mxu1 %v9632_v53 }
0x1302   :  { %9040 = vmatprep.subr.bf16.mxu0 %v9633_v54  ;;  %9062 = vmatprep.subr.bf16.mxu1 %v9634_v25 }
0x1305   :  { %9041 = vmatpush3.bf16.msra.mxu0 %v9635_v26  ;;  %9063 = vmatpush3.bf16.msra.mxu1 %v9636_v29  ;;  %v9655_v26 = vld [vmem:[%s11815_s11 + $0x500] sm:$0xff]  }
0x1306   :  { %9042 = vmatprep.subr.bf16.mxu0 %v9637_v23  ;;  %9064 = vmatprep.subr.bf16.mxu1 %v9638_v4  ;;  %v9656_v29 = vld [vmem:[%s11815_s11 + $0x580] sm:$0xff]   ;;  %v9657_v23 = vld [vmem:[%s11815_s11 + $0x548] sm:$0xff]  }
0x1307   :  { %v9658_v4 = vld [vmem:[%s11815_s11 + $0x5c8] sm:$0xff]  }
0x1309   :  { %9043 = vmatpush3.bf16.msra.mxu0 %v9639_v34  ;;  %9065 = vmatpush3.bf16.msra.mxu1 %v9640_v15  ;;  %v9659_v34 = vld [vmem:[%s11815_s11 + $0x508] sm:$0xff]  }
0x130a   :  { %9044 = vmatprep.subr.bf16.mxu0 %v9641_v32  ;;  %9066 = vmatprep.subr.bf16.mxu1 %v9642_v28  ;;  %v9660_v15 = vld [vmem:[%s11815_s11 + $0x588] sm:$0xff]   ;;  %v5653_v32 = vrot.slane %v8312_v45, %v10548_v16  ;;  %v5661_v28 = vrot.slane %v8312_v45, %v10551_v17 }
0x130d   :  { %9045 = vmatpush3.bf16.msra.mxu0 %v9643_v11  ;;  %9067 = vmatpush3.bf16.msra.mxu1 %v9644_v0  ;;  %v9661_v11 = vld [vmem:[%s11815_s11 + $0x550] sm:$0xff]  }
0x130e   :  { %9046 = vmatprep.subr.bf16.mxu0 %v9645_v2  ;;  %9068 = vmatprep.subr.bf16.mxu1 %v9646_v30  ;;  %v9662_v0 = vld [vmem:[%s11815_s11 + $0x5d0] sm:$0xff]   ;;  %v5657_v2 = vrot.slane %v8312_v45, %v10554_v20  ;;  %v5665_v30 = vrot.slane %v8312_v45, %v10557_v21  ;;  %v9665_v45 = vld [vmem:[%s11815_s11 + $0x558] sm:$0xff]  }
0x1311   :  { %9047 = vmatpush3.bf16.msra.mxu0 %v9647_v35  ;;  %9069 = vmatpush3.bf16.msra.mxu1 %v9648_v36 }
0x1312   :  { %9048 = vmatprep.subr.bf16.mxu0 %v9649_v37  ;;  %9070 = vmatprep.subr.bf16.mxu1 %v9650_v38  ;;  %v9663_v37 = vld [vmem:[%s11815_s11 + $0x510] sm:$0xff]  }
0x1313   :  { %v9664_v38 = vld [vmem:[%s11815_s11 + $0x590] sm:$0xff]  }
0x1315   :  { %9049 = vmatpush3.bf16.msra.mxu0 %v9651_v39  ;;  %9071 = vmatpush3.bf16.msra.mxu1 %v9652_v43 }
0x1316   :  { %9078 = vmatprep.subr.bf16.mxu0 %v9653_v41  ;;  %9100 = vmatprep.subr.bf16.mxu1 %v9654_v44 }
0x139b   :  { %v6071_v50 = vpop.f32.mrb[76].mxu0  ;;  %v6114_v51 = vpop.f32.mrb[72].mxu1 }
0x139c   :  { %v6072_v52 = vadd.f32 %v6071_v50, %v5637_v46  ;;  %v6115_v55 = vadd.f32 %v6114_v51, %v5645_v47  ;;  %v6073_v56 = vpop.f32.mrb[77].mxu0  ;;  %v6116_v57 = vpop.f32.mrb[73].mxu1 }
0x139d   :  { %v6074_v58 = vadd.f32 %v6073_v56, %v5641_v48  ;;  %v6117_v59 = vadd.f32 %v6116_v57, %v5649_v49  ;;  %v6075_v62 = vpop.f32.mrb[78].mxu0  ;;  %v6118_v63 = vpop.f32.mrb[74].mxu1 }
0x139e   :  { %v6076_v3 = vadd.f32 %v6075_v62, %v5637_v46  ;;  %v6119_v6 = vadd.f32 %v6118_v63, %v5645_v47  ;;  %v6077_v8 = vpop.f32.mrb[79].mxu0  ;;  %v6120_v33 = vpop.f32.mrb[75].mxu1  ;;  %v6381_v9 = vmax.f32 %v6072_v52, 0.0  ;;  %v6383_v61 = vmax.f32 %v6115_v55, 0.0  ;;  %v9666_v46 = vld [vmem:[%s11815_s11 + $0x5d8] sm:$0xff]  }
0x139f   :  { %v6078_v60 = vadd.f32 %v6077_v8, %v5641_v48  ;;  %v6121_v13 = vadd.f32 %v6120_v33, %v5649_v49  ;;  %v6382_v12 = vmax.f32 %v6074_v58, 0.0  ;;  %v6384_v14 = vmax.f32 %v6117_v59, 0.0  ;;  %v9667_v59 = vld [vmem:[%s11815_s11 + $0x518] sm:$0xff]   ;;  %v9669_v33 = vld [vmem:[%s11815_s11 + $0x560] sm:$0xff]  }
0x13a0   :  { %v6397_v7 = vmax.f32 %v6076_v3, 0.0  ;;  %v6399_v10 = vmax.f32 %v6119_v6, 0.0  ;;  %v9668_v62 = vld [vmem:[%s11815_s11 + $0x598] sm:$0xff]  }
0x13a1   :  { %v6398_v5 = vmax.f32 %v6078_v60, 0.0  ;;  %v6400_v31 = vmax.f32 %v6121_v13, 0.0  ;;  %v9670_v60 = vld [vmem:[%s11815_s11 + $0x5e0] sm:$0xff]  }
0x13a2   :  { %v6670_v22 = vpack.c.bf16 %v6397_v7, %v6381_v9  ;;  %v6672_v53 = vpack.c.bf16 %v6399_v10, %v6383_v61 }
0x13a3   :  { %v6671_v54 = vpack.c.bf16 %v6398_v5, %v6382_v12  ;;  %v6673_v25 = vpack.c.bf16 %v6400_v31, %v6384_v14  ;;  %v9671_v31 = vld [vmem:[%s11815_s11 + $0x520] sm:$0xff]  }
0x13a5   :  { %7494 = vmatprep.mubr.bf16.mxu0 %v6671_v54  ;;  %7535 = vmatprep.mubr.bf16.mxu1 %v6673_v25  ;;  %v9674_v54 = vld [vmem:[%s11815_s11 + $0x5e8] sm:$0xff]   ;;  %v11499_v25 = vld [vmem:[%s11814_s10 + $0x18] sm:$0xff] }
0x13a6   :  { %7495 = vmatmul.mubr.bf16.vlgmr.msra.gmra.mrb[92].mxu0 %v6670_v22  ;;  %7536 = vmatmul.mubr.bf16.vlgmr.msra.gmra.mrb[88].mxu1 %v6672_v53  ;;  %v9672_v22 = vld [vmem:[%s11815_s11 + $0x5a0] sm:$0xff]   ;;  %v9673_v53 = vld [vmem:[%s11815_s11 + $0x568] sm:$0xff]  }
0x13a7   :  { %9079 = vmatpush3.bf16.msra.mxu0 %v9655_v26  ;;  %9101 = vmatpush3.bf16.msra.mxu1 %v9656_v29  ;;  %v9675_v26 = vld [vmem:[%s11815_s11 + $0x528] sm:$0xff]  }
0x13a8   :  { %9080 = vmatprep.subr.bf16.mxu0 %v9657_v23  ;;  %9102 = vmatprep.subr.bf16.mxu1 %v9658_v4  ;;  %v9676_v29 = vld [vmem:[%s11815_s11 + $0x5a8] sm:$0xff]   ;;  %v5669_v23 = vrot.slane %v11499_v25, %v10017_v24  ;;  %v5677_v4 = vrot.slane %v11499_v25, %v10523_v40  ;;  %v9679_v24 = vld [vmem:[%s11815_s11 + $0x530] sm:$0xff]  }
0x13a9   :  { %v9680_v40 = vld [vmem:[%s11815_s11 + $0x5b0] sm:$0xff]  }
0x13ab   :  { %v6157_v35 = vpop.f32.mrb[80].mxu0  ;;  %v6200_v36 = vpop.f32.mrb[76].mxu1  ;;  %9081 = vmatpush3.bf16.msra.mxu0 %v9659_v34  ;;  %9103 = vmatpush3.bf16.msra.mxu1 %v9660_v15  ;;  %v9677_v34 = vld [vmem:[%s11815_s11 + $0x570] sm:$0xff]  }
0x13ac   :  { %v6158_v39 = vadd.f32 %v6157_v35, %v5653_v32  ;;  %v6201_v43 = vadd.f32 %v6200_v36, %v5661_v28  ;;  %v6159_v41 = vpop.f32.mrb[81].mxu0  ;;  %v6202_v44 = vpop.f32.mrb[77].mxu1  ;;  %9082 = vmatprep.subr.bf16.mxu0 %v9661_v11  ;;  %9104 = vmatprep.subr.bf16.mxu1 %v9662_v0  ;;  %v9678_v15 = vld [vmem:[%s11815_s11 + $0x5f0] sm:$0xff]  }
0x13ad   :  { %v6160_v47 = vadd.f32 %v6159_v41, %v5657_v2  ;;  %v6203_v48 = vadd.f32 %v6202_v44, %v5665_v30  ;;  %v6161_v49 = vpop.f32.mrb[82].mxu0  ;;  %v6204_v50 = vpop.f32.mrb[78].mxu1 }
0x13ae   :  { %v6162_v51 = vadd.f32 %v6161_v49, %v5653_v32  ;;  %v6205_v52 = vadd.f32 %v6204_v50, %v5661_v28  ;;  %v6163_v55 = vpop.f32.mrb[83].mxu0  ;;  %v6206_v56 = vpop.f32.mrb[79].mxu1  ;;  %v6385_v63 = vmax.f32 %v6158_v39, 0.0  ;;  %v6387_v3 = vmax.f32 %v6201_v43, 0.0  ;;  %v9683_v49 = vld [vmem:[%s11815_s11 + $0x538] sm:$0xff]  }
0x13af   :  { %v6164_v57 = vadd.f32 %v6163_v55, %v5657_v2  ;;  %v6207_v58 = vadd.f32 %v6206_v56, %v5665_v30  ;;  %9083 = vmatpush3.bf16.msra.mxu0 %v9663_v37  ;;  %9105 = vmatpush3.bf16.msra.mxu1 %v9664_v38  ;;  %v6386_v13 = vmax.f32 %v6160_v47, 0.0  ;;  %v6388_v9 = vmax.f32 %v6203_v48, 0.0  ;;  %v9684_v50 = vld [vmem:[%s11815_s11 + $0x5b8] sm:$0xff]  }
0x13b0   :  { %v6401_v6 = vmax.f32 %v6162_v51, 0.0  ;;  %v6403_v8 = vmax.f32 %v6205_v52, 0.0  ;;  %9084 = vmatprep.subr.bf16.mxu0 %v9665_v45  ;;  %9106 = vmatprep.subr.bf16.mxu1 %v9666_v46  ;;  %v5673_v32 = vrot.slane %v11499_v25, %v10024_v27  ;;  %v5681_v28 = vrot.slane %v11499_v25, %v10529_v42  ;;  %v9681_v27 = vld [vmem:[%s11815_s11 + $0x578] sm:$0xff]  }
0x13b1   :  { %v6402_v61 = vmax.f32 %v6164_v57, 0.0  ;;  %v6404_v7 = vmax.f32 %v6207_v58, 0.0  ;;  %v9682_v42 = vld [vmem:[%s11815_s11 + $0x5f8] sm:$0xff]   ;;  %v9685_v57 = vld [vmem:[%s11815_s11 + $0x640] sm:$0xff]  }
0x13b2   :  { %v11480_v10 = vpack.c.bf16 %v6401_v6, %v6385_v63  ;;  %v11482_v12 = vpack.c.bf16 %v6403_v8, %v6387_v3  ;;  %v9686_v58 = vld [vmem:[%s11815_s11 + $0x6c0] sm:$0xff]  }
0x13b3   :  { %v6675_v14 = vpack.c.bf16 %v6402_v61, %v6386_v13  ;;  %v6677_v5 = vpack.c.bf16 %v6404_v7, %v6388_v9  ;;  %9085 = vmatpush3.bf16.msra.mxu0 %v9667_v59  ;;  %9107 = vmatpush3.bf16.msra.mxu1 %v9668_v62  ;;  %v9687_v13 = vld [vmem:[%s11815_s11 + $0x600] sm:$0xff]   ;;  %v9689_v61 = vld [vmem:[%s11815_s11 + $0x648] sm:$0xff]  }
0x13b4   :  { %9086 = vmatprep.subr.bf16.mxu0 %v9669_v33  ;;  %9108 = vmatprep.subr.bf16.mxu1 %v9670_v60  ;;  %v9688_v9 = vld [vmem:[%s11815_s11 + $0x680] sm:$0xff]   ;;  %v9690_v7 = vld [vmem:[%s11815_s11 + $0x6c8] sm:$0xff]  }
0x13b5   :  { %7576 = vmatprep.mubr.bf16.mxu0 %v6675_v14  ;;  %7617 = vmatprep.mubr.bf16.mxu1 %v6677_v5  ;;  %v9691_v14 = vld [vmem:[%s11815_s11 + $0x608] sm:$0xff]   ;;  %v5685_v5 = vrot.slane %v11499_v25, %v10548_v16  ;;  %v9694_v16 = vld [vmem:[%s11815_s11 + $0x6d0] sm:$0xff]  }
0x13b7   :  { %9087 = vmatpush3.bf16.msra.mxu0 %v9671_v31  ;;  %9109 = vmatpush3.bf16.msra.mxu1 %v9672_v22  ;;  %v5693_v31 = vrot.slane %v11499_v25, %v10551_v17  ;;  %v5689_v22 = vrot.slane %v11499_v25, %v10554_v20  ;;  %v9696_v20 = vld [vmem:[%s11815_s11 + $0x690] sm:$0xff]  }
0x13b8   :  { %9088 = vmatprep.subr.bf16.mxu0 %v9673_v53  ;;  %9110 = vmatprep.subr.bf16.mxu1 %v9674_v54  ;;  %v5697_v53 = vrot.slane %v11499_v25, %v10557_v21  ;;  %v9697_v21 = vld [vmem:[%s11815_s11 + $0x658] sm:$0xff]  }
0x13bb   :  { %v6243_v11 = vpop.f32.mrb[84].mxu0  ;;  %v6286_v0 = vpop.f32.mrb[80].mxu1  ;;  %9089 = vmatpush3.bf16.msra.mxu0 %v9675_v26  ;;  %9111 = vmatpush3.bf16.msra.mxu1 %v9676_v29  ;;  %v9695_v26 = vld [vmem:[%s11815_s11 + $0x610] sm:$0xff]  }
0x13bc   :  { %v6244_v2 = vadd.f32 %v6243_v11, %v5669_v23  ;;  %v6287_v30 = vadd.f32 %v6286_v0, %v5677_v4  ;;  %v6245_v35 = vpop.f32.mrb[85].mxu0  ;;  %v6288_v36 = vpop.f32.mrb[81].mxu1  ;;  %9090 = vmatprep.subr.bf16.mxu0 %v9677_v34  ;;  %9112 = vmatprep.subr.bf16.mxu1 %v9678_v15  ;;  %v9698_v11 = vld [vmem:[%s11815_s11 + $0x6d8] sm:$0xff]  }
0x13bd   :  { %v6246_v37 = vadd.f32 %v6245_v35, %v5673_v32  ;;  %v6289_v38 = vadd.f32 %v6288_v36, %v5681_v28  ;;  %v6247_v39 = vpop.f32.mrb[86].mxu0  ;;  %v6290_v43 = vpop.f32.mrb[82].mxu1  ;;  %v9699_v36 = vld [vmem:[%s11815_s11 + $0x618] sm:$0xff]  }
0x13be   :  { %v6248_v41 = vadd.f32 %v6247_v39, %v5669_v23  ;;  %v6291_v44 = vadd.f32 %v6290_v43, %v5677_v4  ;;  %v6249_v45 = vpop.f32.mrb[87].mxu0  ;;  %v6292_v46 = vpop.f32.mrb[83].mxu1  ;;  %v6389_v51 = vmax.f32 %v6244_v2, 0.0  ;;  %v6391_v52 = vmax.f32 %v6287_v30, 0.0  ;;  %v9700_v39 = vld [vmem:[%s11815_s11 + $0x698] sm:$0xff]   ;;  %v9701_v43 = vld [vmem:[%s11815_s11 + $0x660] sm:$0xff]  }
0x13bf   :  { %v6250_v47 = vadd.f32 %v6249_v45, %v5673_v32  ;;  %v6293_v48 = vadd.f32 %v6292_v46, %v5681_v28  ;;  %9091 = vmatpush3.bf16.msra.mxu0 %v9679_v24  ;;  %9113 = vmatpush3.bf16.msra.mxu1 %v9680_v40  ;;  %v6390_v59 = vmax.f32 %v6246_v37, 0.0  ;;  %v6392_v62 = vmax.f32 %v6289_v38, 0.0 }
0x13c0   :  { %v6405_v55 = vmax.f32 %v6248_v41, 0.0  ;;  %v6407_v56 = vmax.f32 %v6291_v44, 0.0  ;;  %9092 = vmatprep.subr.bf16.mxu0 %v9681_v27  ;;  %9114 = vmatprep.subr.bf16.mxu1 %v9682_v42 }
0x13c1   :  { %v6406_v63 = vmax.f32 %v6250_v47, 0.0  ;;  %v6408_v3 = vmax.f32 %v6293_v48, 0.0  ;;  %v9702_v47 = vld [vmem:[%s11815_s11 + $0x6e0] sm:$0xff]  }
0x13c2   :  { %v11545_v6 = vpack.c.bf16 %v6405_v55, %v6389_v51  ;;  %v11547_v8 = vpack.c.bf16 %v6407_v56, %v6391_v52  ;;  %v9703_v52 = vld [vmem:[%s11815_s11 + $0x620] sm:$0xff]   ;;  %v9705_v56 = vld [vmem:[%s11815_s11 + $0x668] sm:$0xff]  }
0x13c3   :  { %v6679_v33 = vpack.c.bf16 %v6406_v63, %v6390_v59  ;;  %v6681_v60 = vpack.c.bf16 %v6408_v3, %v6392_v62  ;;  %9093 = vmatpush3.bf16.msra.mxu0 %v9683_v49  ;;  %9115 = vmatpush3.bf16.msra.mxu1 %v9684_v50  ;;  %v9704_v55 = vld [vmem:[%s11815_s11 + $0x6a0] sm:$0xff]   ;;  %v9708_v59 = vld [vmem:[%s11815_s11 + $0x6a8] sm:$0xff]   ;;  %v9709_v62 = vld [vmem:[%s11815_s11 + $0x670] sm:$0xff]  }
0x13c4   :  { %9122 = vmatprep.subr.bf16.mxu0 %v9685_v57  ;;  %9144 = vmatprep.subr.bf16.mxu1 %v9686_v58  ;;  %v9706_v57 = vld [vmem:[%s11815_s11 + $0x6e8] sm:$0xff]   ;;  %v9710_v63 = vld [vmem:[%s11815_s11 + $0x6f0] sm:$0xff]  }
0x13c5   :  { %v9707_v58 = vld [vmem:[%s11815_s11 + $0x628] sm:$0xff]   ;;  %v9711_v3 = vld [vmem:[%s11815_s11 + $0x630] sm:$0xff]  }
0x13c6   :  { %7577 = vmatmul.mubr.bf16.vlgmr.msra.gmra.mrb[96].mxu0 %v11480_v10  ;;  %7618 = vmatmul.mubr.bf16.vlgmr.msra.gmra.mrb[92].mxu1 %v11482_v12  ;;  %v9692_v10 = vld [vmem:[%s11815_s11 + $0x688] sm:$0xff]   ;;  %v9693_v12 = vld [vmem:[%s11815_s11 + $0x650] sm:$0xff]  }
0x13c7   :  { %9123 = vmatpush3.bf16.msra.mxu0 %v9687_v13  ;;  %7658 = vmatprep.mubr.bf16.mxu0 %v6679_v33  ;;  %v9712_v33 = vld [vmem:[%s11815_s11 + $0x6b0] sm:$0xff]   ;;  %v9714_v13 = vld [vmem:[%s11815_s11 + $0x6f8] sm:$0xff]  }
0x13c8   :  { %9145 = vmatpush3.bf16.msra.mxu1 %v9688_v9  ;;  %7699 = vmatprep.mubr.bf16.mxu1 %v6681_v60  ;;  %v9713_v60 = vld [vmem:[%s11815_s11 + $0x678] sm:$0xff]  }
0x13c9   :  { %9124 = vmatprep.subr.bf16.mxu0 %v9689_v61  ;;  %9146 = vmatprep.subr.bf16.mxu1 %v9690_v7  ;;  %v9715_v9 = vld [vmem:[%s11815_s11 + $0x638] sm:$0xff]   ;;  %v9717_v7 = vld [vmem:[%s11815_s11 + $0x740] sm:$0xff]  }
0x13ca   :  { %v9716_v61 = vld [vmem:[%s11815_s11 + $0x6b8] sm:$0xff]  }
0x13cb   :  { %v6329_v17 = vpop.f32.mrb[88].mxu0  ;;  %v6372_v54 = vpop.f32.mrb[84].mxu1  ;;  %9125 = vmatpush3.bf16.msra.mxu0 %v9691_v14  ;;  %v9718_v14 = vld [vmem:[%s11815_s11 + $0x7c0] sm:$0xff]  }
0x13cc   :  { %v6330_v29 = vadd.f32 %v6329_v17, %v5685_v5  ;;  %v6373_v23 = vadd.f32 %v6372_v54, %v5693_v31  ;;  %9147 = vmatpush3.bf16.msra.mxu1 %v9692_v10  ;;  %v6331_v4 = vpop.f32.mrb[89].mxu0  ;;  %v6374_v34 = vpop.f32.mrb[85].mxu1  ;;  %9126 = vmatprep.subr.bf16.mxu0 %v9693_v12  ;;  %v9721_v10 = vld [vmem:[%s11815_s11 + $0x748] sm:$0xff]   ;;  %v9728_v17 = vld [vmem:[%s11815_s11 + $0x790] sm:$0xff]   ;;  %v9729_v54 = vld [vmem:[%s11815_s11 + $0x758] sm:$0xff]  }
0x13cd   :  { %v6332_v25 = vadd.f32 %v6331_v4, %v5689_v22  ;;  %v6375_v15 = vadd.f32 %v6374_v34, %v5697_v53  ;;  %v6333_v32 = vpop.f32.mrb[90].mxu0  ;;  %v6376_v28 = vpop.f32.mrb[86].mxu1  ;;  %9148 = vmatprep.subr.bf16.mxu1 %v9694_v16  ;;  %v9722_v12 = vld [vmem:[%s11815_s11 + $0x7c8] sm:$0xff]   ;;  %v9727_v16 = vld [vmem:[%s11815_s11 + $0x710] sm:$0xff]   ;;  %v9733_v4 = vld [vmem:[%s11815_s11 + $0x760] sm:$0xff]  }
0x13ce   :  { %v6334_v0 = vadd.f32 %v6333_v32, %v5685_v5  ;;  %v6377_v24 = vadd.f32 %v6376_v28, %v5693_v31  ;;  %v6335_v40 = vpop.f32.mrb[91].mxu0  ;;  %v6378_v2 = vpop.f32.mrb[87].mxu1  ;;  %v6393_v27 = vmax.f32 %v6330_v29, 0.0  ;;  %v6395_v42 = vmax.f32 %v6373_v23, 0.0  ;;  %v9719_v5 = vld [vmem:[%s11815_s11 + $0x700] sm:$0xff]   ;;  %v9731_v29 = vld [vmem:[%s11815_s11 + $0x718] sm:$0xff]  }
0x13cf   :  { %v6336_v30 = vadd.f32 %v6335_v40, %v5689_v22  ;;  %v6379_v35 = vadd.f32 %v6378_v2, %v5697_v53  ;;  %9127 = vmatpush3.bf16.msra.mxu0 %v9695_v26  ;;  %v6394_v41 = vmax.f32 %v6332_v25, 0.0  ;;  %v6396_v44 = vmax.f32 %v6375_v15, 0.0  ;;  %v9720_v31 = vld [vmem:[%s11815_s11 + $0x780] sm:$0xff]   ;;  %v9723_v22 = vld [vmem:[%s11815_s11 + $0x708] sm:$0xff]   ;;  %v9730_v26 = vld [vmem:[%s11815_s11 + $0x7d8] sm:$0xff]  }
0x13d0   :  { %v6409_v37 = vmax.f32 %v6334_v0, 0.0  ;;  %v6411_v38 = vmax.f32 %v6377_v24, 0.0  ;;  %9149 = vmatpush3.bf16.msra.mxu1 %v9696_v20  ;;  %9128 = vmatprep.subr.bf16.mxu0 %v9697_v21  ;;  %v9724_v53 = vld [vmem:[%s11815_s11 + $0x788] sm:$0xff]   ;;  %v9732_v23 = vld [vmem:[%s11815_s11 + $0x798] sm:$0xff]   ;;  %v9734_v34 = vld [vmem:[%s11815_s11 + $0x7e0] sm:$0xff]  }
0x13d1   :  { %v6410_v45 = vmax.f32 %v6336_v30, 0.0  ;;  %v6412_v46 = vmax.f32 %v6379_v35, 0.0  ;;  %9150 = vmatprep.subr.bf16.mxu1 %v9698_v11  ;;  %v9735_v20 = vld [vmem:[%s11815_s11 + $0x720] sm:$0xff]   ;;  %v9737_v25 = vld [vmem:[%s11815_s11 + $0x768] sm:$0xff]   ;;  %v9741_v11 = vld [vmem:[%s11815_s11 + $0x770] sm:$0xff]  }
0x13d2   :  { %v11607_v48 = vpack.c.bf16 %v6409_v37, %v6393_v27  ;;  %v11609_v49 = vpack.c.bf16 %v6411_v38, %v6395_v42  ;;  %v9736_v21 = vld [vmem:[%s11815_s11 + $0x7a0] sm:$0xff]   ;;  %v9738_v15 = vld [vmem:[%s11815_s11 + $0x7e8] sm:$0xff]   ;;  %v9742_v0 = vld [vmem:[%s11815_s11 + $0x7f0] sm:$0xff]  }
0x13d3   :  { %v6683_v50 = vpack.c.bf16 %v6410_v45, %v6394_v41  ;;  %v6685_v51 = vpack.c.bf16 %v6412_v46, %v6396_v44  ;;  %9129 = vmatpush3.bf16.msra.mxu0 %v9699_v36  ;;  %v9739_v32 = vld [vmem:[%s11815_s11 + $0x728] sm:$0xff]   ;;  %v9743_v24 = vld [vmem:[%s11815_s11 + $0x730] sm:$0xff]   ;;  %v9745_v2 = vld [vmem:[%s11815_s11 + $0x778] sm:$0xff]  }
0x13d4   :  { %9151 = vmatpush3.bf16.msra.mxu1 %v9700_v39  ;;  %9130 = vmatprep.subr.bf16.mxu0 %v9701_v43  ;;  %v9740_v28 = vld [vmem:[%s11815_s11 + $0x7a8] sm:$0xff]   ;;  %v9744_v40 = vld [vmem:[%s11815_s11 + $0x7b0] sm:$0xff]   ;;  %v9746_v30 = vld [vmem:[%s11815_s11 + $0x7f8] sm:$0xff]  }
0x13d5   :  { %9152 = vmatprep.subr.bf16.mxu1 %v9702_v47  ;;  %v9747_v35 = vld [vmem:[%s11815_s11 + $0x738] sm:$0xff]   ;;  %v8643_v37 = vld [vmem:[%s11816_s12 + $0x1] ss:$0 sm:$0xff] }
0x13d6   :  { %v9748_v36 = vld [vmem:[%s11815_s11 + $0x7b8] sm:$0xff]  }
0x13d7   :  { %9131 = vmatpush3.bf16.msra.mxu0 %v9703_v52 }
0x13d8   :  { %9153 = vmatpush3.bf16.msra.mxu1 %v9704_v55  ;;  %9132 = vmatprep.subr.bf16.mxu0 %v9705_v56 }
0x13d9   :  { %9154 = vmatprep.subr.bf16.mxu1 %v9706_v57 }
0x13db   :  { %9133 = vmatpush3.bf16.msra.mxu0 %v9707_v58 }
0x13dc   :  { %9155 = vmatpush3.bf16.msra.mxu1 %v9708_v59  ;;  %9134 = vmatprep.subr.bf16.mxu0 %v9709_v62 }
0x13dd   :  { %9156 = vmatprep.subr.bf16.mxu1 %v9710_v63 }
0x13df   :  { %9135 = vmatpush3.bf16.msra.mxu0 %v9711_v3 }
0x13e0   :  { %9157 = vmatpush3.bf16.msra.mxu1 %v9712_v33  ;;  %9136 = vmatprep.subr.bf16.mxu0 %v9713_v60 }
0x13e1   :  { %9158 = vmatprep.subr.bf16.mxu1 %v9714_v13 }
0x13e3   :  { %9137 = vmatpush3.bf16.msra.mxu0 %v9715_v9 }
0x13e4   :  { %9159 = vmatpush3.bf16.msra.mxu1 %v9716_v61  ;;  %9166 = vmatprep.subr.bf16.mxu0 %v9717_v7 }
0x13e5   :  { %9188 = vmatprep.subr.bf16.mxu1 %v9718_v14 }
0x13e6   :  { %7659 = vmatmul.mubr.bf16.vlgmr.msra.gmra.mrb[100].mxu0 %v11545_v6  ;;  %v9725_v6 = vld [vmem:[%s11815_s11 + $0x750] sm:$0xff]  }
0x13e7   :  { %7700 = vmatmul.mubr.bf16.vlgmr.msra.gmra.mrb[96].mxu1 %v11547_v8  ;;  %9167 = vmatpush3.bf16.msra.mxu0 %v9719_v5  ;;  %v9726_v8 = vld [vmem:[%s11815_s11 + $0x7d0] sm:$0xff]  }
0x13e8   :  { %7740 = vmatprep.mubr.bf16.mxu0 %v6683_v50  ;;  %9189 = vmatpush3.bf16.msra.mxu1 %v9720_v31 }
0x13e9   :  { %7781 = vmatprep.mubr.bf16.mxu1 %v6685_v51  ;;  %9168 = vmatprep.subr.bf16.mxu0 %v9721_v10 }
0x13ea   :  { %9190 = vmatprep.subr.bf16.mxu1 %v9722_v12 }
0x13eb   :  { %9169 = vmatpush3.bf16.msra.mxu0 %v9723_v22 }
0x13ec   :  { %9191 = vmatpush3.bf16.msra.mxu1 %v9724_v53  ;;  %9170 = vmatprep.subr.bf16.mxu0 %v9725_v6 }
0x13ed   :  { %9192 = vmatprep.subr.bf16.mxu1 %v9726_v8 }
0x13ef   :  { %9171 = vmatpush3.bf16.msra.mxu0 %v9727_v16 }
0x13f0   :  { %9193 = vmatpush3.bf16.msra.mxu1 %v9728_v17  ;;  %9172 = vmatprep.subr.bf16.mxu0 %v9729_v54 }
0x13f1   :  { %9194 = vmatprep.subr.bf16.mxu1 %v9730_v26 }
0x13f3   :  { %9173 = vmatpush3.bf16.msra.mxu0 %v9731_v29 }
0x13f4   :  { %9195 = vmatpush3.bf16.msra.mxu1 %v9732_v23  ;;  %9174 = vmatprep.subr.bf16.mxu0 %v9733_v4 }
0x13f5   :  { %9196 = vmatprep.subr.bf16.mxu1 %v9734_v34 }
0x13f7   :  { %9175 = vmatpush3.bf16.msra.mxu0 %v9735_v20 }
0x13f8   :  { %9197 = vmatpush3.bf16.msra.mxu1 %v9736_v21  ;;  %9176 = vmatprep.subr.bf16.mxu0 %v9737_v25 }
0x13f9   :  { %9198 = vmatprep.subr.bf16.mxu1 %v9738_v15 }
0x13fb   :  { %9177 = vmatpush3.bf16.msra.mxu0 %v9739_v32 }
0x13fc   :  { %9199 = vmatpush3.bf16.msra.mxu1 %v9740_v28  ;;  %9178 = vmatprep.subr.bf16.mxu0 %v9741_v11 }
0x13fd   :  { %9200 = vmatprep.subr.bf16.mxu1 %v9742_v0 }
0x13ff   :  { %9179 = vmatpush3.bf16.msra.mxu0 %v9743_v24 }
0x1400   :  { %9201 = vmatpush3.bf16.msra.mxu1 %v9744_v40  ;;  %9180 = vmatprep.subr.bf16.mxu0 %v9745_v2 }
0x1401   :  { %9202 = vmatprep.subr.bf16.mxu1 %v9746_v30 }
0x1403   :  { %9181 = vmatpush3.bf16.msra.mxu0 %v9747_v35 }
0x1404   :  { %9203 = vmatpush3.bf16.msra.mxu1 %v9748_v36  ;;  %9405 = vmatprep.subr.bf16.mxu0 %v9857_v1 }
0x1406   :  { %7741 = vmatmul.mubr.bf16.vlgmr.msra.gmra.mrb[104].mxu0 %v11607_v48 }
0x1407   :  { %7782 = vmatmul.mubr.bf16.vlgmr.msra.gmra.mrb[100].mxu1 %v11609_v49  ;;  %9413 = vmatprep.mubr.msk.bf16.mxu0 %vm9858_vm0, %v9857_v1 }
0x1479   :  { %v9050_v27 = vpop.f32.mrb[92].mxu0  ;;  %v9072_v42 = vpop.f32.mrb[88].mxu1 }
0x147a   :  { %v9051_v38 = vpop.f32.mrb[93].mxu0  ;;  %v9073_v39 = vpop.f32.mrb[89].mxu1 }
0x147b   :  { %v9052_v43 = vadd.f32 %v9051_v38, %v9050_v27  ;;  %v9074_v41 = vadd.f32 %v9073_v39, %v9072_v42  ;;  %v9053_v44 = vpop.f32.mrb[94].mxu0  ;;  %v9075_v45 = vpop.f32.mrb[90].mxu1 }
0x147c   :  { %v9054_v46 = vpop.f32.mrb[95].mxu0  ;;  %v9076_v47 = vpop.f32.mrb[91].mxu1 }
0x147d   :  { %v7497_v48 = vadd.f32 %v9052_v43, %v8643_v37  ;;  %v9055_v50 = vadd.f32 %v9054_v46, %v9053_v44  ;;  %v9077_v49 = vadd.f32 %v9076_v47, %v9075_v45 }
0x147f   :  { %v7538_v51 = vadd.f32 %v9074_v41, %v7497_v48  ;;  %v7500_v52 = vadd.f32 %v9055_v50, %v8643_v37 }
0x1481   :  { %v7541_v55 = vadd.f32 %v9077_v49, %v7500_v52 }
0x1499   :  { %v9094_v56 = vpop.f32.mrb[96].mxu0  ;;  %v9116_v57 = vpop.f32.mrb[92].mxu1 }
0x149a   :  { %v9095_v58 = vpop.f32.mrb[97].mxu0  ;;  %v9117_v59 = vpop.f32.mrb[93].mxu1 }
0x149b   :  { %v9096_v62 = vadd.f32 %v9095_v58, %v9094_v56  ;;  %v9118_v63 = vadd.f32 %v9117_v59, %v9116_v57  ;;  %v9097_v3 = vpop.f32.mrb[98].mxu0  ;;  %v9119_v33 = vpop.f32.mrb[94].mxu1  ;;  %v9750_v56 = vld [vmem:[%s11819_s15 + $0x8] sm:$0xff]   ;;  %v9751_v57 = vld [vmem:[%s11819_s15 + $0x10] sm:$0xff]   ;;  %v9752_v58 = vld [vmem:[%s11819_s15 + $0x18] sm:$0xff]  }
0x149c   :  { %v9098_v60 = vpop.f32.mrb[99].mxu0  ;;  %v9120_v13 = vpop.f32.mrb[95].mxu1 }
0x149d   :  { %v7579_v9 = vadd.f32 %v9096_v62, %v7538_v51  ;;  %v9099_v61 = vadd.f32 %v9098_v60, %v9097_v3  ;;  %v9121_v7 = vadd.f32 %v9120_v13, %v9119_v33 }
0x149f   :  { %v7620_v14 = vadd.f32 %v9118_v63, %v7579_v9  ;;  %v7582_v5 = vadd.f32 %v9099_v61, %v7541_v55  ;;  %v8774_v9 = vld [vmem:[%s11817_s13 + $0x1] ss:$0 sm:$0xff]  ;;  %s9867_s13 = smov [#allocation2]  }
0x14a0   :  { %s7929_s26 = sshll.u32 %s9867_s13, 4  ;;  %s7930_s26 = int_to_ptr.vmem [resolvable:$true] %s7929_s26 }
0x14a1   :  { %v7623_v31 = vadd.f32 %v9121_v7, %v7582_v5  ;;  %p9838_p1 = scmp.lt.s32.totalorder %s7930_s26, %s7930_s26 }
0x14b9   :  { %v9138_v10 = vpop.f32.mrb[100].mxu0 }
0x14ba   :  { %v9160_v12 = vpop.f32.mrb[96].mxu1  ;;  %v9139_v22 = vpop.f32.mrb[101].mxu0 }
0x14bb   :  { %v9140_v53 = vadd.f32 %v9139_v22, %v9138_v10  ;;  %v9161_v6 = vpop.f32.mrb[97].mxu1  ;;  %v9141_v8 = vpop.f32.mrb[102].mxu0 }
0x14bc   :  { %v9162_v16 = vadd.f32 %v9161_v6, %v9160_v12  ;;  %v9163_v17 = vpop.f32.mrb[98].mxu1  ;;  %v9142_v54 = vpop.f32.mrb[103].mxu0 }
0x14bd   :  { %v7661_v26 = vadd.f32 %v9140_v53, %v7620_v14  ;;  %v9143_v29 = vadd.f32 %v9142_v54, %v9141_v8  ;;  %v9164_v23 = vpop.f32.mrb[99].mxu1  ;;  %v8776_v53 = vld [vmem:[%s11820_s16] ss:$0 sm:$0xff] }
0x14be   :  { %v9165_v4 = vadd.f32 %v9164_v23, %v9163_v17 }
0x14bf   :  { %v7702_v34 = vadd.f32 %v9162_v16, %v7661_v26  ;;  %v7664_v20 = vadd.f32 %v9143_v29, %v7623_v31 }
0x14c1   :  { %v7705_v21 = vadd.f32 %v9165_v4, %v7664_v20 }
0x14d9   :  { %v9182_v25 = vpop.f32.mrb[104].mxu0 }
0x14da   :  { %v9204_v15 = vpop.f32.mrb[100].mxu1  ;;  %v9183_v32 = vpop.f32.mrb[105].mxu0 }
0x14db   :  { %v9184_v28 = vadd.f32 %v9183_v32, %v9182_v25  ;;  %v9205_v11 = vpop.f32.mrb[101].mxu1  ;;  %v9185_v0 = vpop.f32.mrb[106].mxu0 }
0x14dc   :  { %v9206_v24 = vadd.f32 %v9205_v11, %v9204_v15  ;;  %v9207_v40 = vpop.f32.mrb[102].mxu1  ;;  %v9186_v2 = vpop.f32.mrb[107].mxu0 }
0x14dd   :  { %v7743_v30 = vadd.f32 %v9184_v28, %v7702_v34  ;;  %v9187_v35 = vadd.f32 %v9186_v2, %v9185_v0  ;;  %v9208_v36 = vpop.f32.mrb[103].mxu1 }
0x14de   :  { %v9209_v27 = vadd.f32 %v9208_v36, %v9207_v40 }
0x14df   :  { %v7784_v42 = vadd.f32 %v9206_v24, %v7743_v30  ;;  %v7746_v37 = vadd.f32 %v9187_v35, %v7705_v21 }
0x14e1   :  { %v7787_v38 = vadd.f32 %v9209_v27, %v7746_v37  ;;  %v7790_v39 = vadd.f32 %v7784_v42, %v11169_v18 }
0x14e3   :  { %v7796_v43 = vsel %vm182_vm2, %v7790_v39, 0.0  ;;  %v7791_v41 = vadd.f32 %v7787_v38, %v11171_v19  ;;  %v9749_v19 = vld [vmem:[%s11819_s15] sm:$0xff]  }
0x14e4   :  { %7797 = vadd.xlane.f32.xlu1 %v7796_v43  ;;  %9406 = vmatpush3.bf16.msra.mxu0 %v9749_v19 }
0x14e5   :  { %v7799_v44 = vsel %vm182_vm2, %v7791_v41, 0.0  ;;  %9407 = vmatprep.subr.bf16.mxu0 %v9857_v1 }
0x14e6   :  { %7800 = vadd.xlane.f32.xlu0 %v7799_v44 }
0x14e8   :  { %9408 = vmatpush3.bf16.msra.mxu0 %v9750_v56 }
0x14e9   :  { %9409 = vmatprep.subr.bf16.mxu0 %v9857_v1 }
0x14ec   :  { %9410 = vmatpush3.bf16.msra.mxu0 %v9751_v57 }
0x14ed   :  { %9411 = vmatprep.subr.bf16.mxu0 %v9857_v1  ;;  %v8775_v1 = vld [vmem:[%s11818_s14 + $0x1] ss:$0 sm:$0xff]  ;;  %s9833_s14 = scalar_lea.vmem %s7930_s26, 256 }
0x14ee   :  { %p9834_p0 = scmp.ne.s32.totalorder %s7930_s26, %s9833_s14  ;;  %p9839_p2 = scmp.lt.s32.totalorder %s9833_s14, %s9833_s14 }
0x14f0   :  { %9412 = vmatpush3.bf16.msra.mxu0 %v9752_v58  ;;  %p9840_p3 = por %p9839_p2, %p9838_p1 }
0x14f2   :  { %p9841_p4 = pnand %p9840_p3, %p9834_p0 }
0x1571   :  { %v7798_v45 = vpop.xlane.xlu1 %7797 }
0x1572   :  { %v7802_v46 = vmul.f32 0.015625, %v7798_v45 }
0x1573   :  { %v7801_v47 = vpop.xlane.xlu0 %7800 }
0x1574   :  { %v7804_v48 = vsub.f32 %v7790_v39, %v7802_v46  ;;  %v7803_v50 = vmul.f32 0.015625, %v7801_v47 }
0x1576   :  { %v7805_v49 = vsub.f32 %v7791_v41, %v7803_v50  ;;  %v7806_v51 = vmul.f32 %v7804_v48, %v7804_v48 }
0x1578   :  { %v7808_v52 = vsel %vm182_vm2, %v7806_v51, 0.0  ;;  %v7807_v55 = vmul.f32 %v7805_v49, %v7805_v49 }
0x1579   :  { %7809 = vadd.xlane.f32.xlu1 %v7808_v52 }
0x157a   :  { %v7811_v18 = vsel %vm182_vm2, %v7807_v55, 0.0 }
0x157b   :  { %7812 = vadd.xlane.f32.xlu0 %v7811_v18 }
0x1606   :  { %v7810_v59 = vpop.xlane.xlu1 %7809 }
0x1607   :  { %v7814_v62 = vmul.f32 0.015625, %v7810_v59 }
0x1608   :  { %v7813_v63 = vpop.xlane.xlu0 %7812 }
0x1609   :  { %v7816_v3 = vadd.f32 1e-05, %v7814_v62  ;;  %v7815_v33 = vmul.f32 0.015625, %v7813_v63 }
0x160b   :  { %9829 = vrsqrt.f32 %v7816_v3  ;;  %v7817_v60 = vadd.f32 1e-05, %v7815_v33 }
0x160d   :  { %9831 = vrsqrt.f32 %v7817_v60 }
0x1615   :  { %v9830_v13 = vpop.eup %9829 }
0x1616   :  { %v7820_v61 = vmul.f32 %v9830_v13, %v7804_v48 }
0x1617   :  { %v9832_v7 = vpop.eup %9831 }
0x1618   :  { %v7828_v14 = vmul.f32 %v8774_v9, %v7820_v61  ;;  %v7821_v5 = vmul.f32 %v9832_v7, %v7805_v49 }
0x161a   :  { %v7829_v31 = vmul.f32 %v8774_v9, %v7821_v5  ;;  %v7836_v10 = vadd.f32 %v8775_v1, %v7828_v14 }
0x161c   :  { %v7837_v12 = vadd.f32 %v8775_v1, %v7829_v31 }
0x161e   :  { %v7846_v22 = vpack.c.bf16 %v7837_v12, %v7836_v10 }
0x1620   :  { %9414 = vmatmul.mubr.msk.bf16.vlgmr.msra.gmra.mrb[108].mxu0 %vm182_vm2, %v7846_v22 }
0x16f3   :  { %v7915_v6 = vpop.f32.mrb[108].mxu0 }
0x16f4   :  { %v7916_v8 = vadd.f32 %v8776_v53, %v7915_v6  ;;  %v9415_v16 = vpop.f32.mrb[109].mxu0 }
0x16f5   :  { %v7918_v17 = vpop.f32.mrb[110].mxu0 }
0x16f6   :  { %7922 = vst.msk [vmem:[#allocation2] sm:$0xff] %vm76_vm1, %v7916_v8  ;;  %v7919_v54 = vadd.f32 %v8776_v53, %v7918_v17  ;;  %v9416_v26 = vpop.f32.mrb[111].mxu0 }
0x16f8   :  { %7923 = vst.msk [vmem:[#allocation2 + $0x8] sm:$0xff] %vm76_vm1, %v7919_v54 }
0x16f9   :  { %9844 = shalt.err (!%p9841_p4)
}
0x16fa   :  { %s9845_s27 = scalar_lea.hbm %s11821_s17, 256 }
0x16fb   :  { %p9846_p5 = scmp.ne.s32.totalorder %s11821_s17, %s9845_s27  ;;  %p9849_p6 = scmp.lt.u32.totalorder %s9845_s27, %s11821_s17 }
0x16fd   :  { %p9851_p7 = pnand %p9849_p6, %p9846_p5 }
0x16ff   :  { %9854 = shalt.err (!%p9851_p7)
}
0x1700   :  { %s9868_s1 = smov 128   ;;  %s9869_s29 = smov 8  }
0x1701   :  { %7935 = dma.vmem_to_hbm [thread:$0]  %s7930_s26, 256, %s11821_s17, [#allocation3], %s9868_s1, %s9868_s1, %s9869_s29  }
0x1702   :  { %9855 = dma.done.wait [#allocation3], 256  }
0x1703   :  { %9856 = vsyncadd [#allocation3], 4294967040 }
0x1704   :  { %7939 = vsyncpa [#allocation3], 1 }

</bundles_post_ra>
